<compile_context>
chip_gen: v6e
topology: v6e:2x2x1
jax: 0.10.0
libtpu: 0.0.40
codegen_flags: <defaults>
</compile_context>

<pallas_src>
import functools
import numpy as np
import jax
import jax.numpy as jnp
from jax.experimental import pallas as pl
from jax.experimental.pallas import tpu as pltpu


def _round_up(n, m):
    return ((n + m - 1) // m) * m


def _pad_axis(a, axis, target):
    if a.shape[axis] == target:
        return a
    widths = [(0, 0)] * a.ndim
    widths[axis] = (0, target - a.shape[axis])
    return jnp.pad(a, widths)


def _dense_layer_kernel(x_ref, g1_ref, b1_ref, w1_ref, g2_ref, b2_ref,
                        w2_ref, mask_ref, out_ref, ypad_ref,
                        *, M, W, K1, G, WOFF, eps):
    inv_m = 1.0 / M
    x = x_ref[...]                                      # (M, Cp)

    # ---- BN1 (training-mode batch stats, fused sum/sumsq pass) + ReLU ----------
    s1 = jnp.sum(x, axis=0, keepdims=True)
    s2 = jnp.sum(x * x, axis=0, keepdims=True)
    mean1 = s1 * inv_m
    var1 = jnp.maximum(s2 * inv_m - mean1 * mean1, 0.0)
    h = (x - mean1) * jax.lax.rsqrt(var1 + eps) * g1_ref[...] + b1_ref[...]
    h = jnp.maximum(h, 0.0)

    # ---- conv1: 1x1 conv == (M, Cp) @ (Cp, K1) ----------------------------------
    a = jnp.dot(h, w1_ref[...], preferred_element_type=jnp.float32)

    # ---- BN2 + ReLU -------------------------------------------------------------
    t1 = jnp.sum(a, axis=0, keepdims=True)
    t2 = jnp.sum(a * a, axis=0, keepdims=True)
    mean2 = t1 * inv_m
    var2 = jnp.maximum(t2 * inv_m - mean2 * mean2, 0.0)
    y = (a - mean2) * jax.lax.rsqrt(var2 + eps) * g2_ref[...] + b2_ref[...]
    y = jnp.maximum(y, 0.0)                             # (M, K1)

    # ---- conv2: 3x3, stride 1, pad 1, no bias -----------------------------------
    # Stage y in a zero-bordered scratch; tap (kh, kw) is a row shift of
    # s = (kh-1)*W + (kw-1) in the flat NHWC layout, masked at the H/W borders.
    ypad_ref[...] = jnp.zeros(ypad_ref.shape, ypad_ref.dtype)
    ypad_ref[WOFF:WOFF + M, :] = y

    acc = jnp.zeros((M, G), jnp.float32)
    for t in range(9):                                  # statically unrolled
        dh, dw = t // 3 - 1, t % 3 - 1
        s = dh * W + dw
        tap = ypad_ref[WOFF + s:WOFF + s + M, :]        # (M, K1) shifted rows
        tap = tap * mask_ref[t]                         # zero out-of-image taps
        acc = acc + jnp.dot(tap, w2_ref[t * K1:(t + 1) * K1, :],
                            preferred_element_type=jnp.float32)
    out_ref[...] = acc


def dense_layer_forward(x_nchw, params, *, drop_rate=0.0, eps=1e-5):
    """Forward pass of _DenseLayer. x_nchw: (N, C, H, W) float32."""
    N, C, H, W = x_nchw.shape
    K1 = params["conv1_w"].shape[0]      # bn_size * growth_rate
    G = params["conv2_w"].shape[0]       # growth_rate
    M = N * H * W

    # lane-align both contraction dims (zero padding is exact for matmul & BN)
    Cp = _round_up(C, 128)
    K1p = _round_up(K1, 128)

    # NCHW -> flat NHWC rows (M, Cp)
    x = jnp.transpose(x_nchw, (0, 2, 3, 1)).reshape(M, C).astype(jnp.float32)
    x = _pad_axis(x, 1, Cp)

    g1 = _pad_axis(params["norm1_gamma"].reshape(1, C).astype(jnp.float32), 1, Cp)
    b1 = _pad_axis(params["norm1_beta"].reshape(1, C).astype(jnp.float32), 1, Cp)
    g2 = _pad_axis(params["norm2_gamma"].reshape(1, K1).astype(jnp.float32), 1, K1p)
    b2 = _pad_axis(params["norm2_beta"].reshape(1, K1).astype(jnp.float32), 1, K1p)

    # conv1 weight (K1, C, 1, 1) -> (Cp, K1p)
    w1 = params["conv1_w"].reshape(K1, C).T.astype(jnp.float32)
    w1 = _pad_axis(_pad_axis(w1, 0, Cp), 1, K1p)

    # conv2 weight (G, K1, 3, 3) -> 9 stacked (K1p, G) tap blocks -> (9*K1p, G)
    w2 = jnp.transpose(params["conv2_w"].astype(jnp.float32), (2, 3, 1, 0))  # (3,3,K1,G)
    w2 = _pad_axis(w2.reshape(9, K1, G), 1, K1p).reshape(9 * K1p, G)

    # host-precomputed per-tap boundary masks (9, M, 1)
    rr = np.arange(M)
    hh = (rr // W) % H
    ww = rr % W
    mask_np = np.zeros((9, M, 1), np.float32)
    for t in range(9):
        dh, dw = t // 3 - 1, t % 3 - 1
        ok = (hh + dh >= 0) & (hh + dh < H) & (ww + dw >= 0) & (ww + dw < W)
        mask_np[t, :, 0] = ok.astype(np.float32)
    masks = jnp.asarray(mask_np)

    WOFF = _round_up(W + 1, 8)               # sublane-aligned scratch write offset
    P = _round_up(M + 2 * WOFF, 8)           # scratch rows (zero border both sides)

    kernel = functools.partial(_dense_layer_kernel, M=M, W=W, K1=K1p, G=G,
                               WOFF=WOFF, eps=eps)
    vmem = pl.BlockSpec(memory_space=pltpu.MemorySpace.VMEM)
    out_flat = pl.pallas_call(
        kernel,
        out_shape=jax.ShapeDtypeStruct((M, G), jnp.float32),
        in_specs=[vmem] * 8,
        out_specs=vmem,
        scratch_shapes=[pltpu.VMEM((P, K1p), jnp.float32)],
    )(x, g1, b1, w1, g2, b2, w2, masks)

    out = out_flat.reshape(N, H, W, G).transpose(0, 3, 1, 2)   # back to NCHW

    if drop_rate > 0.0:
        # TODO(synk): training-mode dropout (drop_rate > 0) is not implemented
        # in-kernel; the eval-mode forward (identity) is returned here.
        pass
    return out


# ----------------------------- pure-JAX reference --------------------------------
def _bn_train(x, gamma, beta, eps):
    mean = jnp.mean(x, axis=(0, 2, 3), keepdims=True)
    var = jnp.mean((x - mean) ** 2, axis=(0, 2, 3), keepdims=True)
    return ((x - mean) / jnp.sqrt(var + eps)) * gamma.reshape(1, -1, 1, 1) \
        + beta.reshape(1, -1, 1, 1)


def _reference(x, params, eps=1e-5):
    h = jax.nn.relu(_bn_train(x, params["norm1_gamma"], params["norm1_beta"], eps))
    h = jax.lax.conv_general_dilated(h, params["conv1_w"], (1, 1), "VALID",
                                     dimension_numbers=("NCHW", "OIHW", "NCHW"))
    h = jax.nn.relu(_bn_train(h, params["norm2_gamma"], params["norm2_beta"], eps))
    h = jax.lax.conv_general_dilated(h, params["conv2_w"], (1, 1),
                                     [(1, 1), (1, 1)],
                                     dimension_numbers=("NCHW", "OIHW", "NCHW"))
    return h


def init_params(key, num_input_features, growth_rate, bn_size):
    K1 = bn_size * growth_rate
    ks = jax.random.split(key, 6)
    return {
        "norm1_gamma": 1.0 + 0.1 * jax.random.normal(ks[0], (num_input_features,), jnp.float32),
        "norm1_beta": 0.1 * jax.random.normal(ks[1], (num_input_features,), jnp.float32),
        "conv1_w": 0.05 * jax.random.normal(ks[2], (K1, num_input_features, 1, 1), jnp.float32),
        "norm2_gamma": 1.0 + 0.1 * jax.random.normal(ks[3], (K1,), jnp.float32),
        "norm2_beta": 0.1 * jax.random.normal(ks[4], (K1,), jnp.float32),
        "conv2_w": 0.05 * jax.random.normal(ks[5], (growth_rate, K1, 3, 3), jnp.float32),
    }


if __name__ == "__main__":
    key = jax.random.PRNGKey(0)
    kx, kp = jax.random.split(key)

    # DenseNet-style small shapes: batch=2, 64 input features, 8x8 spatial,
    # growth_rate=32, bn_size=4 (bottleneck width 128), drop_rate=0.
    N, C, H, W = 2, 64, 8, 8
    growth_rate, bn_size = 32, 4

    x = jax.random.normal(kx, (N, C, H, W), jnp.float32)
    params = init_params(kp, C, growth_rate, bn_size)

    out = dense_layer_forward(x, params, drop_rate=0.0)
    out = jax.block_until_ready(out)

    assert out.shape == (N, growth_rate, H, W), out.shape
    assert bool(jnp.all(jnp.isfinite(out)))

    ref = _reference(x, params)
    assert bool(jnp.allclose(out, ref, atol=3e-2, rtol=3e-2)), \
        float(jnp.max(jnp.abs(out - ref)))

    print("KERNEL_OK")
</pallas_src>

<mosaic_0001>
module attributes {stable_mosaic.version = 11 : i64} {
  func.func @_dense_layer_kernel(%arg0: memref<128x128xf32, #tpu.memory_space<vmem>>, %arg1: memref<1x128xf32, #tpu.memory_space<vmem>>, %arg2: memref<1x128xf32, #tpu.memory_space<vmem>>, %arg3: memref<128x128xf32, #tpu.memory_space<vmem>>, %arg4: memref<1x128xf32, #tpu.memory_space<vmem>>, %arg5: memref<1x128xf32, #tpu.memory_space<vmem>>, %arg6: memref<1152x32xf32, #tpu.memory_space<vmem>>, %arg7: memref<9x128x1xf32, #tpu.memory_space<vmem>>, %arg8: memref<128x32xf32, #tpu.memory_space<vmem>>, %arg9: memref<160x128xf32, #tpu.memory_space<vmem>>) attributes {dimension_semantics = [], scalar_prefetch = 0 : i64, scratch_operands = 1 : i64, tpu.core_type = #tpu.core_type<tc>} {
    %c0 = arith.constant 0 : index
    %c0_0 = arith.constant 0 : index
    %0 = vector.load %arg0[%c0, %c0_0] : memref<128x128xf32, #tpu.memory_space<vmem>>, vector<128x128xf32>
    %cst = arith.constant dense<0.000000e+00> : vector<128xf32>
    %1 = vector.multi_reduction <add>, %0, %cst [0] : vector<128x128xf32> to vector<128xf32>
    %2 = vector.shape_cast %1 : vector<128xf32> to vector<1x128xf32>
    %3 = arith.mulf %0, %0 : vector<128x128xf32>
    %cst_1 = arith.constant dense<0.000000e+00> : vector<128xf32>
    %4 = vector.multi_reduction <add>, %3, %cst_1 [0] : vector<128x128xf32> to vector<128xf32>
    %5 = vector.shape_cast %4 : vector<128xf32> to vector<1x128xf32>
    %cst_2 = arith.constant 7.812500e-03 : f32
    %6 = vector.broadcast %cst_2 : f32 to vector<1x128xf32>
    %7 = arith.mulf %2, %6 : vector<1x128xf32>
    %cst_3 = arith.constant 7.812500e-03 : f32
    %8 = vector.broadcast %cst_3 : f32 to vector<1x128xf32>
    %9 = arith.mulf %5, %8 : vector<1x128xf32>
    %10 = arith.mulf %7, %7 : vector<1x128xf32>
    %11 = arith.subf %9, %10 : vector<1x128xf32>
    %cst_4 = arith.constant 0.000000e+00 : f32
    %12 = vector.broadcast %cst_4 : f32 to vector<1x128xf32>
    %13 = arith.maximumf %11, %12 : vector<1x128xf32>
    %14 = vector.broadcast %7 : vector<1x128xf32> to vector<128x128xf32>
    %15 = arith.subf %0, %14 : vector<128x128xf32>
    %cst_5 = arith.constant 9.99999974E-6 : f32
    %16 = vector.broadcast %cst_5 : f32 to vector<1x128xf32>
    %17 = arith.addf %13, %16 : vector<1x128xf32>
    %18 = math.rsqrt %17 : vector<1x128xf32>
    %19 = vector.broadcast %18 : vector<1x128xf32> to vector<128x128xf32>
    %20 = arith.mulf %15, %19 : vector<128x128xf32>
    %c0_6 = arith.constant 0 : index
    %c0_7 = arith.constant 0 : index
    %21 = vector.load %arg1[%c0_6, %c0_7] : memref<1x128xf32, #tpu.memory_space<vmem>>, vector<1x128xf32>
    %22 = vector.broadcast %21 : vector<1x128xf32> to vector<128x128xf32>
    %23 = arith.mulf %20, %22 : vector<128x128xf32>
    %c0_8 = arith.constant 0 : index
    %c0_9 = arith.constant 0 : index
    %24 = vector.load %arg2[%c0_8, %c0_9] : memref<1x128xf32, #tpu.memory_space<vmem>>, vector<1x128xf32>
    %25 = vector.broadcast %24 : vector<1x128xf32> to vector<128x128xf32>
    %26 = arith.addf %23, %25 : vector<128x128xf32>
    %cst_10 = arith.constant 0.000000e+00 : f32
    %27 = vector.broadcast %cst_10 : f32 to vector<128x128xf32>
    %28 = arith.maximumf %26, %27 : vector<128x128xf32>
    %c0_11 = arith.constant 0 : index
    %c0_12 = arith.constant 0 : index
    %29 = vector.load %arg3[%c0_11, %c0_12] : memref<128x128xf32, #tpu.memory_space<vmem>>, vector<128x128xf32>
    %cst_13 = arith.constant dense<0.000000e+00> : vector<128x128xf32>
    %30 = tpu.matmul %28, %29, %cst_13 {dimension_numbers = #tpu.dot_dimension_numbers<[1], [0], [0], [1], [0, 0, 1, 1], [], []>} : vector<128x128xf32>, vector<128x128xf32>, vector<128x128xf32> -> vector<128x128xf32>
    %cst_14 = arith.constant dense<0.000000e+00> : vector<128xf32>
    %31 = vector.multi_reduction <add>, %30, %cst_14 [0] : vector<128x128xf32> to vector<128xf32>
    %32 = vector.shape_cast %31 : vector<128xf32> to vector<1x128xf32>
    %33 = arith.mulf %30, %30 : vector<128x128xf32>
    %cst_15 = arith.constant dense<0.000000e+00> : vector<128xf32>
    %34 = vector.multi_reduction <add>, %33, %cst_15 [0] : vector<128x128xf32> to vector<128xf32>
    %35 = vector.shape_cast %34 : vector<128xf32> to vector<1x128xf32>
    %cst_16 = arith.constant 7.812500e-03 : f32
    %36 = vector.broadcast %cst_16 : f32 to vector<1x128xf32>
    %37 = arith.mulf %32, %36 : vector<1x128xf32>
    %cst_17 = arith.constant 7.812500e-03 : f32
    %38 = vector.broadcast %cst_17 : f32 to vector<1x128xf32>
    %39 = arith.mulf %35, %38 : vector<1x128xf32>
    %40 = arith.mulf %37, %37 : vector<1x128xf32>
    %41 = arith.subf %39, %40 : vector<1x128xf32>
    %cst_18 = arith.constant 0.000000e+00 : f32
    %42 = vector.broadcast %cst_18 : f32 to vector<1x128xf32>
    %43 = arith.maximumf %41, %42 : vector<1x128xf32>
    %44 = vector.broadcast %37 : vector<1x128xf32> to vector<128x128xf32>
    %45 = arith.subf %30, %44 : vector<128x128xf32>
    %cst_19 = arith.constant 9.99999974E-6 : f32
    %46 = vector.broadcast %cst_19 : f32 to vector<1x128xf32>
    %47 = arith.addf %43, %46 : vector<1x128xf32>
    %48 = math.rsqrt %47 : vector<1x128xf32>
    %49 = vector.broadcast %48 : vector<1x128xf32> to vector<128x128xf32>
    %50 = arith.mulf %45, %49 : vector<128x128xf32>
    %c0_20 = arith.constant 0 : index
    %c0_21 = arith.constant 0 : index
    %51 = vector.load %arg4[%c0_20, %c0_21] : memref<1x128xf32, #tpu.memory_space<vmem>>, vector<1x128xf32>
    %52 = vector.broadcast %51 : vector<1x128xf32> to vector<128x128xf32>
    %53 = arith.mulf %50, %52 : vector<128x128xf32>
    %c0_22 = arith.constant 0 : index
    %c0_23 = arith.constant 0 : index
    %54 = vector.load %arg5[%c0_22, %c0_23] : memref<1x128xf32, #tpu.memory_space<vmem>>, vector<1x128xf32>
    %55 = vector.broadcast %54 : vector<1x128xf32> to vector<128x128xf32>
    %56 = arith.addf %53, %55 : vector<128x128xf32>
    %cst_24 = arith.constant 0.000000e+00 : f32
    %57 = vector.broadcast %cst_24 : f32 to vector<128x128xf32>
    %58 = arith.maximumf %56, %57 : vector<128x128xf32>
    %cst_25 = arith.constant 0.000000e+00 : f32
    %59 = vector.broadcast %cst_25 : f32 to vector<160x128xf32>
    %c0_26 = arith.constant 0 : index
    %c0_27 = arith.constant 0 : index
    %60 = vector.load %arg9[%c0_26, %c0_27] : memref<160x128xf32, #tpu.memory_space<vmem>>, vector<160x128xf32>
    tpu.vector_store %arg9[%c0_26, %c0_27], %59 {strides = array<i32>} : memref<160x128xf32, #tpu.memory_space<vmem>>, vector<160x128xf32>,
    %c16 = arith.constant 16 : index
    %c0_28 = arith.constant 0 : index
    %61 = vector.load %arg9[%c16, %c0_28] : memref<160x128xf32, #tpu.memory_space<vmem>>, vector<128x128xf32>
    tpu.vector_store %arg9[%c16, %c0_28], %58 {strides = array<i32>} : memref<160x128xf32, #tpu.memory_space<vmem>>, vector<128x128xf32>,
    %cst_29 = arith.constant 0.000000e+00 : f32
    %62 = vector.broadcast %cst_29 : f32 to vector<128x32xf32>
    %c7 = arith.constant 7 : index
    %c0_30 = arith.constant 0 : index
    %63 = vector.load %arg9[%c7, %c0_30] : memref<160x128xf32, #tpu.memory_space<vmem>>, vector<128x128xf32>
    %c0_31 = arith.constant 0 : index
    %c0_32 = arith.constant 0 : index
    %c0_33 = arith.constant 0 : index
    %64 = vector.load %arg7[%c0_31, %c0_32, %c0_33] : memref<9x128x1xf32, #tpu.memory_space<vmem>>, vector<1x128x1xf32>
    %65 = vector.shape_cast %64 : vector<1x128x1xf32> to vector<128x1xf32>
    %66 = vector.broadcast %65 : vector<128x1xf32> to vector<128x128xf32>
    %67 = arith.mulf %63, %66 : vector<128x128xf32>
    %c0_34 = arith.constant 0 : index
    %c0_35 = arith.constant 0 : index
    %68 = vector.load %arg6[%c0_34, %c0_35] : memref<1152x32xf32, #tpu.memory_space<vmem>>, vector<128x32xf32>
    %cst_36 = arith.constant dense<0.000000e+00> : vector<128x32xf32>
    %69 = tpu.matmul %67, %68, %cst_36 {dimension_numbers = #tpu.dot_dimension_numbers<[1], [0], [0], [1], [0, 0, 1, 1], [], []>} : vector<128x128xf32>, vector<128x32xf32>, vector<128x32xf32> -> vector<128x32xf32>
    %70 = arith.addf %62, %69 : vector<128x32xf32>
    %c8 = arith.constant 8 : index
    %c0_37 = arith.constant 0 : index
    %71 = vector.load %arg9[%c8, %c0_37] : memref<160x128xf32, #tpu.memory_space<vmem>>, vector<128x128xf32>
    %c1 = arith.constant 1 : index
    %c0_38 = arith.constant 0 : index
    %c0_39 = arith.constant 0 : index
    %72 = vector.load %arg7[%c1, %c0_38, %c0_39] : memref<9x128x1xf32, #tpu.memory_space<vmem>>, vector<1x128x1xf32>
    %73 = vector.shape_cast %72 : vector<1x128x1xf32> to vector<128x1xf32>
    %74 = vector.broadcast %73 : vector<128x1xf32> to vector<128x128xf32>
    %75 = arith.mulf %71, %74 : vector<128x128xf32>
    %c128 = arith.constant 128 : index
    %c0_40 = arith.constant 0 : index
    %76 = vector.load %arg6[%c128, %c0_40] : memref<1152x32xf32, #tpu.memory_space<vmem>>, vector<128x32xf32>
    %cst_41 = arith.constant dense<0.000000e+00> : vector<128x32xf32>
    %77 = tpu.matmul %75, %76, %cst_41 {dimension_numbers = #tpu.dot_dimension_numbers<[1], [0], [0], [1], [0, 0, 1, 1], [], []>} : vector<128x128xf32>, vector<128x32xf32>, vector<128x32xf32> -> vector<128x32xf32>
    %78 = arith.addf %70, %77 : vector<128x32xf32>
    %c9 = arith.constant 9 : index
    %c0_42 = arith.constant 0 : index
    %79 = vector.load %arg9[%c9, %c0_42] : memref<160x128xf32, #tpu.memory_space<vmem>>, vector<128x128xf32>
    %c2 = arith.constant 2 : index
    %c0_43 = arith.constant 0 : index
    %c0_44 = arith.constant 0 : index
    %80 = vector.load %arg7[%c2, %c0_43, %c0_44] : memref<9x128x1xf32, #tpu.memory_space<vmem>>, vector<1x128x1xf32>
    %81 = vector.shape_cast %80 : vector<1x128x1xf32> to vector<128x1xf32>
    %82 = vector.broadcast %81 : vector<128x1xf32> to vector<128x128xf32>
    %83 = arith.mulf %79, %82 : vector<128x128xf32>
    %c256 = arith.constant 256 : index
    %c0_45 = arith.constant 0 : index
    %84 = vector.load %arg6[%c256, %c0_45] : memref<1152x32xf32, #tpu.memory_space<vmem>>, vector<128x32xf32>
    %cst_46 = arith.constant dense<0.000000e+00> : vector<128x32xf32>
    %85 = tpu.matmul %83, %84, %cst_46 {dimension_numbers = #tpu.dot_dimension_numbers<[1], [0], [0], [1], [0, 0, 1, 1], [], []>} : vector<128x128xf32>, vector<128x32xf32>, vector<128x32xf32> -> vector<128x32xf32>
    %86 = arith.addf %78, %85 : vector<128x32xf32>
    %c15 = arith.constant 15 : index
    %c0_47 = arith.constant 0 : index
    %87 = vector.load %arg9[%c15, %c0_47] : memref<160x128xf32, #tpu.memory_space<vmem>>, vector<128x128xf32>
    %c3 = arith.constant 3 : index
    %c0_48 = arith.constant 0 : index
    %c0_49 = arith.constant 0 : index
    %88 = vector.load %arg7[%c3, %c0_48, %c0_49] : memref<9x128x1xf32, #tpu.memory_space<vmem>>, vector<1x128x1xf32>
    %89 = vector.shape_cast %88 : vector<1x128x1xf32> to vector<128x1xf32>
    %90 = vector.broadcast %89 : vector<128x1xf32> to vector<128x128xf32>
    %91 = arith.mulf %87, %90 : vector<128x128xf32>
    %c384 = arith.constant 384 : index
    %c0_50 = arith.constant 0 : index
    %92 = vector.load %arg6[%c384, %c0_50] : memref<1152x32xf32, #tpu.memory_space<vmem>>, vector<128x32xf32>
    %cst_51 = arith.constant dense<0.000000e+00> : vector<128x32xf32>
    %93 = tpu.matmul %91, %92, %cst_51 {dimension_numbers = #tpu.dot_dimension_numbers<[1], [0], [0], [1], [0, 0, 1, 1], [], []>} : vector<128x128xf32>, vector<128x32xf32>, vector<128x32xf32> -> vector<128x32xf32>
    %94 = arith.addf %86, %93 : vector<128x32xf32>
    %c16_52 = arith.constant 16 : index
    %c0_53 = arith.constant 0 : index
    %95 = vector.load %arg9[%c16_52, %c0_53] : memref<160x128xf32, #tpu.memory_space<vmem>>, vector<128x128xf32>
    %c4 = arith.constant 4 : index
    %c0_54 = arith.constant 0 : index
    %c0_55 = arith.constant 0 : index
    %96 = vector.load %arg7[%c4, %c0_54, %c0_55] : memref<9x128x1xf32, #tpu.memory_space<vmem>>, vector<1x128x1xf32>
    %97 = vector.shape_cast %96 : vector<1x128x1xf32> to vector<128x1xf32>
    %98 = vector.broadcast %97 : vector<128x1xf32> to vector<128x128xf32>
    %99 = arith.mulf %95, %98 : vector<128x128xf32>
    %c512 = arith.constant 512 : index
    %c0_56 = arith.constant 0 : index
    %100 = vector.load %arg6[%c512, %c0_56] : memref<1152x32xf32, #tpu.memory_space<vmem>>, vector<128x32xf32>
    %cst_57 = arith.constant dense<0.000000e+00> : vector<128x32xf32>
    %101 = tpu.matmul %99, %100, %cst_57 {dimension_numbers = #tpu.dot_dimension_numbers<[1], [0], [0], [1], [0, 0, 1, 1], [], []>} : vector<128x128xf32>, vector<128x32xf32>, vector<128x32xf32> -> vector<128x32xf32>
    %102 = arith.addf %94, %101 : vector<128x32xf32>
    %c17 = arith.constant 17 : index
    %c0_58 = arith.constant 0 : index
    %103 = vector.load %arg9[%c17, %c0_58] : memref<160x128xf32, #tpu.memory_space<vmem>>, vector<128x128xf32>
    %c5 = arith.constant 5 : index
    %c0_59 = arith.constant 0 : index
    %c0_60 = arith.constant 0 : index
    %104 = vector.load %arg7[%c5, %c0_59, %c0_60] : memref<9x128x1xf32, #tpu.memory_space<vmem>>, vector<1x128x1xf32>
    %105 = vector.shape_cast %104 : vector<1x128x1xf32> to vector<128x1xf32>
    %106 = vector.broadcast %105 : vector<128x1xf32> to vector<128x128xf32>
    %107 = arith.mulf %103, %106 : vector<128x128xf32>
    %c640 = arith.constant 640 : index
    %c0_61 = arith.constant 0 : index
    %108 = vector.load %arg6[%c640, %c0_61] : memref<1152x32xf32, #tpu.memory_space<vmem>>, vector<128x32xf32>
    %cst_62 = arith.constant dense<0.000000e+00> : vector<128x32xf32>
    %109 = tpu.matmul %107, %108, %cst_62 {dimension_numbers = #tpu.dot_dimension_numbers<[1], [0], [0], [1], [0, 0, 1, 1], [], []>} : vector<128x128xf32>, vector<128x32xf32>, vector<128x32xf32> -> vector<128x32xf32>
    %110 = arith.addf %102, %109 : vector<128x32xf32>
    %c23 = arith.constant 23 : index
    %c0_63 = arith.constant 0 : index
    %111 = vector.load %arg9[%c23, %c0_63] : memref<160x128xf32, #tpu.memory_space<vmem>>, vector<128x128xf32>
    %c6 = arith.constant 6 : index
    %c0_64 = arith.constant 0 : index
    %c0_65 = arith.constant 0 : index
    %112 = vector.load %arg7[%c6, %c0_64, %c0_65] : memref<9x128x1xf32, #tpu.memory_space<vmem>>, vector<1x128x1xf32>
    %113 = vector.shape_cast %112 : vector<1x128x1xf32> to vector<128x1xf32>
    %114 = vector.broadcast %113 : vector<128x1xf32> to vector<128x128xf32>
    %115 = arith.mulf %111, %114 : vector<128x128xf32>
    %c768 = arith.constant 768 : index
    %c0_66 = arith.constant 0 : index
    %116 = vector.load %arg6[%c768, %c0_66] : memref<1152x32xf32, #tpu.memory_space<vmem>>, vector<128x32xf32>
    %cst_67 = arith.constant dense<0.000000e+00> : vector<128x32xf32>
    %117 = tpu.matmul %115, %116, %cst_67 {dimension_numbers = #tpu.dot_dimension_numbers<[1], [0], [0], [1], [0, 0, 1, 1], [], []>} : vector<128x128xf32>, vector<128x32xf32>, vector<128x32xf32> -> vector<128x32xf32>
    %118 = arith.addf %110, %117 : vector<128x32xf32>
    %c24 = arith.constant 24 : index
    %c0_68 = arith.constant 0 : index
    %119 = vector.load %arg9[%c24, %c0_68] : memref<160x128xf32, #tpu.memory_space<vmem>>, vector<128x128xf32>
    %c7_69 = arith.constant 7 : index
    %c0_70 = arith.constant 0 : index
    %c0_71 = arith.constant 0 : index
    %120 = vector.load %arg7[%c7_69, %c0_70, %c0_71] : memref<9x128x1xf32, #tpu.memory_space<vmem>>, vector<1x128x1xf32>
    %121 = vector.shape_cast %120 : vector<1x128x1xf32> to vector<128x1xf32>
    %122 = vector.broadcast %121 : vector<128x1xf32> to vector<128x128xf32>
    %123 = arith.mulf %119, %122 : vector<128x128xf32>
    %c896 = arith.constant 896 : index
    %c0_72 = arith.constant 0 : index
    %124 = vector.load %arg6[%c896, %c0_72] : memref<1152x32xf32, #tpu.memory_space<vmem>>, vector<128x32xf32>
    %cst_73 = arith.constant dense<0.000000e+00> : vector<128x32xf32>
    %125 = tpu.matmul %123, %124, %cst_73 {dimension_numbers = #tpu.dot_dimension_numbers<[1], [0], [0], [1], [0, 0, 1, 1], [], []>} : vector<128x128xf32>, vector<128x32xf32>, vector<128x32xf32> -> vector<128x32xf32>
    %126 = arith.addf %118, %125 : vector<128x32xf32>
    %c25 = arith.constant 25 : index
    %c0_74 = arith.constant 0 : index
    %127 = vector.load %arg9[%c25, %c0_74] : memref<160x128xf32, #tpu.memory_space<vmem>>, vector<128x128xf32>
    %c8_75 = arith.constant 8 : index
    %c0_76 = arith.constant 0 : index
    %c0_77 = arith.constant 0 : index
    %128 = vector.load %arg7[%c8_75, %c0_76, %c0_77] : memref<9x128x1xf32, #tpu.memory_space<vmem>>, vector<1x128x1xf32>
    %129 = vector.shape_cast %128 : vector<1x128x1xf32> to vector<128x1xf32>
    %130 = vector.broadcast %129 : vector<128x1xf32> to vector<128x128xf32>
    %131 = arith.mulf %127, %130 : vector<128x128xf32>
    %c1024 = arith.constant 1024 : index
    %c0_78 = arith.constant 0 : index
    %132 = vector.load %arg6[%c1024, %c0_78] : memref<1152x32xf32, #tpu.memory_space<vmem>>, vector<128x32xf32>
    %cst_79 = arith.constant dense<0.000000e+00> : vector<128x32xf32>
    %133 = tpu.matmul %131, %132, %cst_79 {dimension_numbers = #tpu.dot_dimension_numbers<[1], [0], [0], [1], [0, 0, 1, 1], [], []>} : vector<128x128xf32>, vector<128x32xf32>, vector<128x32xf32> -> vector<128x32xf32>
    %134 = arith.addf %126, %133 : vector<128x32xf32>
    %c0_80 = arith.constant 0 : index
    %c0_81 = arith.constant 0 : index
    %135 = vector.load %arg8[%c0_80, %c0_81] : memref<128x32xf32, #tpu.memory_space<vmem>>, vector<128x32xf32>
    tpu.vector_store %arg8[%c0_80, %c0_81], %134 {strides = array<i32>} : memref<128x32xf32, #tpu.memory_space<vmem>>, vector<128x32xf32>,
    return
  }
}

</mosaic_0001>

<bundles_post_ra>
// kernel: tpu_custom_call.1
= control target key start
LH: loop header
LB: loop body
LE: loop exit
PB: predicated region body
PF: predicated region fallthrough
CT: control target
= control target key end

     0   :  { %v4342_v0 = vmov 0   ;;  %v4343_v3 = vmov 0.0   ;;  %vm3281_vm0 = vcmask 261120   ;;  %s6593_s7 = inlined_call_operand.vmem [shape: f32[9,128,1], index: 7, kind: input, shape index: {}]   ;;  %s6594_s3 = inlined_call_operand.vmem [shape: f32[128,128], index: 3, kind: input, shape index: {}]   ;;  %s6595_s0 = inlined_call_operand.vmem [shape: f32[128,128], index: 0, kind: input, shape index: {}]   ;;  %s6596_s1 = inlined_call_operand.vmem [shape: f32[1,128], index: 1, kind: input, shape index: {}]   ;;  %s6597_s2 = inlined_call_operand.vmem [shape: f32[1,128], index: 2, kind: input, shape index: {}]   ;;  %s6598_s6 = inlined_call_operand.vmem [shape: f32[1152,32], index: 6, kind: input, shape index: {}]   ;;  %s6599_s4 = inlined_call_operand.vmem [shape: f32[1,128], index: 4, kind: input, shape index: {}]   ;;  %s6600_s5 = inlined_call_operand.vmem [shape: f32[1,128], index: 5, kind: input, shape index: {}]   ;;  %s6601_s8 = inlined_call_operand.vmem [shape: f32[128,32], index: 8, kind: output, shape index: {}]  }
   0x1   :  { %4317 = vset.pattern.permute.xlu1 %v4342_v0  ;;  %4316 = vset.pattern.permute.xlu0 %v4342_v0  ;;  %v578_v1 = vld [vmem:[%s6593_s7 + $0x10] sm:$0xff]  ;;  %v576_v2 = vld [vmem:[%s6593_s7] sm:$0xff]  ;;  %524 = vst [vmem:[#allocation2] sm:$0xff] %v4343_v3  ;;  %525 = vst [vmem:[#allocation2 + $0x8] sm:$0xff] %v4343_v3 }
   0x2   :  { %542 = vst [vmem:[#allocation2 + $0x90] sm:$0xff] %v4343_v3  ;;  %543 = vst [vmem:[#allocation2 + $0x98] sm:$0xff] %v4343_v3  ;;  %604 = vperm.xlu1 %4317, %v578_v1   ;;  %594 = vperm.xlu0 %4316, %v576_v2   ;;  %v579_v4 = vld [vmem:[%s6593_s7 + $0x18] sm:$0xff]  ;;  %v577_v5 = vld [vmem:[%s6593_s7 + $0x8] sm:$0xff] }
   0x3   :  { %v581_v6 = vld [vmem:[%s6593_s7 + $0x28] sm:$0xff]  ;;  %v580_v7 = vld [vmem:[%s6593_s7 + $0x20] sm:$0xff]  ;;  %v219_v8 = vld [vmem:[%s6594_s3 + $0x78] sm:$0xff] }
   0x4   :  { %3754 = vmatprep.subr.mxu0 %v219_v8  ;;  %v218_v9 = vld [vmem:[%s6594_s3 + $0x70] sm:$0xff]  ;;  %v583_v10 = vld [vmem:[%s6593_s7 + $0x38] sm:$0xff]  ;;  %v217_v12 = vld [vmem:[%s6594_s3 + $0x68] sm:$0xff] }
   0x5   :  { %v582_v11 = vld [vmem:[%s6593_s7 + $0x30] sm:$0xff]  ;;  %3755 = vmatpush3.msra.mxu0 %v219_v8  ;;  %v216_v13 = vld [vmem:[%s6594_s3 + $0x60] sm:$0xff]  ;;  %v585_v14 = vld [vmem:[%s6593_s7 + $0x48] sm:$0xff] }
   0x6   :  { %609 = vperm.xlu1 %4317, %v579_v4   ;;  %599 = vperm.xlu0 %4316, %v577_v5   ;;  %v584_v15 = vld [vmem:[%s6593_s7 + $0x40] sm:$0xff]  ;;  %v215_v16 = vld [vmem:[%s6594_s3 + $0x58] sm:$0xff]  ;;  %v586_v18 = vld [vmem:[%s6593_s7 + $0x50] sm:$0xff] }
   0x7   :  { %3756 = vmatprep.subr.mxu0 %v218_v9  ;;  %v587_v17 = vld [vmem:[%s6593_s7 + $0x58] sm:$0xff]  ;;  %v4443_v19 = vld [vmem:[%s6595_s0] sm:$0xff]  ;;  %v4448_v20 = vld [vmem:[%s6595_s0 + $0x8] sm:$0xff] }
   0x8   :  { %3757 = vmatpush3.msra.mxu0 %v218_v9  ;;  %v4453_v21 = vld [vmem:[%s6595_s0 + $0x10] sm:$0xff]  ;;  %v45_v23 = vadd.f32 %v4448_v20, %v4443_v19  ;;  %v4463_v24 = vld [vmem:[%s6595_s0 + $0x18] sm:$0xff]  ;;  %v66_v25 = vmul.f32 %v4443_v19, %v4443_v19  ;;  %v67_v26 = vmul.f32 %v4448_v20, %v4448_v20  ;;  %v213_v27 = vld [vmem:[%s6594_s3 + $0x48] sm:$0xff] }
   0x9   :  { %3758 = vmatprep.subr.mxu0 %v217_v12  ;;  %v214_v22 = vld [vmem:[%s6594_s3 + $0x50] sm:$0xff]  ;;  %v589_v29 = vld [vmem:[%s6593_s7 + $0x68] sm:$0xff]  ;;  %v588_v30 = vld [vmem:[%s6593_s7 + $0x60] sm:$0xff]  ;;  %v68_v32 = vmul.f32 %v4453_v21, %v4453_v21  ;;  %v69_v36 = vmul.f32 %v4463_v24, %v4463_v24 }
   0xa   :  { %619 = vperm.xlu1 %4317, %v581_v6   ;;  %614 = vperm.xlu0 %4316, %v580_v7   ;;  %v46_v28 = vadd.f32 %v45_v23, %v4453_v21  ;;  %v4482_v31 = vld [vmem:[%s6595_s0 + $0x20] sm:$0xff]  ;;  %v4493_v35 = vld [vmem:[%s6595_s0 + $0x28] sm:$0xff]  ;;  %v82_v37 = vadd.f32 %v67_v26, %v66_v25  ;;  %v591_v39 = vld [vmem:[%s6593_s7 + $0x78] sm:$0xff] }
   0xb   :  { %3759 = vmatpush3.msra.mxu0 %v217_v12  ;;  %v212_v34 = vld [vmem:[%s6594_s3 + $0x40] sm:$0xff]  ;;  %v590_v40 = vld [vmem:[%s6593_s7 + $0x70] sm:$0xff]  ;;  %v70_v42 = vmul.f32 %v4482_v31, %v4482_v31  ;;  %v211_v44 = vld [vmem:[%s6594_s3 + $0x38] sm:$0xff]  ;;  %v71_v47 = vmul.f32 %v4493_v35, %v4493_v35 }
   0xc   :  { %3760 = vmatprep.subr.mxu0 %v216_v13  ;;  %v47_v33 = vadd.f32 %v46_v28, %v4463_v24  ;;  %v4507_v41 = vld [vmem:[%s6595_s0 + $0x30] sm:$0xff]  ;;  %v83_v43 = vadd.f32 %v82_v37, %v68_v32  ;;  %v4518_v46 = vld [vmem:[%s6595_s0 + $0x38] sm:$0xff]  ;;  %v3307_v51 = vld [vmem:[%s6593_s7 + $0x88] sm:$0xff] }
   0xd   :  { %3761 = vmatpush3.msra.mxu0 %v216_v13  ;;  %v210_v49 = vld [vmem:[%s6594_s3 + $0x30] sm:$0xff]  ;;  %v3306_v52 = vld [vmem:[%s6593_s7 + $0x80] sm:$0xff]  ;;  %v72_v54 = vmul.f32 %v4507_v41, %v4507_v41  ;;  %v209_v57 = vld [vmem:[%s6594_s3 + $0x28] sm:$0xff]  ;;  %v73_v59 = vmul.f32 %v4518_v46, %v4518_v46 }
   0xe   :  { %629 = vperm.xlu1 %4317, %v583_v10   ;;  %624 = vperm.xlu0 %4316, %v582_v11   ;;  %v48_v38 = vadd.f32 %v47_v33, %v4482_v31  ;;  %v84_v48 = vadd.f32 %v83_v43, %v69_v36  ;;  %v4535_v53 = vld [vmem:[%s6595_s0 + $0x40] sm:$0xff]  ;;  %v4546_v58 = vld [vmem:[%s6595_s0 + $0x48] sm:$0xff]  ;;  %v3309_v62 = vld [vmem:[%s6593_s7 + $0x98] sm:$0xff] }
   0xf   :  { %3762 = vmatprep.subr.mxu0 %v215_v16  ;;  %v3308_v63 = vld [vmem:[%s6593_s7 + $0x90] sm:$0xff]  ;;  %v74_v1 = vmul.f32 %v4535_v53, %v4535_v53  ;;  %v208_v3 = vld [vmem:[%s6594_s3 + $0x20] sm:$0xff]  ;;  %v4571_v5 = vld [vmem:[%s6595_s0 + $0x58] sm:$0xff]  ;;  %v75_v6 = vmul.f32 %v4546_v58, %v4546_v58 }
  0x10   :  { %3763 = vmatpush3.msra.mxu0 %v215_v16  ;;  %v49_v45 = vadd.f32 %v48_v38, %v4493_v35  ;;  %v85_v55 = vadd.f32 %v84_v48, %v70_v42  ;;  %v4560_v0 = vld [vmem:[%s6595_s0 + $0x50] sm:$0xff]  ;;  %v207_v8 = vld [vmem:[%s6594_s3 + $0x18] sm:$0xff]  ;;  %v3311_v10 = vld [vmem:[%s6593_s7 + $0xa8] sm:$0xff] }
  0x11   :  { %3764 = vmatprep.subr.mxu0 %v214_v22  ;;  %v3310_v11 = vld [vmem:[%s6593_s7 + $0xa0] sm:$0xff]  ;;  %v76_v13 = vmul.f32 %v4560_v0, %v4560_v0  ;;  %v206_v16 = vld [vmem:[%s6594_s3 + $0x10] sm:$0xff]  ;;  %v3313_v25 = vld [vmem:[%s6593_s7 + $0xb8] sm:$0xff] }
  0x12   :  { %639 = vperm.xlu1 %4317, %v585_v14   ;;  %634 = vperm.xlu0 %4316, %v584_v15   ;;  %v50_v50 = vadd.f32 %v49_v45, %v4507_v41  ;;  %v86_v60 = vadd.f32 %v85_v55, %v71_v47  ;;  %v4588_v12 = vld [vmem:[%s6595_s0 + $0x60] sm:$0xff]  ;;  %v3312_v26 = vld [vmem:[%s6593_s7 + $0xb0] sm:$0xff]  ;;  %v4624_v33 = vld [vmem:[%s6595_s0 + $0x78] sm:$0xff] }
  0x13   :  { %3765 = vmatpush3.msra.mxu0 %v214_v22  ;;  %v78_v28 = vmul.f32 %v4588_v12, %v4588_v12  ;;  %v204_v37 = vld [vmem:[%s6594_s3] sm:$0xff]  ;;  %v81_v45 = vmul.f32 %v4624_v33, %v4624_v33 }
  0x14   :  { %3766 = vmatprep.subr.mxu0 %v213_v27  ;;  %v51_v56 = vadd.f32 %v50_v50, %v4518_v46  ;;  %v87_v2 = vadd.f32 %v86_v60, %v72_v54  ;;  %v3316_v50 = vld [vmem:[%s6593_s7 + $0xd0] sm:$0xff] }
  0x15   :  { %3767 = vmatpush3.msra.mxu0 %v213_v27  ;;  %v4613_v27 = vld [vmem:[%s6595_s0 + $0x70] sm:$0xff] }
  0x16   :  { %649 = vperm.xlu1 %4317, %v587_v17   ;;  %644 = vperm.xlu0 %4316, %v586_v18   ;;  %v52_v61 = vadd.f32 %v51_v56, %v4535_v53  ;;  %v88_v7 = vadd.f32 %v87_v2, %v73_v59  ;;  %v4599_v17 = vld [vmem:[%s6595_s0 + $0x68] sm:$0xff]  ;;  %v77_v18 = vmul.f32 %v4571_v5, %v4571_v5 }
  0x17   :  { %3768 = vmatprep.subr.mxu0 %v212_v34  ;;  %v80_v42 = vmul.f32 %v4613_v27, %v4613_v27  ;;  %v3319_v56 = vld [vmem:[%s6593_s7 + $0xe8] sm:$0xff] }
  0x18   :  { %3769 = vmatpush3.msra.mxu0 %v212_v34  ;;  %v53_v4 = vadd.f32 %v52_v61, %v4546_v58  ;;  %v89_v14 = vadd.f32 %v88_v7, %v74_v1  ;;  %v79_v34 = vmul.f32 %v4599_v17, %v4599_v17  ;;  %v3320_v1 = vld [vmem:[%s6593_s7 + $0xf0] sm:$0xff]  ;;  %v3323_v7 = vld [vmem:[%s6593_s7 + $0x108] sm:$0xff] }
  0x19   :  { %3770 = vmatprep.subr.mxu0 %v211_v44 }
  0x1a   :  { %659 = vperm.xlu1 %4317, %v589_v29   ;;  %654 = vperm.xlu0 %4316, %v588_v30   ;;  %v54_v9 = vadd.f32 %v53_v4, %v4560_v0  ;;  %v90_v22 = vadd.f32 %v89_v14, %v75_v6  ;;  %v205_v30 = vld [vmem:[%s6594_s3 + $0x8] sm:$0xff]  ;;  %v3324_v14 = vld [vmem:[%s6593_s7 + $0x110] sm:$0xff] }
  0x1b   :  { %3771 = vmatpush3.msra.mxu0 %v211_v44 }
  0x1c   :  { %3772 = vmatprep.subr.mxu0 %v210_v49  ;;  %v55_v15 = vadd.f32 %v54_v9, %v4571_v5  ;;  %v91_v29 = vadd.f32 %v90_v22, %v76_v13  ;;  %v3325_v13 = vld [vmem:[%s6593_s7 + $0x118] sm:$0xff]  ;;  %v3326_v22 = vld [vmem:[%s6593_s7 + $0x120] sm:$0xff] }
  0x1d   :  { %3773 = vmatpush3.msra.mxu0 %v210_v49  ;;  %v3317_v49 = vld [vmem:[%s6593_s7 + $0xd8] sm:$0xff] }
  0x1e   :  { %669 = vperm.xlu1 %4317, %v591_v39   ;;  %664 = vperm.xlu0 %4316, %v590_v40   ;;  %v56_v23 = vadd.f32 %v55_v15, %v4588_v12  ;;  %v92_v36 = vadd.f32 %v91_v29, %v77_v18  ;;  %v3315_v39 = vld [vmem:[%s6593_s7 + $0xc8] sm:$0xff]  ;;  %v3314_v40 = vld [vmem:[%s6593_s7 + $0xc0] sm:$0xff] }
  0x1f   :  { %3774 = vmatprep.subr.mxu0 %v209_v57  ;;  %v3327_v18 = vld [vmem:[%s6593_s7 + $0x128] sm:$0xff] }
  0x20   :  { %3775 = vmatpush3.msra.mxu0 %v209_v57  ;;  %v57_v32 = vadd.f32 %v56_v23, %v4599_v17  ;;  %v93_v43 = vadd.f32 %v92_v36, %v78_v28  ;;  %v3318_v57 = vld [vmem:[%s6593_s7 + $0xe0] sm:$0xff]  ;;  %v3328_v28 = vld [vmem:[%s6593_s7 + $0x130] sm:$0xff]  ;;  %v3331_v29 = vld [vmem:[%s6593_s7 + $0x148] sm:$0xff] }
  0x21   :  { %3776 = vmatprep.subr.mxu0 %v208_v3 }
  0x22   :  { %744 = vperm.xlu1 %4317, %v3307_v51   ;;  %739 = vperm.xlu0 %4316, %v3306_v52   ;;  %v58_v38 = vadd.f32 %v57_v32, %v4613_v27  ;;  %v94_v47 = vadd.f32 %v93_v43, %v79_v34  ;;  %v3333_v32 = vld [vmem:[%s6593_s7 + $0x158] sm:$0xff]  ;;  %v3332_v34 = vld [vmem:[%s6593_s7 + $0x150] sm:$0xff] }
  0x23   :  { %3777 = vmatpush3.msra.mxu0 %v208_v3 }
  0x24   :  { %3778 = vmatprep.subr.mxu0 %v207_v8  ;;  %v59_v44 = vadd.f32 %v58_v38, %v4624_v33  ;;  %v95_v51 = vadd.f32 %v94_v47, %v80_v42 }
  0x25   :  { %3779 = vmatpush3.msra.mxu0 %v207_v8  ;;  %v3322_v8 = vld [vmem:[%s6593_s7 + $0x100] sm:$0xff] }
  0x26   :  { %754 = vperm.xlu1 %4317, %v3309_v62   ;;  %749 = vperm.xlu0 %4316, %v3308_v63   ;;  %v60_v48 = vrot.slane %v59_v44, 4  ;;  %v96_v54 = vadd.f32 %v95_v51, %v81_v45  ;;  %v3321_v63 = vld [vmem:[%s6593_s7 + $0xf8] sm:$0xff]  ;;  %v4735_v45 = vld [vmem:[%s6597_s2] ss:$0 sm:$0xff] }
  0x27   :  { %3780 = vmatprep.subr.mxu0 %v206_v16 }
  0x28   :  { %3781 = vmatpush3.msra.mxu0 %v206_v16  ;;  %v61_v52 = vadd.f32 %v60_v48, %v59_v44  ;;  %v97_v59 = vrot.slane %v96_v54, 4 }
  0x29   :  { %3782 = vmatprep.subr.mxu0 %v205_v30 }
  0x2a   :  { %764 = vperm.xlu1 %4317, %v3311_v10   ;;  %759 = vperm.xlu0 %4316, %v3310_v11   ;;  %v62_v55 = vrot.slane %v61_v52, 2  ;;  %v98_v61 = vadd.f32 %v97_v59, %v96_v54 }
  0x2b   :  { %3783 = vmatpush3.msra.mxu0 %v205_v30  ;;  %v3330_v30 = vld [vmem:[%s6593_s7 + $0x140] sm:$0xff] }
  0x2c   :  { %3784 = vmatprep.subr.mxu0 %v204_v37  ;;  %v63_v60 = vadd.f32 %v62_v55, %v61_v52  ;;  %v99_v2 = vrot.slane %v98_v61, 2 }
  0x2d   :  { %3785 = vmatpush3.msra.mxu0 %v204_v37 }
  0x2e   :  { %774 = vperm.xlu1 %4317, %v3313_v25   ;;  %769 = vperm.xlu0 %4316, %v3312_v26   ;;  %v64_v62 = vrot.slane %v63_v60, 1  ;;  %v100_v4 = vadd.f32 %v99_v2, %v98_v61  ;;  %v3329_v26 = vld [vmem:[%s6593_s7 + $0x138] sm:$0xff] }
  0x30   :  { %v65_v3 = vadd.f32 %v64_v62, %v63_v60  ;;  %v101_v9 = vrot.slane %v100_v4, 1  ;;  %v3336_v60 = vld [vmem:[%s6593_s7 + $0x170] sm:$0xff] }
  0x32   :  { %784 = vperm.xlu1 %4317, %v3315_v39   ;;  %779 = vperm.xlu0 %4316, %v3314_v40   ;;  %v4661_v6 = vmul.f32 0.0078125, %v65_v3  ;;  %v102_v10 = vadd.f32 %v101_v9, %v100_v4 }
  0x34   :  { %v105_v11 = vmul.f32 %v4661_v6, %v4661_v6  ;;  %v104_v15 = vmul.f32 0.0078125, %v102_v10  ;;  %v108_v36 = vsub.f32 %v4443_v19, %v4661_v6  ;;  %v109_v37 = vsub.f32 %v4448_v20, %v4661_v6  ;;  %v3335_v20 = vld [vmem:[%s6593_s7 + $0x168] sm:$0xff] }
  0x35   :  { %v110_v38 = vsub.f32 %v4453_v21, %v4661_v6  ;;  %v111_v39 = vsub.f32 %v4463_v24, %v4661_v6  ;;  %v112_v40 = vsub.f32 %v4482_v31, %v4661_v6  ;;  %v113_v42 = vsub.f32 %v4493_v35, %v4661_v6  ;;  %v4723_v21 = vld [vmem:[%s6596_s1] ss:$0 sm:$0xff]  ;;  %v3339_v10 = vld [vmem:[%s6593_s7 + $0x188] sm:$0xff] }
  0x36   :  { %794 = vperm.xlu1 %4317, %v3317_v49   ;;  %789 = vperm.xlu0 %4316, %v3316_v50   ;;  %v106_v16 = vsub.f32 %v104_v15, %v105_v11  ;;  %v114_v19 = vsub.f32 %v4507_v41, %v4661_v6  ;;  %v3334_v24 = vld [vmem:[%s6593_s7 + $0x160] sm:$0xff]  ;;  %v115_v50 = vsub.f32 %v4518_v46, %v4661_v6 }
  0x37   :  { %v116_v59 = vsub.f32 %v4535_v53, %v4661_v6  ;;  %v117_v46 = vsub.f32 %v4546_v58, %v4661_v6  ;;  %v119_v11 = vsub.f32 %v4571_v5, %v4661_v6 }
  0x38   :  { %v107_v23 = vmax.f32 %v106_v16, 0.0 }
  0x3a   :  { %804 = vperm.xlu1 %4317, %v3319_v56   ;;  %799 = vperm.xlu0 %4316, %v3318_v57   ;;  %v124_v25 = vadd.f32 1e-05, %v107_v23  ;;  %v3337_v56 = vld [vmem:[%s6593_s7 + $0x178] sm:$0xff] }
  0x3c   :  { %4318 = vrsqrt.f32 %v124_v25 }
  0x3e   :  { %814 = vperm.xlu1 %4317, %v3321_v63   ;;  %809 = vperm.xlu0 %4316, %v3320_v1   ;;  %v118_v1 = vsub.f32 %v4560_v0, %v4661_v6 }
  0x42   :  { %1179 = vperm.xlu1 %4317, %v3323_v7   ;;  %1174 = vperm.xlu0 %4316, %v3322_v8  }
  0x46   :  { %1189 = vperm.xlu1 %4317, %v3325_v13   ;;  %1184 = vperm.xlu0 %4316, %v3324_v14   ;;  %v3338_v13 = vld [vmem:[%s6593_s7 + $0x180] sm:$0xff]  ;;  %v120_v14 = vsub.f32 %v4588_v12, %v4661_v6  ;;  %v3341_v12 = vld [vmem:[%s6593_s7 + $0x198] sm:$0xff] }
  0x49   :  { %v4718_v43 = vpop.eup %4318 }
  0x4a   :  { %1199 = vperm.xlu1 %4317, %v3327_v18   ;;  %1194 = vperm.xlu0 %4316, %v3326_v22   ;;  %v126_v31 = vmul.f32 %v4718_v43, %v108_v36  ;;  %v127_v35 = vmul.f32 %v4718_v43, %v109_v37  ;;  %v128_v41 = vmul.f32 %v4718_v43, %v110_v38 }
  0x4b   :  { %v129_v44 = vmul.f32 %v4718_v43, %v111_v39  ;;  %v130_v47 = vmul.f32 %v4718_v43, %v112_v40  ;;  %v131_v48 = vmul.f32 %v4718_v43, %v113_v42  ;;  %v132_v49 = vmul.f32 %v4718_v43, %v114_v19  ;;  %v3342_v19 = vld [vmem:[%s6593_s7 + $0x1a0] sm:$0xff] }
  0x4c   :  { %v149_v51 = vmul.f32 %v4723_v21, %v126_v31  ;;  %v150_v52 = vmul.f32 %v4723_v21, %v127_v35  ;;  %v151_v54 = vmul.f32 %v4723_v21, %v128_v41  ;;  %v133_v58 = vmul.f32 %v4718_v43, %v115_v50 }
  0x4d   :  { %v152_v55 = vmul.f32 %v4723_v21, %v129_v44  ;;  %v153_v57 = vmul.f32 %v4723_v21, %v130_v47  ;;  %v154_v53 = vmul.f32 %v4723_v21, %v131_v48  ;;  %v155_v3 = vmul.f32 %v4723_v21, %v132_v49  ;;  %v3344_v48 = vld [vmem:[%s6593_s7 + $0x1b0] sm:$0xff] }
  0x4e   :  { %1209 = vperm.xlu1 %4317, %v3329_v26   ;;  %1204 = vperm.xlu0 %4316, %v3328_v28   ;;  %v172_v61 = vadd.f32 %v4735_v45, %v149_v51  ;;  %v173_v62 = vadd.f32 %v4735_v45, %v150_v52  ;;  %v174_v63 = vadd.f32 %v4735_v45, %v151_v54 }
  0x4f   :  { %v175_v2 = vadd.f32 %v4735_v45, %v152_v55  ;;  %v176_v9 = vadd.f32 %v4735_v45, %v153_v57  ;;  %v134_v0 = vmul.f32 %v4718_v43, %v116_v59  ;;  %v177_v16 = vadd.f32 %v4735_v45, %v154_v53  ;;  %v3355_v57 = vld [vmem:[%s6593_s7 + $0x208] sm:$0xff]  ;;  %v3354_v59 = vld [vmem:[%s6593_s7 + $0x200] sm:$0xff] }
  0x50   :  { %v188_v4 = vmax.f32 %v172_v61, 0.0  ;;  %v189_v7 = vmax.f32 %v173_v62, 0.0  ;;  %v190_v8 = vmax.f32 %v174_v63, 0.0  ;;  %v156_v18 = vmul.f32 %v4723_v21, %v133_v58  ;;  %v3357_v63 = vld [vmem:[%s6593_s7 + $0x218] sm:$0xff]  ;;  %v3358_v58 = vld [vmem:[%s6593_s7 + $0x220] sm:$0xff] }
  0x51   :  { %v191_v15 = vmax.f32 %v175_v2, 0.0  ;;  %v135_v22 = vmul.f32 %v4718_v43, %v117_v46  ;;  %v192_v23 = vmax.f32 %v176_v9, 0.0  ;;  %v178_v5 = vadd.f32 %v4735_v45, %v155_v3  ;;  %v3359_v3 = vld [vmem:[%s6593_s7 + $0x228] sm:$0xff] }
  0x52   :  { %1219 = vperm.xlu1 %4317, %v3331_v29   ;;  %1214 = vperm.xlu0 %4316, %v3330_v30   ;;  %v157_v25 = vmul.f32 %v4723_v21, %v134_v0  ;;  %v136_v26 = vmul.f32 %v4718_v43, %v118_v1  ;;  %v121_v28 = vsub.f32 %v4599_v17, %v4661_v6  ;;  %v3340_v29 = vld [vmem:[%s6593_s7 + $0x190] sm:$0xff] }
  0x53   :  { %3786 = vmatprep.mubr.f32.mxu0 %v188_v4  ;;  %v122_v30 = vsub.f32 %v4613_v27, %v4661_v6  ;;  %v158_v36 = vmul.f32 %v4723_v21, %v135_v22  ;;  %v137_v37 = vmul.f32 %v4718_v43, %v119_v11  ;;  %v194_v38 = vmax.f32 %v178_v5, 0.0  ;;  %v3343_v27 = vld [vmem:[%s6593_s7 + $0x1a8] sm:$0xff]  ;;  %v3356_v1 = vld [vmem:[%s6593_s7 + $0x210] sm:$0xff]  ;;  %v3349_v5 = vld [vmem:[%s6593_s7 + $0x1d8] sm:$0xff] }
  0x54   :  { %3787 = vmatmul.mubr.f32.vlgmr.msra.gmra.mxu0 %v189_v7  ;;  %v180_v17 = vadd.f32 %v4735_v45, %v157_v25  ;;  %v159_v39 = vmul.f32 %v4723_v21, %v136_v26  ;;  %v138_v40 = vmul.f32 %v4718_v43, %v120_v14  ;;  %v123_v42 = vsub.f32 %v4624_v33, %v4661_v6  ;;  %v3345_v6 = vld [vmem:[%s6593_s7 + $0x1b8] sm:$0xff]  ;;  %v560_v7 = vld [vmem:[#allocation2 + $0x7] sm:$0xff] }
  0x55   :  { %3789 = vmatprep.mubr.f32.mxu0 %v190_v8  ;;  %v160_v31 = vmul.f32 %v4723_v21, %v137_v37  ;;  %v139_v35 = vmul.f32 %v4718_v43, %v121_v28  ;;  %v140_v33 = vmul.f32 %v4718_v43, %v122_v30  ;;  %v3347_v11 = vld [vmem:[%s6593_s7 + $0x1c8] sm:$0xff]  ;;  %v3365_v28 = vld [vmem:[%s6593_s7 + $0x258] sm:$0xff] }
  0x56   :  { %1229 = vperm.xlu1 %4317, %v3333_v32   ;;  %1224 = vperm.xlu0 %4316, %v3332_v34   ;;  %v193_v32 = vmax.f32 %v177_v16, 0.0  ;;  %v179_v34 = vadd.f32 %v4735_v45, %v156_v18  ;;  %v196_v41 = vmax.f32 %v180_v17, 0.0  ;;  %v182_v44 = vadd.f32 %v4735_v45, %v159_v39  ;;  %v3363_v16 = vld [vmem:[%s6593_s7 + $0x248] sm:$0xff] }
  0x57   :  { %v161_v47 = vmul.f32 %v4723_v21, %v138_v40  ;;  %v183_v50 = vadd.f32 %v4735_v45, %v160_v31  ;;  %v162_v51 = vmul.f32 %v4723_v21, %v139_v35  ;;  %v141_v52 = vmul.f32 %v4718_v43, %v123_v42  ;;  %v3367_v17 = vld [vmem:[%s6593_s7 + $0x268] sm:$0xff]  ;;  %v3353_v42 = vld [vmem:[%s6593_s7 + $0x1f8] sm:$0xff] }
  0x58   :  { %3790 = vmatmul.mubr.f32.gmra.mxu0 %v191_v15  ;;  %v198_v54 = vmax.f32 %v182_v44, 0.0  ;;  %v3346_v15 = vld [vmem:[%s6593_s7 + $0x1c0] sm:$0xff]  ;;  %v3369_v31 = vld [vmem:[%s6593_s7 + $0x278] sm:$0xff]  ;;  %v3368_v44 = vld [vmem:[%s6593_s7 + $0x270] sm:$0xff] }
  0x59   :  { %3792 = vmatprep.mubr.f32.mxu0 %v192_v23  ;;  %v184_v55 = vadd.f32 %v4735_v45, %v161_v47  ;;  %v199_v46 = vmax.f32 %v183_v50, 0.0  ;;  %v185_v43 = vadd.f32 %v4735_v45, %v162_v51  ;;  %v3362_v23 = vld [vmem:[%s6593_s7 + $0x240] sm:$0xff]  ;;  %v3387_v50 = vld [vmem:[%s6593_s7 + $0x308] sm:$0xff] }
  0x5a   :  { %1239 = vperm.xlu1 %4317, %v3335_v20   ;;  %1234 = vperm.xlu0 %4316, %v3334_v24   ;;  %v195_v20 = vmax.f32 %v179_v34, 0.0  ;;  %v181_v24 = vadd.f32 %v4735_v45, %v158_v36  ;;  %v3351_v34 = vld [vmem:[%s6593_s7 + $0x1e8] sm:$0xff] }
  0x5b   :  { %v200_v61 = vmax.f32 %v184_v55, 0.0  ;;  %v201_v2 = vmax.f32 %v185_v43, 0.0  ;;  %v3373_v55 = vld [vmem:[%s6593_s7 + $0x298] sm:$0xff] }
  0x5c   :  { %3793 = vmatmul.mubr.f32.gmra.mxu0 %v193_v32  ;;  %v197_v49 = vmax.f32 %v181_v24, 0.0  ;;  %v3364_v32 = vld [vmem:[%s6593_s7 + $0x250] sm:$0xff] }
  0x5d   :  { %3795 = vmatprep.mubr.f32.mxu0 %v194_v38  ;;  %v3350_v38 = vld [vmem:[%s6593_s7 + $0x1e0] sm:$0xff]  ;;  %v3352_v24 = vld [vmem:[%s6593_s7 + $0x1f0] sm:$0xff] }
  0x5e   :  { %1249 = vperm.xlu1 %4317, %v3337_v56   ;;  %1244 = vperm.xlu0 %4316, %v3336_v60   ;;  %v163_v56 = vmul.f32 %v4723_v21, %v140_v33  ;;  %v164_v60 = vmul.f32 %v4723_v21, %v141_v52  ;;  %v3371_v33 = vld [vmem:[%s6593_s7 + $0x288] sm:$0xff] }
  0x60   :  { %3796 = vmatmul.mubr.f32.gmra.mxu0 %v195_v20  ;;  %v186_v62 = vadd.f32 %v4735_v45, %v163_v56  ;;  %v187_v53 = vadd.f32 %v4735_v45, %v164_v60  ;;  %v3361_v45 = vld [vmem:[%s6593_s7 + $0x238] sm:$0xff] }
  0x61   :  { %3798 = vmatprep.mubr.f32.mxu0 %v196_v41 }
  0x62   :  { %1485 = vperm.xlu1 %4317, %v3339_v10   ;;  %1480 = vperm.xlu0 %4316, %v3338_v13   ;;  %v202_v21 = vmax.f32 %v186_v62, 0.0  ;;  %v203_v4 = vmax.f32 %v187_v53, 0.0  ;;  %v3360_v10 = vld [vmem:[%s6593_s7 + $0x230] sm:$0xff]  ;;  %v3375_v62 = vld [vmem:[%s6593_s7 + $0x2a8] sm:$0xff] }
  0x63   :  { %v3391_v53 = vld [vmem:[%s6593_s7 + $0x328] sm:$0xff] }
  0x64   :  { %3799 = vmatmul.mubr.f32.gmra.mxu0 %v197_v49  ;;  %v3370_v49 = vld [vmem:[%s6593_s7 + $0x280] sm:$0xff] }
  0x65   :  { %3801 = vmatprep.mubr.f32.mxu0 %v198_v54  ;;  %v3386_v54 = vld [vmem:[%s6593_s7 + $0x300] sm:$0xff] }
  0x66   :  { %1495 = vperm.xlu1 %4317, %v3341_v12   ;;  %1490 = vperm.xlu0 %4316, %v3340_v29   ;;  %v3348_v12 = vld [vmem:[%s6593_s7 + $0x1d0] sm:$0xff] }
  0x68   :  { %3802 = vmatmul.mubr.f32.gmra.mxu0 %v199_v46  ;;  %v3389_v46 = vld [vmem:[%s6593_s7 + $0x318] sm:$0xff] }
  0x69   :  { %3804 = vmatprep.mubr.f32.mxu0 %v200_v61  ;;  %v3388_v61 = vld [vmem:[%s6593_s7 + $0x310] sm:$0xff] }
  0x6a   :  { %1505 = vperm.xlu1 %4317, %v3343_v27   ;;  %1500 = vperm.xlu0 %4316, %v3342_v19   ;;  %v3366_v27 = vld [vmem:[%s6593_s7 + $0x260] sm:$0xff] }
  0x6c   :  { %3805 = vmatmul.mubr.f32.gmra.mxu0 %v201_v2  ;;  %v3374_v2 = vld [vmem:[%s6593_s7 + $0x2a0] sm:$0xff] }
  0x6d   :  { %3807 = vmatprep.mubr.f32.mxu0 %v202_v21 }
  0x6e   :  { %1515 = vperm.xlu1 %4317, %v3345_v6   ;;  %1510 = vperm.xlu0 %4316, %v3344_v48  }
  0x70   :  { %3808 = vmatmul.mubr.f32.gmra.mxu0 %v203_v4  ;;  %v3377_v4 = vld [vmem:[%s6593_s7 + $0x2b8] sm:$0xff] }
  0x72   :  { %1791 = vperm.xlu1 %4317, %v3355_v57   ;;  %1786 = vperm.xlu0 %4316, %v3354_v59   ;;  %v3372_v59 = vld [vmem:[%s6593_s7 + $0x290] sm:$0xff] }
  0x76   :  { %1801 = vperm.xlu1 %4317, %v3357_v63   ;;  %1796 = vperm.xlu0 %4316, %v3356_v1  }
  0x7a   :  { %1811 = vperm.xlu1 %4317, %v3359_v3   ;;  %1806 = vperm.xlu0 %4316, %v3358_v58   ;;  %v3390_v58 = vld [vmem:[%s6593_s7 + $0x320] sm:$0xff] }
  0x7d   :  { %v4850_v8 = vpop.permute.xlu1 %604  ;;  %v595_v9 = vpop.permute.xlu0 %594 }
  0x7e   :  { %v672_v0 = vmul.f32 %v595_v9, %v560_v7  ;;  %1821 = vperm.xlu1 %4317, %v3361_v45   ;;  %1816 = vperm.xlu0 %4316, %v3360_v10   ;;  %v3376_v9 = vld [vmem:[%s6593_s7 + $0x2b0] sm:$0xff]  ;;  %v3393_v10 = vld [vmem:[%s6593_s7 + $0x338] sm:$0xff] }
  0x80   :  { %3898 = vmatprep.mubr.f32.mxu0 %v672_v0 }
  0x81   :  { %v4858_v13 = vpop.permute.xlu1 %609  ;;  %v4860_v14 = vpop.permute.xlu0 %599 }
  0x82   :  { %1525 = vperm.xlu1 %4317, %v3347_v11   ;;  %1520 = vperm.xlu0 %4316, %v3346_v15   ;;  %v3392_v15 = vld [vmem:[%s6593_s7 + $0x330] sm:$0xff] }
  0x85   :  { %v4868_v18 = vpop.permute.xlu1 %619  ;;  %v4870_v22 = vpop.permute.xlu0 %614 }
  0x86   :  { %1831 = vperm.xlu1 %4317, %v3363_v16   ;;  %1826 = vperm.xlu0 %4316, %v3362_v23   ;;  %v3379_v16 = vld [vmem:[%s6593_s7 + $0x2c8] sm:$0xff] }
  0x89   :  { %v4878_v25 = vpop.permute.xlu1 %629  ;;  %v4880_v26 = vpop.permute.xlu0 %624 }
  0x8a   :  { %1535 = vperm.xlu1 %4317, %v3349_v5   ;;  %1530 = vperm.xlu0 %4316, %v3348_v12   ;;  %v3378_v12 = vld [vmem:[%s6593_s7 + $0x2c0] sm:$0xff] }
  0x8d   :  { %v4888_v29 = vpop.permute.xlu1 %639  ;;  %v4890_v30 = vpop.permute.xlu0 %634 }
  0x8e   :  { %1841 = vperm.xlu1 %4317, %v3365_v28   ;;  %1836 = vperm.xlu0 %4316, %v3364_v32   ;;  %v3395_v28 = vld [vmem:[%s6593_s7 + $0x348] sm:$0xff] }
  0x91   :  { %v4898_v36 = vpop.permute.xlu1 %649  ;;  %v4900_v37 = vpop.permute.xlu0 %644 }
  0x92   :  { %1545 = vperm.xlu1 %4317, %v3351_v34   ;;  %1540 = vperm.xlu0 %4316, %v3350_v38   ;;  %v3394_v38 = vld [vmem:[%s6593_s7 + $0x340] sm:$0xff] }
  0x95   :  { %v4908_v39 = vpop.permute.xlu1 %659  ;;  %v4910_v40 = vpop.permute.xlu0 %654 }
  0x96   :  { %1851 = vperm.xlu1 %4317, %v3367_v17   ;;  %1846 = vperm.xlu0 %4316, %v3366_v27   ;;  %v3381_v17 = vld [vmem:[%s6593_s7 + $0x2d8] sm:$0xff] }
  0x99   :  { %v4918_v19 = vpop.permute.xlu1 %669  ;;  %v4920_v20 = vpop.permute.xlu0 %664 }
  0x9a   :  { %6609 = vst [vmem:[#allocation3_spill] sm:$0xff] %v4918_v19  ;;  %6610 = vst [vmem:[#allocation4_spill] sm:$0xff] %v4920_v20  ;;  %1555 = vperm.xlu1 %4317, %v3353_v42   ;;  %1550 = vperm.xlu0 %4316, %v3352_v24   ;;  %v3380_v24 = vld [vmem:[%s6593_s7 + $0x2d0] sm:$0xff] }
  0x9d   :  { %v4928_v35 = vpop.permute.xlu1 %744  ;;  %v740_v41 = vpop.permute.xlu0 %739 }
  0x9e   :  { %1861 = vperm.xlu1 %4317, %v3369_v31   ;;  %v817_v47 = vmul.f32 0.0, %v740_v41  ;;  %1856 = vperm.xlu0 %4316, %v3368_v44   ;;  %v3397_v31 = vld [vmem:[%s6593_s7 + $0x358] sm:$0xff] }
  0xa0   :  { %3842 = vmatprep.mubr.f32.mxu1 %v817_v47  ;;  %v3396_v47 = vld [vmem:[%s6593_s7 + $0x350] sm:$0xff] }
  0xa1   :  { %v4936_v6 = vpop.permute.xlu1 %754  ;;  %v4938_v48 = vpop.permute.xlu0 %749 }
  0xa2   :  { %2097 = vperm.xlu1 %4317, %v3371_v33   ;;  %2092 = vperm.xlu0 %4316, %v3370_v49   ;;  %v3383_v33 = vld [vmem:[%s6593_s7 + $0x2e8] sm:$0xff] }
  0xa5   :  { %v4946_v51 = vpop.permute.xlu1 %764  ;;  %v4948_v52 = vpop.permute.xlu0 %759 }
  0xa6   :  { %2403 = vperm.xlu1 %4317, %v3387_v50   ;;  %2398 = vperm.xlu0 %4316, %v3386_v54   ;;  %v3382_v54 = vld [vmem:[%s6593_s7 + $0x2e0] sm:$0xff] }
  0xa9   :  { %v4956_v56 = vpop.permute.xlu1 %774  ;;  %v4958_v57 = vpop.permute.xlu0 %769 }
  0xaa   :  { %2107 = vperm.xlu1 %4317, %v3373_v55   ;;  %2102 = vperm.xlu0 %4316, %v3372_v59   ;;  %v3399_v55 = vld [vmem:[%s6593_s7 + $0x368] sm:$0xff] }
  0xad   :  { %v4966_v43 = vpop.permute.xlu1 %784  ;;  %v4968_v60 = vpop.permute.xlu0 %779 }
  0xae   :  { %2413 = vperm.xlu1 %4317, %v3389_v46   ;;  %2408 = vperm.xlu0 %4316, %v3388_v61   ;;  %v3398_v46 = vld [vmem:[%s6593_s7 + $0x360] sm:$0xff] }
  0xb1   :  { %v4976_v63 = vpop.permute.xlu1 %794  ;;  %v4978_v1 = vpop.permute.xlu0 %789 }
  0xb2   :  { %2117 = vperm.xlu1 %4317, %v3375_v62   ;;  %2112 = vperm.xlu0 %4316, %v3374_v2   ;;  %v3385_v62 = vld [vmem:[%s6593_s7 + $0x2f8] sm:$0xff] }
  0xb5   :  { %v4986_v21 = vpop.permute.xlu1 %804  ;;  %v4988_v3 = vpop.permute.xlu0 %799 }
  0xb6   :  { %2423 = vperm.xlu1 %4317, %v3391_v53   ;;  %2418 = vperm.xlu0 %4316, %v3390_v58   ;;  %v3384_v53 = vld [vmem:[%s6593_s7 + $0x2f0] sm:$0xff] }
  0xb9   :  { %v4996_v7 = vpop.permute.xlu1 %814  ;;  %v4998_v45 = vpop.permute.xlu0 %809 }
  0xba   :  { %6611 = vst [vmem:[#allocation5_spill] sm:$0xff] %v4996_v7  ;;  %6612 = vst [vmem:[#allocation6_spill] sm:$0xff] %v4998_v45  ;;  %2127 = vperm.xlu1 %4317, %v3377_v4   ;;  %2122 = vperm.xlu0 %4316, %v3376_v9   ;;  %v848_v4 = vld [vmem:[%s6598_s6 + $0xf8] sm:$0xff] }
  0xbb   :  { %v3401_v9 = vld [vmem:[%s6593_s7 + $0x378] sm:$0xff]  ;;  %3810 = vmatprep.subr.mxu1 %v848_v4 }
  0xbc   :  { %3811 = vmatpush3.msra.mxu1 %v848_v4  ;;  %v3405_v4 = vld [vmem:[%s6593_s7 + $0x398] sm:$0xff] }
  0xbd   :  { %v5006_v0 = vpop.permute.xlu1 %1179  ;;  %v5008_v11 = vpop.permute.xlu0 %1174 }
  0xbe   :  { %6613 = vst [vmem:[#allocation7_spill] sm:$0xff] %v5006_v0  ;;  %6614 = vst [vmem:[#allocation8_spill] sm:$0xff] %v5008_v11  ;;  %2433 = vperm.xlu1 %4317, %v3393_v10   ;;  %2428 = vperm.xlu0 %4316, %v3392_v15   ;;  %v847_v10 = vld [vmem:[%s6598_s6 + $0xf0] sm:$0xff] }
  0xbf   :  { %v3400_v15 = vld [vmem:[%s6593_s7 + $0x370] sm:$0xff]  ;;  %3812 = vmatprep.subr.mxu1 %v847_v10 }
  0xc0   :  { %3813 = vmatpush3.msra.mxu1 %v847_v10  ;;  %v3404_v10 = vld [vmem:[%s6593_s7 + $0x390] sm:$0xff] }
  0xc1   :  { %v5016_v23 = vpop.permute.xlu1 %1189  ;;  %v5018_v5 = vpop.permute.xlu0 %1184 }
  0xc2   :  { %6615 = vst [vmem:[#allocation9_spill] sm:$0xff] %v5016_v23  ;;  %6616 = vst [vmem:[#allocation10_spill] sm:$0xff] %v5018_v5  ;;  %2137 = vperm.xlu1 %4317, %v3379_v16   ;;  %2132 = vperm.xlu0 %4316, %v3378_v12  }
  0xc5   :  { %v5026_v32 = vpop.permute.xlu1 %1199  ;;  %v5028_v34 = vpop.permute.xlu0 %1194 }
  0xc6   :  { %6617 = vst [vmem:[#allocation11_spill] sm:$0xff] %v5026_v32  ;;  %6618 = vst [vmem:[#allocation12_spill] sm:$0xff] %v5028_v34  ;;  %2443 = vperm.xlu1 %4317, %v3395_v28   ;;  %2438 = vperm.xlu0 %4316, %v3394_v38   ;;  %v3403_v28 = vld [vmem:[%s6593_s7 + $0x388] sm:$0xff] }
  0xc7   :  { %v846_v38 = vld [vmem:[%s6598_s6 + $0xe8] sm:$0xff] }
  0xc8   :  { %3814 = vmatprep.subr.mxu1 %v846_v38 }
  0xc9   :  { %v5036_v27 = vpop.permute.xlu1 %1209  ;;  %v5038_v42 = vpop.permute.xlu0 %1204  ;;  %3815 = vmatpush3.msra.mxu1 %v846_v38  ;;  %v842_v38 = vld [vmem:[%s6598_s6 + $0xc8] sm:$0xff] }
  0xca   :  { %6619 = vst [vmem:[#allocation13_spill] sm:$0xff] %v5036_v27  ;;  %6620 = vst [vmem:[#allocation14_spill] sm:$0xff] %v5038_v42  ;;  %2147 = vperm.xlu1 %4317, %v3381_v17   ;;  %2142 = vperm.xlu0 %4316, %v3380_v24   ;;  %v3402_v17 = vld [vmem:[%s6593_s7 + $0x380] sm:$0xff] }
  0xcb   :  { %v845_v24 = vld [vmem:[%s6598_s6 + $0xe0] sm:$0xff] }
  0xcc   :  { %3816 = vmatprep.subr.mxu1 %v845_v24 }
  0xcd   :  { %v5046_v41 = vpop.permute.xlu1 %1219  ;;  %v5048_v44 = vpop.permute.xlu0 %1214  ;;  %3817 = vmatpush3.msra.mxu1 %v845_v24  ;;  %v3421_v24 = vld [vmem:[%s6593_s7 + $0x418] sm:$0xff] }
  0xce   :  { %6621 = vst [vmem:[#allocation15_spill] sm:$0xff] %v5046_v41  ;;  %6622 = vst [vmem:[#allocation16_spill] sm:$0xff] %v5048_v44  ;;  %2453 = vperm.xlu1 %4317, %v3397_v31   ;;  %2448 = vperm.xlu0 %4316, %v3396_v47   ;;  %v703_v31 = vld [vmem:[%s6598_s6 + $0x78] sm:$0xff]  ;;  %v3419_v47 = vld [vmem:[%s6593_s7 + $0x408] sm:$0xff] }
  0xcf   :  { %3866 = vmatprep.subr.mxu0 %v703_v31 }
  0xd0   :  { %3867 = vmatpush3.msra.mxu0 %v703_v31  ;;  %v699_v31 = vld [vmem:[%s6598_s6 + $0x58] sm:$0xff] }
  0xd1   :  { %v5056_v49 = vpop.permute.xlu1 %1229  ;;  %v5058_v50 = vpop.permute.xlu0 %1224 }
  0xd2   :  { %6623 = vst [vmem:[#allocation17_spill] sm:$0xff] %v5056_v49  ;;  %6624 = vst [vmem:[#allocation18_spill] sm:$0xff] %v5058_v50  ;;  %2157 = vperm.xlu1 %4317, %v3383_v33   ;;  %2152 = vperm.xlu0 %4316, %v3382_v54   ;;  %v844_v33 = vld [vmem:[%s6598_s6 + $0xd8] sm:$0xff] }
  0xd3   :  { %3818 = vmatprep.subr.mxu1 %v844_v33 }
  0xd4   :  { %3819 = vmatpush3.msra.mxu1 %v844_v33  ;;  %v698_v33 = vld [vmem:[%s6598_s6 + $0x50] sm:$0xff] }
  0xd5   :  { %v5066_v59 = vpop.permute.xlu1 %1239  ;;  %v5071_v61 = vpop.permute.xlu0 %1234 }
  0xd6   :  { %6625 = vst [vmem:[#allocation19_spill] sm:$0xff] %v5066_v59  ;;  %6626 = vst [vmem:[#allocation20_spill] sm:$0xff] %v5071_v61  ;;  %2463 = vperm.xlu1 %4317, %v3399_v55   ;;  %2458 = vperm.xlu0 %4316, %v3398_v46   ;;  %v702_v55 = vld [vmem:[%s6598_s6 + $0x70] sm:$0xff] }
  0xd7   :  { %3868 = vmatprep.subr.mxu0 %v702_v55 }
  0xd8   :  { %3869 = vmatpush3.msra.mxu0 %v702_v55  ;;  %v841_v55 = vld [vmem:[%s6598_s6 + $0xc0] sm:$0xff] }
  0xd9   :  { %v5076_v2 = vpop.permute.xlu1 %1249  ;;  %v5081_v58 = vpop.permute.xlu0 %1244 }
  0xda   :  { %6627 = vst [vmem:[#allocation21_spill] sm:$0xff] %v5076_v2  ;;  %6628 = vst [vmem:[#allocation22_spill] sm:$0xff] %v5081_v58  ;;  %2167 = vperm.xlu1 %4317, %v3385_v62   ;;  %2162 = vperm.xlu0 %4316, %v3384_v53   ;;  %v3418_v62 = vld [vmem:[%s6593_s7 + $0x400] sm:$0xff]  ;;  %v843_v53 = vld [vmem:[%s6598_s6 + $0xd0] sm:$0xff] }
  0xdb   :  { %3820 = vmatprep.subr.mxu1 %v843_v53  ;;  %v3430_v2 = vld [vmem:[%s6593_s7 + $0x460] sm:$0xff] }
  0xdc   :  { %3821 = vmatpush3.msra.mxu1 %v843_v53 }
  0xdd   :  { %v5095_v16 = vpop.permute.xlu1 %1485  ;;  %v5097_v12 = vpop.permute.xlu0 %1480  ;;  %3822 = vmatprep.subr.mxu1 %v842_v38 }
  0xde   :  { %6629 = vst [vmem:[#allocation23_spill] sm:$0xff] %v5095_v16  ;;  %2473 = vperm.xlu1 %4317, %v3401_v9   ;;  %6630 = vst [vmem:[#allocation24_spill] sm:$0xff] %v5097_v12  ;;  %2468 = vperm.xlu0 %4316, %v3400_v15   ;;  %v701_v9 = vld [vmem:[%s6598_s6 + $0x68] sm:$0xff]  ;;  %v700_v15 = vld [vmem:[%s6598_s6 + $0x60] sm:$0xff] }
  0xdf   :  { %3870 = vmatprep.subr.mxu0 %v701_v9  ;;  %3823 = vmatpush3.msra.mxu1 %v842_v38  ;;  %v696_v38 = vld [vmem:[%s6598_s6 + $0x40] sm:$0xff] }
  0xe0   :  { %3871 = vmatpush3.msra.mxu0 %v701_v9  ;;  %3824 = vmatprep.subr.mxu1 %v841_v55  ;;  %v840_v9 = vld [vmem:[%s6598_s6 + $0xb8] sm:$0xff] }
  0xe1   :  { %v5120_v54 = vpop.permute.xlu1 %1495  ;;  %v5125_v46 = vpop.permute.xlu0 %1490  ;;  %3872 = vmatprep.subr.mxu0 %v700_v15  ;;  %3825 = vmatpush3.msra.mxu1 %v841_v55 }
  0xe2   :  { %2709 = vperm.xlu1 %4317, %v3403_v28   ;;  %6631 = vst [vmem:[#allocation25_spill] sm:$0xff] %v5120_v54  ;;  %2704 = vperm.xlu0 %4316, %v3402_v17   ;;  %6632 = vst [vmem:[#allocation26_spill] sm:$0xff] %v5125_v46 }
  0xe3   :  { %3873 = vmatpush3.msra.mxu0 %v700_v15  ;;  %v3406_v15 = vld [vmem:[%s6593_s7 + $0x3a0] sm:$0xff]  ;;  %3826 = vmatprep.subr.mxu1 %v840_v9 }
  0xe4   :  { %3874 = vmatprep.subr.mxu0 %v699_v31  ;;  %3827 = vmatpush3.msra.mxu1 %v840_v9  ;;  %v694_v9 = vld [vmem:[%s6598_s6 + $0x30] sm:$0xff] }
  0xe5   :  { %v5145_v28 = vpop.permute.xlu1 %1505  ;;  %v5150_v17 = vpop.permute.xlu0 %1500  ;;  %3875 = vmatpush3.msra.mxu0 %v699_v31  ;;  %v839_v31 = vld [vmem:[%s6598_s6 + $0xb0] sm:$0xff] }
  0xe6   :  { %3015 = vperm.xlu1 %4317, %v3419_v47   ;;  %3010 = vperm.xlu0 %4316, %v3418_v62   ;;  %6633 = vst [vmem:[#allocation27_spill] sm:$0xff] %v5145_v28  ;;  %6634 = vst [vmem:[#allocation28_spill] sm:$0xff] %v5150_v17  ;;  %v3420_v47 = vld [vmem:[%s6593_s7 + $0x410] sm:$0xff]  ;;  %v3407_v62 = vld [vmem:[%s6593_s7 + $0x3a8] sm:$0xff] }
  0xe7   :  { %3876 = vmatprep.subr.mxu0 %v698_v33  ;;  %3828 = vmatprep.subr.mxu1 %v839_v31 }
  0xe8   :  { %3877 = vmatpush3.msra.mxu0 %v698_v33  ;;  %v695_v33 = vld [vmem:[%s6598_s6 + $0x38] sm:$0xff]  ;;  %3829 = vmatpush3.msra.mxu1 %v839_v31 }
  0xe9   :  { %v5170_v53 = vpop.permute.xlu1 %1515  ;;  %v3425_v31 = vld [vmem:[%s6593_s7 + $0x438] sm:$0xff] }
  0xea   :  { %2719 = vperm.xlu1 %4317, %v3405_v4   ;;  %2714 = vperm.xlu0 %4316, %v3404_v10   ;;  %6635 = vst [vmem:[#allocation29_spill] sm:$0xff] %v5170_v53  ;;  %v697_v4 = vld [vmem:[%s6598_s6 + $0x48] sm:$0xff]  ;;  %v5178_v10 = vpop.permute.xlu0 %1510 }
  0xeb   :  { %6636 = vst [vmem:[#allocation30_spill] sm:$0xff] %v5178_v10  ;;  %3878 = vmatprep.subr.mxu0 %v697_v4 }
  0xec   :  { %3879 = vmatpush3.msra.mxu0 %v697_v4 }
  0xed   :  { %3880 = vmatprep.subr.mxu0 %v696_v38  ;;  %v5198_v55 = vpop.permute.xlu1 %1791 }
  0xee   :  { %3025 = vperm.xlu1 %4317, %v3421_v24   ;;  %3020 = vperm.xlu0 %4316, %v3420_v47   ;;  %v3423_v24 = vld [vmem:[%s6593_s7 + $0x428] sm:$0xff]  ;;  %v3422_v47 = vld [vmem:[%s6593_s7 + $0x420] sm:$0xff]  ;;  %6637 = vst [vmem:[#allocation31_spill] sm:$0xff] %v5198_v55  ;;  %v5203_v4 = vpop.permute.xlu0 %1786 }
  0xef   :  { %3881 = vmatpush3.msra.mxu0 %v696_v38  ;;  %6638 = vst [vmem:[#allocation32_spill] sm:$0xff] %v5203_v4  ;;  %v3408_v38 = vld [vmem:[%s6593_s7 + $0x3b0] sm:$0xff]  ;;  %v836_v4 = vld [vmem:[%s6598_s6 + $0x98] sm:$0xff] }
  0xf0   :  { %3882 = vmatprep.subr.mxu0 %v695_v33 }
  0xf1   :  { %3883 = vmatpush3.msra.mxu0 %v695_v33  ;;  %v837_v33 = vld [vmem:[%s6598_s6 + $0xa0] sm:$0xff]  ;;  %v5226_v55 = vpop.permute.xlu1 %1801 }
  0xf2   :  { %2729 = vperm.xlu1 %4317, %v3407_v62   ;;  %2724 = vperm.xlu0 %4316, %v3406_v15   ;;  %v838_v62 = vld [vmem:[%s6598_s6 + $0xa8] sm:$0xff]  ;;  %v3409_v15 = vld [vmem:[%s6593_s7 + $0x3b8] sm:$0xff]  ;;  %6639 = vst [vmem:[#allocation33_spill] sm:$0xff] %v5226_v55 }
  0xf3   :  { %3884 = vmatprep.subr.mxu0 %v694_v9  ;;  %3830 = vmatprep.subr.mxu1 %v838_v62  ;;  %v3411_v55 = vld [vmem:[%s6593_s7 + $0x3c8] sm:$0xff] }
  0xf4   :  { %3885 = vmatpush3.msra.mxu0 %v694_v9  ;;  %3831 = vmatpush3.msra.mxu1 %v838_v62  ;;  %v3424_v9 = vld [vmem:[%s6593_s7 + $0x430] sm:$0xff]  ;;  %v691_v62 = vld [vmem:[%s6598_s6 + $0x18] sm:$0xff] }
  0xf5   :  { %3832 = vmatprep.subr.mxu1 %v837_v33 }
  0xf6   :  { %3035 = vperm.xlu1 %4317, %v3423_v24   ;;  %3030 = vperm.xlu0 %4316, %v3422_v47   ;;  %v693_v24 = vld [vmem:[%s6598_s6 + $0x28] sm:$0xff]  ;;  %v692_v47 = vld [vmem:[%s6598_s6 + $0x20] sm:$0xff] }
  0xf7   :  { %3886 = vmatprep.subr.mxu0 %v693_v24  ;;  %3833 = vmatpush3.msra.mxu1 %v837_v33  ;;  %v3410_v33 = vld [vmem:[%s6593_s7 + $0x3c0] sm:$0xff] }
  0xf8   :  { %3887 = vmatpush3.msra.mxu0 %v693_v24  ;;  %3834 = vmatprep.subr.mxu1 %v836_v4  ;;  %v690_v24 = vld [vmem:[%s6598_s6 + $0x10] sm:$0xff] }
  0xf9   :  { %3888 = vmatprep.subr.mxu0 %v692_v47  ;;  %3835 = vmatpush3.msra.mxu1 %v836_v4  ;;  %v3427_v4 = vld [vmem:[%s6593_s7 + $0x448] sm:$0xff] }
  0xfa   :  { %2739 = vperm.xlu1 %4317, %v3409_v15   ;;  %2734 = vperm.xlu0 %4316, %v3408_v38   ;;  %v5231_v15 = vpop.permute.xlu0 %1796  ;;  %v835_v38 = vld [vmem:[%s6598_s6 + $0x90] sm:$0xff] }
  0xfb   :  { %6640 = vst [vmem:[#allocation34_spill] sm:$0xff] %v5231_v15  ;;  %3889 = vmatpush3.msra.mxu0 %v692_v47  ;;  %3836 = vmatprep.subr.mxu1 %v835_v38  ;;  %v5254_v15 = vpop.permute.xlu1 %1811 }
  0xfc   :  { %3890 = vmatprep.subr.mxu0 %v691_v62  ;;  %6641 = vst [vmem:[#allocation35_spill] sm:$0xff] %v5254_v15  ;;  %3837 = vmatpush3.msra.mxu1 %v835_v38  ;;  %v833_v15 = vld [vmem:[%s6598_s6 + $0x80] sm:$0xff]  ;;  %v5276_v38 = vld [vmem:[%s6598_s6 + $0x178] sm:$0xff] }
  0xfd   :  { %3891 = vmatpush3.msra.mxu0 %v691_v62  ;;  %v688_v62 = vld [vmem:[%s6598_s6] sm:$0xff] }
  0xfe   :  { %3045 = vperm.xlu1 %4317, %v3425_v31   ;;  %3040 = vperm.xlu0 %4316, %v3424_v9   ;;  %v834_v31 = vld [vmem:[%s6598_s6 + $0x88] sm:$0xff]  ;;  %v5256_v47 = vpop.permute.xlu0 %1806 }
  0xff   :  { %6642 = vst [vmem:[#allocation36_spill] sm:$0xff] %v5256_v47  ;;  %3892 = vmatprep.subr.mxu0 %v690_v24  ;;  %v689_v9 = vld [vmem:[%s6598_s6 + $0x8] sm:$0xff]  ;;  %3838 = vmatprep.subr.mxu1 %v834_v31  ;;  %v5281_v47 = vpop.permute.xlu1 %1821 }
 0x100   :  { %3893 = vmatpush3.msra.mxu0 %v690_v24  ;;  %3839 = vmatpush3.msra.mxu1 %v834_v31  ;;  %6643 = vst [vmem:[#allocation37_spill] sm:$0xff] %v5281_v47  ;;  %v5286_v24 = vld [vmem:[%s6598_s6 + $0x1f8] sm:$0xff] }
 0x101   :  { %3894 = vmatprep.subr.mxu0 %v689_v9  ;;  %3840 = vmatprep.subr.mxu1 %v833_v15 }
 0x102   :  { %2749 = vperm.xlu1 %4317, %v3411_v55   ;;  %2744 = vperm.xlu0 %4316, %v3410_v33   ;;  %v3426_v55 = vld [vmem:[%s6593_s7 + $0x440] sm:$0xff]  ;;  %v3413_v33 = vld [vmem:[%s6593_s7 + $0x3d8] sm:$0xff]  ;;  %v5288_v31 = vpop.permute.xlu0 %1816 }
 0x103   :  { %3895 = vmatpush3.msra.mxu0 %v689_v9  ;;  %3841 = vmatpush3.msra.mxu1 %v833_v15  ;;  %6644 = vst [vmem:[#allocation38_spill] sm:$0xff] %v5288_v31  ;;  %v3429_v15 = vld [vmem:[%s6593_s7 + $0x458] sm:$0xff]  ;;  %v3428_v9 = vld [vmem:[%s6593_s7 + $0x450] sm:$0xff] }
 0x104   :  { %3896 = vmatprep.subr.mxu0 %v688_v62  ;;  %3922 = vmatprep.subr.mxu1 %v5276_v38 }
 0x105   :  { %3897 = vmatpush3.msra.mxu0 %v688_v62  ;;  %v3415_v62 = vld [vmem:[%s6593_s7 + $0x3e8] sm:$0xff] }
 0x106   :  { %3055 = vperm.xlu1 %4317, %v3427_v4   ;;  %3050 = vperm.xlu0 %4316, %v3426_v55   ;;  %v3412_v4 = vld [vmem:[%s6593_s7 + $0x3d0] sm:$0xff]  ;;  %v5301_v55 = vpop.permute.xlu1 %1525  ;;  %v5303_v47 = vpop.permute.xlu0 %1520 }
 0x107   :  { %3978 = vmatprep.subr.mxu0 %v5286_v24  ;;  %6645 = vst [vmem:[#allocation39_spill] sm:$0xff] %v5301_v55  ;;  %6646 = vst [vmem:[#allocation40_spill] sm:$0xff] %v5303_v47 }
 0x10a   :  { %2759 = vperm.xlu1 %4317, %v3413_v33   ;;  %2754 = vperm.xlu0 %4316, %v3412_v4   ;;  %v3414_v33 = vld [vmem:[%s6593_s7 + $0x3e0] sm:$0xff]  ;;  %v3431_v4 = vld [vmem:[%s6593_s7 + $0x468] sm:$0xff]  ;;  %v5314_v31 = vpop.permute.xlu1 %1831 }
 0x10b   :  { %6647 = vst [vmem:[#allocation41_spill] sm:$0xff] %v5314_v31  ;;  %v3433_v31 = vld [vmem:[%s6593_s7 + $0x478] sm:$0xff] }
 0x10e   :  { %3065 = vperm.xlu1 %4317, %v3429_v15   ;;  %3060 = vperm.xlu0 %4316, %v3428_v9   ;;  %v5316_v15 = vpop.permute.xlu0 %1826  ;;  %v3417_v9 = vld [vmem:[%s6593_s7 + $0x3f8] sm:$0xff]  ;;  %v5327_v58 = vpop.permute.xlu1 %1535 }
 0x10f   :  { %6648 = vst [vmem:[#allocation42_spill] sm:$0xff] %v5316_v15  ;;  %6649 = vst [vmem:[#allocation43_spill] sm:$0xff] %v5327_v58 }
 0x112   :  { %2769 = vperm.xlu1 %4317, %v3415_v62   ;;  %2764 = vperm.xlu0 %4316, %v3414_v33   ;;  %v3416_v62 = vld [vmem:[%s6593_s7 + $0x3f0] sm:$0xff]  ;;  %v5329_v33 = vpop.permute.xlu0 %1530 }
 0x113   :  { %6650 = vst [vmem:[#allocation44_spill] sm:$0xff] %v5329_v33 }
 0x114   :  { %v5341_v59 = vpop.f32.mrf.mxu0 }
 0x116   :  { %3075 = vperm.xlu1 %4317, %v3431_v4   ;;  %3070 = vperm.xlu0 %4316, %v3430_v2   ;;  %v3432_v4 = vld [vmem:[%s6593_s7 + $0x470] sm:$0xff]  ;;  %v5337_v2 = vpop.permute.xlu1 %1841  ;;  %v5339_v15 = vpop.permute.xlu0 %1836 }
 0x117   :  { %6651 = vst [vmem:[#allocation45_spill] sm:$0xff] %v5337_v2  ;;  %6652 = vst [vmem:[#allocation46_spill] sm:$0xff] %v5339_v15 }
 0x11a   :  { %2779 = vperm.xlu1 %4317, %v3417_v9   ;;  %2774 = vperm.xlu0 %4316, %v3416_v62   ;;  %v5343_v9 = vpop.f32.mrf.mxu0  ;;  %v5347_v58 = vpop.permute.xlu1 %1545 }
 0x11b   :  { %v386_v61 = vmul.f32 %v5343_v9, %v5343_v9  ;;  %6653 = vst [vmem:[#allocation47_spill] sm:$0xff] %v5347_v58  ;;  %v5351_v49 = vpop.permute.xlu0 %1540 }
 0x11c   :  { %v5349_v62 = vpop.f32.mrf.mxu0  ;;  %6654 = vst [vmem:[#allocation48_spill] sm:$0xff] %v5351_v49 }
 0x11d   :  { %v389_v58 = vmul.f32 %v5349_v62, %v5349_v62 }
 0x11e   :  { %3085 = vperm.xlu1 %4317, %v3433_v31   ;;  %3080 = vperm.xlu0 %4316, %v3432_v4   ;;  %v387_v31 = vmul.f32 %v5341_v59, %v5341_v59  ;;  %v365_v4 = vadd.f32 %v5341_v59, %v5343_v9  ;;  %v5357_v2 = vpop.f32.mrf.mxu0  ;;  %v5367_v47 = vpop.permute.xlu1 %1851 }
 0x11f   :  { %v388_v50 = vmul.f32 %v5357_v2, %v5357_v2  ;;  %6655 = vst [vmem:[#allocation49_spill] sm:$0xff] %v5367_v47  ;;  %v5371_v53 = vpop.permute.xlu0 %1846 }
 0x120   :  { %v402_v15 = vadd.f32 %v387_v31, %v386_v61  ;;  %v366_v33 = vadd.f32 %v365_v4, %v5357_v2  ;;  %v5362_v55 = vpop.f32.mrf.mxu0  ;;  %6656 = vst [vmem:[#allocation50_spill] sm:$0xff] %v5371_v53 }
 0x121   :  { %v391_v10 = vmul.f32 %v5362_v55, %v5362_v55 }
 0x122   :  { %v403_v49 = vadd.f32 %v402_v15, %v388_v50  ;;  %v367_v41 = vadd.f32 %v5349_v62, %v366_v33  ;;  %v5369_v44 = vpop.f32.mrf.mxu0  ;;  %v5386_v42 = vpop.permute.xlu1 %1555 }
 0x123   :  { %v390_v31 = vmul.f32 %v5369_v44, %v5369_v44  ;;  %6657 = vst [vmem:[#allocation51_spill] sm:$0xff] %v5386_v42 }
 0x124   :  { %v368_v61 = vadd.f32 %v367_v41, %v5369_v44  ;;  %v404_v4 = vadd.f32 %v403_v49, %v389_v58  ;;  %v5376_v27 = vpop.f32.mrf.mxu0  ;;  %v5390_v49 = vpop.permute.xlu0 %1550 }
 0x125   :  { %6658 = vst [vmem:[#allocation52_spill] sm:$0xff] %v5390_v49  ;;  %v393_v58 = vmul.f32 %v5376_v27, %v5376_v27 }
 0x126   :  { %v405_v50 = vadd.f32 %v404_v4, %v390_v31  ;;  %v369_v15 = vadd.f32 %v5362_v55, %v368_v61  ;;  %v5381_v33 = vpop.f32.mrf.mxu0  ;;  %v5405_v34 = vpop.permute.xlu1 %1861 }
 0x127   :  { %v392_v53 = vmul.f32 %v5381_v33, %v5381_v33  ;;  %6659 = vst [vmem:[#allocation53_spill] sm:$0xff] %v5405_v34 }
 0x128   :  { %v370_v47 = vadd.f32 %v369_v15, %v5381_v33  ;;  %v406_v41 = vadd.f32 %v405_v50, %v391_v10  ;;  %v5388_v28 = vpop.f32.mrf.mxu0 }
 0x129   :  { %v395_v42 = vmul.f32 %v5388_v28, %v5388_v28 }
 0x12a   :  { %v407_v31 = vadd.f32 %v406_v41, %v392_v53  ;;  %v371_v61 = vadd.f32 %v5376_v27, %v370_v47  ;;  %v5395_v4 = vpop.f32.mrf.mxu0  ;;  %v5409_v47 = vpop.permute.xlu0 %1856 }
 0x12b   :  { %v394_v32 = vmul.f32 %v5395_v4, %v5395_v4  ;;  %6660 = vst [vmem:[#allocation54_spill] sm:$0xff] %v5409_v47  ;;  %v5424_v23 = vpop.permute.xlu1 %2097 }
 0x12c   :  { %v372_v15 = vadd.f32 %v371_v61, %v5395_v4  ;;  %v408_v10 = vadd.f32 %v407_v31, %v393_v58  ;;  %v5400_v50 = vpop.f32.mrf.mxu0  ;;  %6661 = vst [vmem:[#allocation55_spill] sm:$0xff] %v5424_v23 }
 0x12d   :  { %v397_v54 = vmul.f32 %v5400_v50, %v5400_v50 }
 0x12e   :  { %v409_v49 = vadd.f32 %v408_v10, %v394_v32  ;;  %v373_v17 = vadd.f32 %v5388_v28, %v372_v15  ;;  %v5407_v53 = vpop.f32.mrf.mxu0 }
 0x12f   :  { %v396_v61 = vmul.f32 %v5407_v53, %v5407_v53  ;;  %v5436_v23 = vpop.permute.xlu1 %2403 }
 0x130   :  { %v374_v41 = vadd.f32 %v373_v17, %v5407_v53  ;;  %v410_v58 = vadd.f32 %v409_v49, %v395_v42  ;;  %v5414_v31 = vpop.f32.mrf.mxu0  ;;  %v5428_v42 = vpop.permute.xlu0 %2092  ;;  %6663 = vst [vmem:[#allocation57_spill] sm:$0xff] %v5436_v23 }
 0x131   :  { %6662 = vst [vmem:[#allocation56_spill] sm:$0xff] %v5428_v42  ;;  %v399_v49 = vmul.f32 %v5414_v31, %v5414_v31 }
 0x132   :  { %v411_v32 = vadd.f32 %v410_v58, %v396_v61  ;;  %v375_v15 = vadd.f32 %v5400_v50, %v374_v41  ;;  %v5419_v10 = vpop.f32.mrf.mxu0 }
 0x133   :  { %v398_v47 = vmul.f32 %v5419_v10, %v5419_v10  ;;  %v5440_v7 = vpop.permute.xlu1 %2107 }
 0x134   :  { %v376_v34 = vadd.f32 %v375_v15, %v5419_v10  ;;  %v412_v17 = vadd.f32 %v411_v32, %v397_v54  ;;  %v5426_v46 = vpop.f32.mrf.mxu0  ;;  %v5438_v12 = vpop.permute.xlu0 %2398 }
 0x135   :  { %v401_v0 = vmul.f32 %v5426_v46, %v5426_v46  ;;  %6664 = vst [vmem:[#allocation58_spill] sm:$0xff] %v5438_v12 }
 0x136   :  { %v413_v61 = vadd.f32 %v412_v17, %v398_v47  ;;  %v377_v41 = vadd.f32 %v5414_v31, %v376_v34  ;;  %v356_v58 = vpop.f32.mrf.mxu0 }
 0x137   :  { %v400_v16 = vmul.f32 %v356_v58, %v356_v58 }
 0x138   :  { %v378_v5 = vadd.f32 %v377_v41, %v356_v58  ;;  %v414_v15 = vadd.f32 %v413_v61, %v399_v49  ;;  %v5442_v41 = vpop.permute.xlu0 %2102 }
 0x13a   :  { %v379_v54 = vadd.f32 %v5426_v46, %v378_v5  ;;  %v415_v32 = vadd.f32 %v414_v15, %v400_v16  ;;  %v5444_v15 = vpop.permute.xlu1 %2413 }
 0x13b   :  { %6665 = vst [vmem:[#allocation59_spill] sm:$0xff] %v5444_v15 }
 0x13c   :  { %v380_v42 = vrot.slane %v379_v54, 4  ;;  %v416_v11 = vadd.f32 %v415_v32, %v401_v0  ;;  %v5446_v23 = vpop.permute.xlu0 %2408 }
 0x13d   :  { %6666 = vst [vmem:[#allocation60_spill] sm:$0xff] %v5446_v23 }
 0x13e   :  { %v381_v19 = vadd.f32 %v380_v42, %v379_v54  ;;  %v417_v47 = vrot.slane %v416_v11, 4  ;;  %v5452_v32 = vpop.permute.xlu1 %2117 }
 0x13f   :  { %6667 = vst [vmem:[#allocation61_spill] sm:$0xff] %v5452_v32 }
 0x140   :  { %v382_v17 = vrot.slane %v381_v19, 2  ;;  %v418_v34 = vadd.f32 %v417_v47, %v416_v11  ;;  %v5454_v47 = vpop.permute.xlu0 %2112 }
 0x141   :  { %6668 = vst [vmem:[#allocation62_spill] sm:$0xff] %v5454_v47 }
 0x142   :  { %v383_v49 = vadd.f32 %v382_v17, %v381_v19  ;;  %v419_v61 = vrot.slane %v418_v34, 2 }
 0x144   :  { %v384_v20 = vrot.slane %v383_v49, 1  ;;  %v420_v45 = vadd.f32 %v419_v61, %v418_v34  ;;  %v5458_v34 = vpop.permute.xlu0 %2418 }
 0x145   :  { %6670 = vst [vmem:[#allocation64_spill] sm:$0xff] %v5458_v34 }
 0x146   :  { %v385_v5 = vadd.f32 %v384_v20, %v383_v49  ;;  %v421_v16 = vrot.slane %v420_v45, 1  ;;  %v5456_v20 = vpop.permute.xlu1 %2423 }
 0x147   :  { %6669 = vst [vmem:[#allocation63_spill] sm:$0xff] %v5456_v20 }
 0x148   :  { %v422_v12 = vadd.f32 %v421_v16, %v420_v45  ;;  %v5448_v0 = vmul.f32 0.0078125, %v385_v5  ;;  %v5462_v45 = vpop.permute.xlu0 %2122 }
 0x149   :  { %6672 = vst [vmem:[#allocation66_spill] sm:$0xff] %v5462_v45 }
 0x14a   :  { %v424_v42 = vmul.f32 0.0078125, %v422_v12  ;;  %v425_v11 = vmul.f32 %v5448_v0, %v5448_v0  ;;  %v5460_v49 = vpop.permute.xlu1 %2127  ;;  %v442_v12 = vsub.f32 %v356_v58, %v5448_v0  ;;  %v433_v61 = vsub.f32 %v5362_v55, %v5448_v0 }
 0x14b   :  { %6671 = vst [vmem:[#allocation65_spill] sm:$0xff] %v5460_v49  ;;  %v434_v5 = vsub.f32 %v5381_v33, %v5448_v0  ;;  %v432_v16 = vsub.f32 %v5369_v44, %v5448_v0  ;;  %v438_v58 = vsub.f32 %v5407_v53, %v5448_v0  ;;  %v439_v55 = vsub.f32 %v5400_v50, %v5448_v0 }
 0x14c   :  { %v426_v54 = vsub.f32 %v424_v42, %v425_v11  ;;  %v435_v42 = vsub.f32 %v5376_v27, %v5448_v0  ;;  %v436_v11 = vsub.f32 %v5395_v4, %v5448_v0  ;;  %v440_v33 = vsub.f32 %v5419_v10, %v5448_v0  ;;  %v5490_v27 = vld [vmem:[%s6599_s4] ss:$0 sm:$0xff]  ;;  %v5506_v15 = vpop.permute.xlu0 %2428 }
 0x14d   :  { %v441_v44 = vsub.f32 %v5414_v31, %v5448_v0  ;;  %v443_v4 = vsub.f32 %v5426_v46, %v5448_v0  ;;  %v430_v50 = vsub.f32 %v5357_v2, %v5448_v0  ;;  %v429_v53 = vsub.f32 %v5341_v59, %v5448_v0  ;;  %v5511_v46 = vld [vmem:[%s6600_s5] ss:$0 sm:$0xff] }
 0x14e   :  { %v427_v19 = vmax.f32 %v426_v54, 0.0  ;;  %v437_v54 = vsub.f32 %v5388_v28, %v5448_v0  ;;  %v5492_v28 = vpop.permute.xlu1 %2433  ;;  %v431_v31 = vsub.f32 %v5349_v62, %v5448_v0 }
 0x150   :  { %v444_v17 = vadd.f32 1e-05, %v427_v19 }
 0x152   :  { %4320 = vrsqrt.f32 %v444_v17 }
 0x15f   :  { %v5485_v19 = vpop.eup %4320 }
 0x160   :  { %v460_v10 = vmul.f32 %v5485_v19, %v442_v12  ;;  %v451_v17 = vmul.f32 %v5485_v19, %v433_v61  ;;  %v452_v20 = vmul.f32 %v5485_v19, %v434_v5  ;;  %v450_v34 = vmul.f32 %v5485_v19, %v432_v16 }
 0x161   :  { %v453_v59 = vmul.f32 %v5485_v19, %v435_v42  ;;  %v454_v2 = vmul.f32 %v5485_v19, %v436_v11  ;;  %v455_v62 = vmul.f32 %v5485_v19, %v437_v54  ;;  %v456_v12 = vmul.f32 %v5485_v19, %v438_v58 }
 0x162   :  { %v483_v61 = vmul.f32 %v5490_v27, %v460_v10  ;;  %v474_v5 = vmul.f32 %v5490_v27, %v451_v17  ;;  %v475_v16 = vmul.f32 %v5490_v27, %v452_v20  ;;  %v473_v23 = vmul.f32 %v5490_v27, %v450_v34 }
 0x163   :  { %v476_v49 = vmul.f32 %v5490_v27, %v453_v59  ;;  %v477_v45 = vmul.f32 %v5490_v27, %v454_v2  ;;  %v478_v42 = vmul.f32 %v5490_v27, %v455_v62  ;;  %v479_v11 = vmul.f32 %v5490_v27, %v456_v12  ;;  %v5543_v59 = vpop.permute.xlu1 %2137 }
 0x164   :  { %v5526_v54 = vadd.f32 %v5511_v46, %v483_v61  ;;  %v5529_v58 = vadd.f32 %v5511_v46, %v474_v5  ;;  %v5532_v10 = vadd.f32 %v5511_v46, %v475_v16  ;;  %v5535_v20 = vadd.f32 %v5511_v46, %v473_v23  ;;  %6673 = vst [vmem:[#allocation67_spill] sm:$0xff] %v5543_v59  ;;  %v5555_v5 = vpop.permute.xlu0 %2132 }
 0x165   :  { %v5538_v34 = vadd.f32 %v5511_v46, %v476_v49  ;;  %v5541_v17 = vadd.f32 %v5511_v46, %v477_v45  ;;  %v5546_v2 = vadd.f32 %v5511_v46, %v478_v42  ;;  %v5549_v62 = vadd.f32 %v5511_v46, %v479_v11  ;;  %6674 = vst [vmem:[#allocation68_spill] sm:$0xff] %v5555_v5 }
 0x166   :  { %v6602_v12 = vmax.f32 %v5526_v54, 0.0  ;;  %v6603_v61 = vmax.f32 %v5529_v58, 0.0  ;;  %v6604_v23 = vmax.f32 %v5532_v10, 0.0  ;;  %v6606_v49 = vmax.f32 %v5535_v20, 0.0 }
 0x167   :  { %v6605_v45 = vmax.f32 %v5538_v34, 0.0  ;;  %v457_v11 = vmul.f32 %v5485_v19, %v439_v55  ;;  %v458_v16 = vmul.f32 %v5485_v19, %v440_v33  ;;  %v459_v42 = vmul.f32 %v5485_v19, %v441_v44  ;;  %v2444_v5 = vpop.permute.xlu1 %2443 }
 0x168   :  { %558 = vst [vmem:[#allocation2 + $0x80] sm:$0xff] %v6602_v12  ;;  %549 = vst [vmem:[#allocation2 + $0x38] sm:$0xff] %v6603_v61  ;;  %v461_v59 = vmul.f32 %v5485_v19, %v443_v4  ;;  %v6675_v12 = vmax.f32 %v5541_v17, 0.0  ;;  %v6676_v61 = vmax.f32 %v5546_v2, 0.0  ;;  %v448_v55 = vmul.f32 %v5485_v19, %v430_v50  ;;  %v2439_v32 = vpop.permute.xlu0 %2438 }
 0x169   :  { %550 = vst [vmem:[#allocation2 + $0x40] sm:$0xff] %v6604_v23  ;;  %548 = vst [vmem:[#allocation2 + $0x30] sm:$0xff] %v6606_v49  ;;  %v6677_v23 = vmax.f32 %v5549_v62, 0.0  ;;  %v447_v33 = vmul.f32 %v5485_v19, %v429_v53  ;;  %v449_v44 = vmul.f32 %v5485_v19, %v431_v31  ;;  %v428_v4 = vsub.f32 %v5343_v9, %v5448_v0 }
 0x16a   :  { %551 = vst [vmem:[#allocation2 + $0x48] sm:$0xff] %v6605_v45  ;;  %552 = vst [vmem:[#allocation2 + $0x50] sm:$0xff] %v6675_v12  ;;  %v480_v45 = vmul.f32 %v5490_v27, %v457_v11  ;;  %v481_v49 = vmul.f32 %v5490_v27, %v458_v16  ;;  %v482_v12 = vmul.f32 %v5490_v27, %v459_v42 }
 0x16b   :  { %553 = vst [vmem:[#allocation2 + $0x58] sm:$0xff] %v6676_v61  ;;  %554 = vst [vmem:[#allocation2 + $0x60] sm:$0xff] %v6677_v23  ;;  %v484_v61 = vmul.f32 %v5490_v27, %v461_v59  ;;  %v471_v23 = vmul.f32 %v5490_v27, %v448_v55  ;;  %v470_v50 = vmul.f32 %v5490_v27, %v447_v33 }
 0x16c   :  { %v472_v53 = vmul.f32 %v5490_v27, %v449_v44  ;;  %v446_v31 = vmul.f32 %v5485_v19, %v428_v4  ;;  %v5595_v9 = vadd.f32 %v5511_v46, %v480_v45  ;;  %v5598_v0 = vadd.f32 %v5511_v46, %v481_v49 }
 0x16d   :  { %v5601_v16 = vadd.f32 %v5511_v46, %v482_v12  ;;  %v507_v59 = vadd.f32 %v5511_v46, %v484_v61  ;;  %v494_v42 = vadd.f32 %v5511_v46, %v471_v23  ;;  %v493_v11 = vadd.f32 %v5511_v46, %v470_v50  ;;  %v5622_v50 = vpop.permute.xlu1 %2147 }
 0x16e   :  { %v495_v55 = vadd.f32 %v5511_v46, %v472_v53  ;;  %v469_v19 = vmul.f32 %v5490_v27, %v446_v31  ;;  %v519_v33 = vmax.f32 %v5595_v9, 0.0  ;;  %v6608_v45 = vmax.f32 %v5598_v0, 0.0  ;;  %v1271_v9 = vld [vmem:[%s6598_s6 + $0x118] sm:$0xff] }
 0x16f   :  { %v6607_v49 = vmax.f32 %v5601_v16, 0.0  ;;  %v523_v44 = vmax.f32 %v507_v59, 0.0  ;;  %v510_v4 = vmax.f32 %v494_v42, 0.0  ;;  %v509_v12 = vmax.f32 %v493_v11, 0.0  ;;  %v5636_v42 = vpop.permute.xlu0 %2142 }
 0x170   :  { %v511_v47 = vmax.f32 %v495_v55, 0.0  ;;  %555 = vst [vmem:[#allocation2 + $0x68] sm:$0xff] %v519_v33  ;;  %556 = vst [vmem:[#allocation2 + $0x70] sm:$0xff] %v6608_v45  ;;  %v492_v27 = vadd.f32 %v5511_v46, %v469_v19 }
 0x171   :  { %557 = vst [vmem:[#allocation2 + $0x78] sm:$0xff] %v6607_v49  ;;  %559 = vst [vmem:[#allocation2 + $0x88] sm:$0xff] %v523_v44  ;;  %v5618_v61 = vld [vmem:[#allocation2 + $0x4f] sm:$0xff]  ;;  %v5620_v23 = vld [vmem:[#allocation2 + $0x47] sm:$0xff]  ;;  %v2454_v44 = vpop.permute.xlu1 %2453 }
 0x172   :  { %546 = vst [vmem:[#allocation2 + $0x20] sm:$0xff] %v510_v4  ;;  %545 = vst [vmem:[#allocation2 + $0x18] sm:$0xff] %v509_v12  ;;  %v5626_v53 = vmul.f32 %v5492_v28, %v5618_v61  ;;  %v5630_v31 = vmul.f32 %v5506_v15, %v5620_v23  ;;  %v5632_v59 = vld [vmem:[#allocation2 + $0x5f] sm:$0xff]  ;;  %v5634_v46 = vld [vmem:[#allocation2 + $0x57] sm:$0xff]  ;;  %v5644_v19 = vmax.f32 %v492_v27, 0.0  ;;  %v819_v28 = vmul.f32 %v4938_v48, %v509_v12 }
 0x173   :  { %547 = vst [vmem:[#allocation2 + $0x28] sm:$0xff] %v511_v47  ;;  %v5639_v11 = vmul.f32 %v2444_v5, %v5632_v59  ;;  %v5642_v55 = vmul.f32 %v2439_v32, %v5634_v46  ;;  %v1282_v5 = vld [vmem:[%s6598_s6 + $0x170] sm:$0xff]  ;;  %v2449_v32 = vpop.permute.xlu0 %2448  ;;  %v820_v12 = vmul.f32 %v4936_v6, %v510_v4 }
 0x174   :  { %544 = vst [vmem:[#allocation2 + $0x10] sm:$0xff] %v5644_v19  ;;  %v818_v15 = vmul.f32 %v4928_v35, %v5644_v19  ;;  %v1281_v35 = vld [vmem:[%s6598_s6 + $0x168] sm:$0xff] }
 0x176   :  { %3843 = vmatmul.mubr.f32.vlgmr.msra.gmra.mxu1 %v818_v15  ;;  %v1280_v15 = vld [vmem:[%s6598_s6 + $0x160] sm:$0xff] }
 0x177   :  { %v5650_v49 = vld [vmem:[#allocation2 + $0x6f] sm:$0xff]  ;;  %v5658_v27 = vld [vmem:[#allocation2 + $0x67] sm:$0xff]  ;;  %3923 = vmatpush3.msra.mxu1 %v5276_v38  ;;  %3845 = vmatprep.mubr.f32.mxu1 %v819_v28  ;;  %v1279_v28 = vld [vmem:[%s6598_s6 + $0x158] sm:$0xff] }
 0x178   :  { %v5656_v45 = vmul.f32 %v2454_v44, %v5650_v49  ;;  %v5661_v48 = vmul.f32 %v2449_v32, %v5658_v27  ;;  %3924 = vmatprep.subr.mxu1 %v1282_v5  ;;  %v821_v44 = vmul.f32 %v4948_v52, %v511_v47  ;;  %v1588_v47 = vld [vmem:[%s6598_s6 + $0x1f0] sm:$0xff] }
 0x179   :  { %3925 = vmatpush3.msra.mxu1 %v1282_v5  ;;  %v5686_v4 = vld [vmem:[#allocation2 + $0x1f] sm:$0xff] }
 0x17a   :  { %3926 = vmatprep.subr.mxu1 %v1281_v35  ;;  %3846 = vmatmul.mubr.f32.gmra.mxu1 %v820_v12  ;;  %v5688_v5 = vld [vmem:[#allocation2 + $0x27] sm:$0xff] }
 0x17b   :  { %v5672_v32 = vld [vmem:[#allocation2 + $0xf] sm:$0xff]  ;;  %v5674_v38 = vld [vmem:[#allocation2 + $0x17] sm:$0xff]  ;;  %3927 = vmatpush3.msra.mxu1 %v1281_v35  ;;  %3848 = vmatprep.mubr.f32.mxu1 %v821_v44  ;;  %v6678_v35 = vmax.f32 %v5535_v20, 0.0  ;;  %v676_v44 = vmul.f32 %v4870_v22, %v5688_v5 }
 0x17c   :  { %v673_v6 = vmul.f32 %v4860_v14, %v5672_v32  ;;  %v674_v52 = vmul.f32 %v4850_v8, %v5674_v38  ;;  %3928 = vmatprep.subr.mxu1 %v1280_v15  ;;  %v1587_v8 = vld [vmem:[%s6598_s6 + $0x1e8] sm:$0xff]  ;;  %v675_v14 = vmul.f32 %v4858_v13, %v5686_v4  ;;  %v1278_v13 = vld [vmem:[%s6598_s6 + $0x150] sm:$0xff]  ;;  %v1585_v22 = vld [vmem:[%s6598_s6 + $0x1d8] sm:$0xff] }
 0x17d   :  { %3929 = vmatpush3.msra.mxu1 %v1280_v15  ;;  %v822_v12 = vmul.f32 %v4946_v51, %v6678_v35  ;;  %v1586_v51 = vld [vmem:[%s6598_s6 + $0x1e0] sm:$0xff]  ;;  %v5704_v20 = vld [vmem:[#allocation2 + $0x2f] sm:$0xff]  ;;  %v6679_v15 = vmax.f32 %v5529_v58, 0.0 }
 0x17e   :  { %3899 = vmatmul.mubr.f32.vlgmr.msra.gmra.mxu0 %v673_v6  ;;  %3930 = vmatprep.subr.mxu1 %v1279_v28 }
 0x17f   :  { %3901 = vmatprep.mubr.f32.mxu0 %v674_v52  ;;  %3979 = vmatpush3.msra.mxu0 %v5286_v24  ;;  %v2367_v24 = vld [vmem:[#allocation2 + $0x37] sm:$0xff]  ;;  %v823_v6 = vmul.f32 %v4958_v57, %v6679_v15  ;;  %v2368_v52 = vld [vmem:[#allocation2 + $0x3f] sm:$0xff]  ;;  %v829_v15 = vmul.f32 %v4988_v3, %v519_v33 }
 0x180   :  { %3980 = vmatprep.subr.mxu0 %v1588_v47  ;;  %3849 = vmatmul.mubr.f32.gmra.mxu1 %v822_v12  ;;  %v678_v58 = vmul.f32 %v2367_v24, %v4880_v26  ;;  %v1584_v57 = vld [vmem:[%s6598_s6 + $0x1d0] sm:$0xff]  ;;  %v679_v26 = vmul.f32 %v2368_v52, %v4878_v25  ;;  %v1583_v12 = vld [vmem:[%s6598_s6 + $0x1c8] sm:$0xff]  ;;  %v1582_v25 = vld [vmem:[%s6598_s6 + $0x1c0] sm:$0xff] }
 0x181   :  { %3981 = vmatpush3.msra.mxu0 %v1588_v47  ;;  %3931 = vmatpush3.msra.mxu1 %v1279_v28  ;;  %v677_v28 = vmul.f32 %v4868_v18, %v5704_v20  ;;  %v1277_v47 = vld [vmem:[%s6598_s6 + $0x148] sm:$0xff]  ;;  %v6680_v18 = vmax.f32 %v5532_v10, 0.0  ;;  %v1275_v10 = vld [vmem:[%s6598_s6 + $0x138] sm:$0xff] }
 0x182   :  { %3902 = vmatmul.mubr.f32.gmra.mxu0 %v675_v14  ;;  %3982 = vmatprep.subr.mxu0 %v1587_v8  ;;  %v2375_v3 = vld [vmem:[#allocation2 + $0x77] sm:$0xff] }
 0x183   :  { %3904 = vmatprep.mubr.f32.mxu0 %v676_v44  ;;  %3983 = vmatpush3.msra.mxu0 %v1587_v8  ;;  %v824_v35 = vmul.f32 %v4956_v56, %v6680_v18  ;;  %v6681_v8 = vmax.f32 %v5538_v34, 0.0  ;;  %v680_v44 = vmul.f32 %v5620_v23, %v4890_v30  ;;  %v1276_v56 = vld [vmem:[%s6598_s6 + $0x140] sm:$0xff]  ;;  %v6682_v30 = vmax.f32 %v5541_v17, 0.0  ;;  %v1581_v23 = vld [vmem:[%s6598_s6 + $0x1b8] sm:$0xff] }
 0x184   :  { %3984 = vmatprep.subr.mxu0 %v1586_v51  ;;  %3851 = vmatprep.mubr.f32.mxu1 %v823_v6  ;;  %v681_v34 = vmul.f32 %v5618_v61, %v4888_v29  ;;  %v682_v17 = vmul.f32 %v5634_v46, %v4900_v37  ;;  %v1580_v29 = vld [vmem:[%s6598_s6 + $0x1b0] sm:$0xff]  ;;  %v6684_v37 = vmax.f32 %v5549_v62, 0.0  ;;  %v683_v61 = vmul.f32 %v5632_v59, %v4898_v36  ;;  %v1579_v46 = vld [vmem:[%s6598_s6 + $0x1a8] sm:$0xff]  ;;  %v1578_v36 = vld [vmem:[%s6598_s6 + $0x1a0] sm:$0xff] }
 0x185   :  { %3985 = vmatpush3.msra.mxu0 %v1586_v51  ;;  %3932 = vmatprep.subr.mxu1 %v1278_v13  ;;  %v825_v14 = vmul.f32 %v4968_v60, %v6681_v8  ;;  %v826_v60 = vmul.f32 %v4966_v43, %v6682_v30  ;;  %v6683_v51 = vmax.f32 %v5546_v2, 0.0  ;;  %v1274_v43 = vld [vmem:[%s6598_s6 + $0x130] sm:$0xff]  ;;  %v1273_v2 = vld [vmem:[%s6598_s6 + $0x128] sm:$0xff]  ;;  %v684_v62 = vmul.f32 %v5658_v27, %v4910_v40  ;;  %v1577_v27 = vld [vmem:[%s6598_s6 + $0x198] sm:$0xff] }
 0x186   :  { %3905 = vmatmul.mubr.f32.gmra.mxu0 %v677_v28  ;;  %3986 = vmatprep.subr.mxu0 %v1585_v22  ;;  %v6685_v40 = vmax.f32 %v5598_v0, 0.0  ;;  %v685_v59 = vmul.f32 %v5650_v49, %v4908_v39  ;;  %v6686_v6 = vmax.f32 %v5601_v16, 0.0  ;;  %v6688_v28 = vld [vmem:[#allocation4_spill] sm:$0xff]  ;;  %v2376_v0 = vld [vmem:[#allocation2 + $0x7f] sm:$0xff]  ;;  %v1576_v39 = vld [vmem:[%s6598_s6 + $0x190] sm:$0xff] }
 0x187   :  { %3907 = vmatprep.mubr.f32.mxu0 %v678_v58  ;;  %3987 = vmatpush3.msra.mxu0 %v1585_v22  ;;  %v827_v24 = vmul.f32 %v4978_v1, %v6683_v51  ;;  %v828_v1 = vmul.f32 %v4976_v63, %v6684_v37  ;;  %v1272_v63 = vld [vmem:[%s6598_s6 + $0x120] sm:$0xff]  ;;  %v686_v52 = vmul.f32 %v2375_v3, %v6688_v28  ;;  %v1269_v16 = vld [vmem:[%s6598_s6 + $0x108] sm:$0xff]  ;;  %v6689_v58 = vmax.f32 %v5526_v54, 0.0  ;;  %v2201_v51 = vld [vmem:[%s6598_s6 + $0x2f8] sm:$0xff] }
 0x188   :  { %3933 = vmatpush3.msra.mxu1 %v1278_v13  ;;  %3988 = vmatprep.subr.mxu0 %v1584_v57  ;;  %v830_v33 = vmul.f32 %v4986_v21, %v6685_v40  ;;  %v6687_v13 = vld [vmem:[#allocation6_spill] sm:$0xff]  ;;  %v1270_v21 = vld [vmem:[%s6598_s6 + $0x110] sm:$0xff]  ;;  %v6691_v18 = vld [vmem:[#allocation3_spill] sm:$0xff] }
 0x189   :  { %3934 = vmatprep.subr.mxu1 %v1277_v47  ;;  %3989 = vmatpush3.msra.mxu0 %v1584_v57  ;;  %v831_v22 = vmul.f32 %v6687_v13, %v6686_v6  ;;  %v1139_v49 = vld [vmem:[#allocation2 + $0x9] sm:$0xff]  ;;  %v5831_v30 = vld [vmem:[#allocation2 + $0x19] sm:$0xff]  ;;  %v5847_v37 = vld [vmem:[#allocation2 + $0x21] sm:$0xff] }
 0x18a   :  { %3852 = vmatmul.mubr.f32.gmra.mxu1 %v824_v35  ;;  %3908 = vmatmul.mubr.f32.gmra.mxu0 %v679_v26  ;;  %v6690_v57 = vld [vmem:[#allocation5_spill] sm:$0xff]  ;;  %v687_v35 = vmul.f32 %v2376_v0, %v6691_v18  ;;  %v1575_v26 = vld [vmem:[%s6598_s6 + $0x188] sm:$0xff]  ;;  %v1891_v6 = vld [vmem:[%s6598_s6 + $0x258] sm:$0xff] }
 0x18b   :  { %3935 = vmatpush3.msra.mxu1 %v1277_v47  ;;  %3990 = vmatprep.subr.mxu0 %v1583_v12  ;;  %v832_v47 = vmul.f32 %v6690_v57, %v6689_v58  ;;  %v6692_v8 = vld [vmem:[#allocation8_spill] sm:$0xff]  ;;  %v1451_v13 = vld [vmem:[#allocation2 + $0x3f] sm:$0xff]  ;;  %v1890_v57 = vld [vmem:[%s6598_s6 + $0x250] sm:$0xff] }
 0x18c   :  { %3854 = vmatprep.mubr.f32.mxu1 %v825_v14  ;;  %3910 = vmatprep.mubr.f32.mxu0 %v680_v44  ;;  %v1252_v14 = vmul.f32 %v6692_v8, %v1139_v49  ;;  %v6693_v54 = vld [vmem:[#allocation24_spill] sm:$0xff]  ;;  %v2197_v0 = vld [vmem:[%s6598_s6 + $0x2d8] sm:$0xff] }
 0x18d   :  { %3936 = vmatprep.subr.mxu1 %v1276_v56  ;;  %3991 = vmatpush3.msra.mxu0 %v1583_v12  ;;  %v1268_v12 = vld [vmem:[%s6598_s6 + $0x100] sm:$0xff]  ;;  %v1558_v44 = vmul.f32 %v6693_v54, %v5672_v32  ;;  %v6701_v3 = vld [vmem:[#allocation28_spill] sm:$0xff]  ;;  %v6705_v49 = vld [vmem:[#allocation30_spill] sm:$0xff] }
 0x18e   :  { %3937 = vmatpush3.msra.mxu1 %v1276_v56  ;;  %3992 = vmatprep.subr.mxu0 %v1582_v25  ;;  %v1574_v56 = vld [vmem:[%s6598_s6 + $0x180] sm:$0xff]  ;;  %v1562_v40 = vmul.f32 %v6701_v3, %v5704_v20  ;;  %v1564_v58 = vmul.f32 %v6705_v49, %v1451_v13  ;;  %v1147_v8 = vld [vmem:[#allocation2 + $0x49] sm:$0xff] }
 0x18f   :  { %3938 = vmatprep.subr.mxu1 %v1275_v10  ;;  %3993 = vmatpush3.msra.mxu0 %v1582_v25  ;;  %v5826_v25 = vld [vmem:[#allocation2 + $0x11] sm:$0xff]  ;;  %v6694_v32 = vld [vmem:[#allocation7_spill] sm:$0xff] }
 0x190   :  { %3855 = vmatmul.mubr.f32.gmra.mxu1 %v826_v60  ;;  %3911 = vmatmul.mubr.f32.gmra.mxu0 %v681_v34  ;;  %v1253_v60 = vmul.f32 %v6694_v32, %v5826_v25  ;;  %v6695_v34 = vld [vmem:[#allocation23_spill] sm:$0xff]  ;;  %v6706_v54 = vld [vmem:[#allocation13_spill] sm:$0xff]  ;;  %v2195_v32 = vld [vmem:[%s6598_s6 + $0x2c8] sm:$0xff] }
 0x191   :  { %3939 = vmatpush3.msra.mxu1 %v1275_v10  ;;  %3994 = vmatprep.subr.mxu0 %v1581_v23  ;;  %v1895_v10 = vld [vmem:[%s6598_s6 + $0x278] sm:$0xff]  ;;  %v1146_v18 = vld [vmem:[#allocation2 + $0x41] sm:$0xff] }
 0x192   :  { %3857 = vmatprep.mubr.f32.mxu1 %v827_v24  ;;  %3913 = vmatprep.mubr.f32.mxu0 %v682_v17  ;;  %v6696_v24 = vld [vmem:[#allocation10_spill] sm:$0xff]  ;;  %v1456_v13 = vld [vmem:[#allocation2 + $0x67] sm:$0xff] }
 0x193   :  { %3940 = vmatprep.subr.mxu1 %v1274_v43  ;;  %3995 = vmatpush3.msra.mxu0 %v1581_v23  ;;  %v1559_v23 = vmul.f32 %v6695_v34, %v5674_v38  ;;  %v1254_v17 = vmul.f32 %v5831_v30, %v6696_v24  ;;  %v2200_v38 = vld [vmem:[%s6598_s6 + $0x2f0] sm:$0xff]  ;;  %v1145_v20 = vld [vmem:[#allocation2 + $0x39] sm:$0xff]  ;;  %v6708_v34 = vld [vmem:[#allocation16_spill] sm:$0xff] }
 0x194   :  { %3941 = vmatpush3.msra.mxu1 %v1274_v43  ;;  %3996 = vmatprep.subr.mxu0 %v1580_v29  ;;  %v6697_v43 = vld [vmem:[#allocation26_spill] sm:$0xff] }
 0x195   :  { %3942 = vmatprep.subr.mxu1 %v1273_v2  ;;  %3997 = vmatpush3.msra.mxu0 %v1580_v29  ;;  %v1560_v29 = vmul.f32 %v6697_v43, %v5686_v4  ;;  %v6698_v4 = vld [vmem:[#allocation9_spill] sm:$0xff]  ;;  %v2194_v43 = vld [vmem:[%s6598_s6 + $0x2c0] sm:$0xff] }
 0x196   :  { %3858 = vmatmul.mubr.f32.gmra.mxu1 %v828_v1  ;;  %3914 = vmatmul.mubr.f32.gmra.mxu0 %v683_v61  ;;  %v1893_v1 = vld [vmem:[%s6598_s6 + $0x268] sm:$0xff] }
 0x197   :  { %3943 = vmatpush3.msra.mxu1 %v1273_v2  ;;  %3998 = vmatprep.subr.mxu0 %v1579_v46  ;;  %v1894_v2 = vld [vmem:[%s6598_s6 + $0x270] sm:$0xff] }
 0x198   :  { %3860 = vmatprep.mubr.f32.mxu1 %v829_v15  ;;  %3916 = vmatprep.mubr.f32.mxu0 %v684_v62  ;;  %v5855_v61 = vld [vmem:[#allocation2 + $0x29] sm:$0xff] }
 0x199   :  { %3944 = vmatprep.subr.mxu1 %v1272_v63  ;;  %3999 = vmatpush3.msra.mxu0 %v1579_v46  ;;  %v1255_v46 = vmul.f32 %v5847_v37, %v6698_v4  ;;  %v6699_v15 = vld [vmem:[#allocation25_spill] sm:$0xff]  ;;  %v1149_v4 = vld [vmem:[#allocation2 + $0x59] sm:$0xff] }
 0x19a   :  { %3945 = vmatpush3.msra.mxu1 %v1272_v63  ;;  %4000 = vmatprep.subr.mxu0 %v1578_v36  ;;  %v1561_v62 = vmul.f32 %v6699_v15, %v5688_v5  ;;  %v2199_v63 = vld [vmem:[%s6598_s6 + $0x2e8] sm:$0xff]  ;;  %v2198_v5 = vld [vmem:[%s6598_s6 + $0x2e0] sm:$0xff] }
 0x19b   :  { %3946 = vmatprep.subr.mxu1 %v1271_v9  ;;  %4001 = vmatpush3.msra.mxu0 %v1578_v36  ;;  %v6700_v36 = vld [vmem:[#allocation12_spill] sm:$0xff]  ;;  %v6710_v15 = vld [vmem:[#allocation15_spill] sm:$0xff] }
 0x19c   :  { %3861 = vmatmul.mubr.f32.gmra.mxu1 %v830_v33  ;;  %3917 = vmatmul.mubr.f32.gmra.mxu0 %v685_v59  ;;  %v1892_v33 = vld [vmem:[%s6598_s6 + $0x260] sm:$0xff]  ;;  %v1144_v59 = vld [vmem:[#allocation2 + $0x31] sm:$0xff] }
 0x19d   :  { %3947 = vmatpush3.msra.mxu1 %v1271_v9  ;;  %4002 = vmatprep.subr.mxu0 %v1577_v27  ;;  %v1256_v9 = vmul.f32 %v5855_v61, %v6700_v36 }
 0x19e   :  { %3863 = vmatprep.mubr.f32.mxu1 %v831_v22  ;;  %3919 = vmatprep.mubr.f32.mxu0 %v686_v52  ;;  %v6702_v22 = vld [vmem:[#allocation11_spill] sm:$0xff] }
 0x19f   :  { %3948 = vmatprep.subr.mxu1 %v1270_v21  ;;  %4003 = vmatpush3.msra.mxu0 %v1577_v27  ;;  %v1450_v27 = vld [vmem:[#allocation2 + $0x37] sm:$0xff]  ;;  %v1257_v28 = vmul.f32 %v6702_v22, %v1144_v59  ;;  %v6703_v52 = vld [vmem:[#allocation27_spill] sm:$0xff] }
 0x1a0   :  { %3949 = vmatpush3.msra.mxu1 %v1270_v21  ;;  %4004 = vmatprep.subr.mxu0 %v1576_v39  ;;  %v1563_v21 = vmul.f32 %v6703_v52, %v1450_v27  ;;  %v1886_v27 = vld [vmem:[%s6598_s6 + $0x230] sm:$0xff] }
 0x1a1   :  { %3950 = vmatprep.subr.mxu1 %v1269_v16  ;;  %4005 = vmatpush3.msra.mxu0 %v1576_v39  ;;  %v6704_v39 = vld [vmem:[#allocation14_spill] sm:$0xff]  ;;  %v1151_v52 = vld [vmem:[#allocation2 + $0x69] sm:$0xff] }
 0x1a2   :  { %3864 = vmatmul.mubr.f32.gmra.mxu1 %v832_v47  ;;  %3920 = vmatmul.mubr.f32.gmra.mxu0 %v687_v35  ;;  %v2196_v47 = vld [vmem:[%s6598_s6 + $0x2d0] sm:$0xff]  ;;  %v1452_v35 = vld [vmem:[#allocation2 + $0x47] sm:$0xff] }
 0x1a3   :  { %3951 = vmatpush3.msra.mxu1 %v1269_v16  ;;  %4006 = vmatprep.subr.mxu0 %v1575_v26  ;;  %v1258_v16 = vmul.f32 %v6704_v39, %v1145_v20  ;;  %v1150_v20 = vld [vmem:[#allocation2 + $0x61] sm:$0xff] }
 0x1a4   :  { %3952 = vmatprep.subr.mxu1 %v1268_v12  ;;  %3954 = vmatprep.mubr.f32.mxu1 %v1252_v14  ;;  %v1453_v14 = vld [vmem:[#allocation2 + $0x4f] sm:$0xff] }
 0x1a5   :  { %4007 = vmatpush3.msra.mxu0 %v1575_v26  ;;  %4010 = vmatprep.mubr.f32.mxu0 %v1558_v44  ;;  %v5890_v26 = vpop.permute.xlu0 %2152  ;;  %v1259_v44 = vmul.f32 %v6706_v54, %v1146_v18  ;;  %v1152_v54 = vld [vmem:[#allocation2 + $0x71] sm:$0xff] }
 0x1a6   :  { %3953 = vmatpush3.msra.mxu1 %v1268_v12  ;;  %4008 = vmatprep.subr.mxu0 %v1574_v56  ;;  %v1889_v12 = vld [vmem:[%s6598_s6 + $0x248] sm:$0xff] }
 0x1a7   :  { %4009 = vmatpush3.msra.mxu0 %v1574_v56  ;;  %4034 = vmatprep.subr.mxu1 %v1895_v10  ;;  %v6707_v56 = vld [vmem:[#allocation29_spill] sm:$0xff] }
 0x1a8   :  { %3955 = vmatmul.mubr.f32.vlgmr.msra.gmra.mxu1 %v1253_v60  ;;  %4011 = vmatmul.mubr.f32.vlgmr.msra.gmra.mxu0 %v1559_v23  ;;  %v5900_v60 = vpop.permute.xlu1 %2157  ;;  %v1260_v23 = vmul.f32 %v6708_v34, %v1147_v8  ;;  %v1884_v8 = vld [vmem:[%s6598_s6 + $0x220] sm:$0xff] }
 0x1a9   :  { %4035 = vmatpush3.msra.mxu1 %v1895_v10  ;;  %4090 = vmatprep.subr.mxu0 %v2201_v51  ;;  %v1565_v10 = vmul.f32 %v6707_v56, %v1452_v35  ;;  %v6717_v35 = vld [vmem:[#allocation48_spill] sm:$0xff]  ;;  %v1459_v34 = vld [vmem:[#allocation2 + $0x7f] sm:$0xff] }
 0x1aa   :  { %3957 = vmatprep.mubr.f32.mxu1 %v1254_v17  ;;  %4013 = vmatprep.mubr.f32.mxu0 %v1560_v29  ;;  %v1888_v17 = vld [vmem:[%s6598_s6 + $0x240] sm:$0xff]  ;;  %v1148_v29 = vld [vmem:[#allocation2 + $0x51] sm:$0xff] }
 0x1ab   :  { %4036 = vmatprep.subr.mxu1 %v1894_v2  ;;  %4091 = vmatpush3.msra.mxu0 %v2201_v51  ;;  %v6709_v51 = vld [vmem:[#allocation40_spill] sm:$0xff] }
 0x1ac   :  { %4037 = vmatpush3.msra.mxu1 %v1894_v2  ;;  %4092 = vmatprep.subr.mxu0 %v2200_v38  ;;  %v1566_v24 = vmul.f32 %v6709_v51, %v1453_v14  ;;  %v1454_v2 = vld [vmem:[#allocation2 + $0x57] sm:$0xff]  ;;  %v5920_v3 = vpop.permute.xlu1 %2463  ;;  %v2190_v14 = vld [vmem:[%s6598_s6 + $0x2a0] sm:$0xff] }
 0x1ad   :  { %4038 = vmatprep.subr.mxu1 %v1893_v1  ;;  %4093 = vmatpush3.msra.mxu0 %v2200_v38  ;;  %v5910_v38 = vpop.permute.xlu0 %2458 }
 0x1ae   :  { %3958 = vmatmul.mubr.f32.gmra.mxu1 %v1255_v46  ;;  %4014 = vmatmul.mubr.f32.gmra.mxu0 %v1561_v62  ;;  %v1455_v46 = vld [vmem:[#allocation2 + $0x5f] sm:$0xff]  ;;  %v1261_v62 = vmul.f32 %v6710_v15, %v1148_v29  ;;  %v1882_v15 = vld [vmem:[%s6598_s6 + $0x210] sm:$0xff] }
 0x1af   :  { %4039 = vmatpush3.msra.mxu1 %v1893_v1  ;;  %4094 = vmatprep.subr.mxu0 %v2199_v63  ;;  %v1887_v1 = vld [vmem:[%s6598_s6 + $0x238] sm:$0xff] }
 0x1b0   :  { %3960 = vmatprep.mubr.f32.mxu1 %v1256_v9  ;;  %4016 = vmatprep.mubr.f32.mxu0 %v1562_v40  ;;  %v2193_v9 = vld [vmem:[%s6598_s6 + $0x2b8] sm:$0xff] }
 0x1b1   :  { %4040 = vmatprep.subr.mxu1 %v1892_v33  ;;  %4095 = vmatpush3.msra.mxu0 %v2199_v63  ;;  %v6711_v63 = vld [vmem:[#allocation39_spill] sm:$0xff]  ;;  %v6712_v40 = vld [vmem:[#allocation18_spill] sm:$0xff]  ;;  %v5930_v22 = vpop.permute.xlu0 %2162 }
 0x1b2   :  { %4041 = vmatpush3.msra.mxu1 %v1892_v33  ;;  %4096 = vmatprep.subr.mxu0 %v2198_v5  ;;  %v1567_v36 = vmul.f32 %v6711_v63, %v1454_v2  ;;  %v1262_v33 = vmul.f32 %v6712_v40, %v1149_v4  ;;  %v6720_v2 = vld [vmem:[#allocation22_spill] sm:$0xff]  ;;  %v6721_v4 = vld [vmem:[#allocation52_spill] sm:$0xff] }
 0x1b3   :  { %4042 = vmatprep.subr.mxu1 %v1891_v6  ;;  %4097 = vmatpush3.msra.mxu0 %v2198_v5  ;;  %v6713_v5 = vld [vmem:[#allocation44_spill] sm:$0xff] }
 0x1b4   :  { %3961 = vmatmul.mubr.f32.gmra.mxu1 %v1257_v28  ;;  %4017 = vmatmul.mubr.f32.gmra.mxu0 %v1563_v21  ;;  %v1568_v59 = vmul.f32 %v6713_v5, %v1455_v46  ;;  %v1885_v28 = vld [vmem:[%s6598_s6 + $0x228] sm:$0xff]  ;;  %v1572_v46 = vmul.f32 %v6721_v4, %v1459_v34 }
 0x1b5   :  { %4043 = vmatpush3.msra.mxu1 %v1891_v6  ;;  %4098 = vmatprep.subr.mxu0 %v2197_v0  ;;  %v2192_v6 = vld [vmem:[%s6598_s6 + $0x2b0] sm:$0xff]  ;;  %v5950_v56 = vpop.permute.xlu0 %2468  ;;  %v1154_v63 = vld [vmem:[#allocation2 + $0x81] sm:$0xff] }
 0x1b6   :  { %3963 = vmatprep.mubr.f32.mxu1 %v1258_v16  ;;  %4019 = vmatprep.mubr.f32.mxu0 %v1564_v58  ;;  %v1457_v21 = vld [vmem:[#allocation2 + $0x6f] sm:$0xff]  ;;  %v6715_v16 = vld [vmem:[#allocation43_spill] sm:$0xff] }
 0x1b7   :  { %4044 = vmatprep.subr.mxu1 %v1890_v57  ;;  %4099 = vmatpush3.msra.mxu0 %v2197_v0  ;;  %v6714_v0 = vld [vmem:[#allocation17_spill] sm:$0xff]  ;;  %v1569_v49 = vmul.f32 %v6715_v16, %v1456_v13  ;;  %v2191_v58 = vld [vmem:[%s6598_s6 + $0x2a8] sm:$0xff]  ;;  %v1752_v16 = vld [vmem:[#allocation2 + $0x18] sm:$0xff] }
 0x1b8   :  { %4045 = vmatpush3.msra.mxu1 %v1890_v57  ;;  %4100 = vmatprep.subr.mxu0 %v2196_v47  ;;  %v1263_v39 = vmul.f32 %v6714_v0, %v1150_v20  ;;  %v5940_v57 = vpop.permute.xlu1 %2167  ;;  %v1881_v40 = vld [vmem:[%s6598_s6 + $0x208] sm:$0xff]  ;;  %v1880_v20 = vld [vmem:[%s6598_s6 + $0x200] sm:$0xff] }
 0x1b9   :  { %4046 = vmatprep.subr.mxu1 %v1889_v12  ;;  %4101 = vmatpush3.msra.mxu0 %v2196_v47  ;;  %v6716_v47 = vld [vmem:[#allocation20_spill] sm:$0xff] }
 0x1ba   :  { %3964 = vmatmul.mubr.f32.gmra.mxu1 %v1259_v44  ;;  %4020 = vmatmul.mubr.f32.gmra.mxu0 %v1565_v10  ;;  %v1264_v18 = vmul.f32 %v6716_v47, %v1151_v52  ;;  %v1458_v44 = vld [vmem:[#allocation2 + $0x77] sm:$0xff]  ;;  %v6726_v47 = vld [vmem:[#allocation31_spill] sm:$0xff] }
 0x1bb   :  { %4047 = vmatpush3.msra.mxu1 %v1889_v12  ;;  %4102 = vmatprep.subr.mxu0 %v2195_v32  ;;  %v1570_v12 = vmul.f32 %v6717_v35, %v1457_v21  ;;  %v1883_v10 = vld [vmem:[%s6598_s6 + $0x218] sm:$0xff]  ;;  %v6725_v21 = vld [vmem:[#allocation56_spill] sm:$0xff] }
 0x1bc   :  { %3966 = vmatprep.mubr.f32.mxu1 %v1260_v23  ;;  %4022 = vmatprep.mubr.f32.mxu0 %v1566_v24  ;;  %v6718_v23 = vld [vmem:[#allocation19_spill] sm:$0xff]  ;;  %v5960_v29 = vpop.permute.xlu1 %2473  ;;  %v2170_v0 = vmul.f32 %v6725_v21, %v5826_v25  ;;  %v1865_v25 = vmul.f32 %v6726_v47, %v1752_v16  ;;  %v2809_v21 = vld [vmem:[%s6598_s6 + $0x3d8] sm:$0xff]  ;;  %v2502_v47 = vld [vmem:[%s6598_s6 + $0x350] sm:$0xff] }
 0x1bd   :  { %4048 = vmatprep.subr.mxu1 %v1888_v17  ;;  %4103 = vmatpush3.msra.mxu0 %v2195_v32  ;;  %v1153_v32 = vld [vmem:[#allocation2 + $0x79] sm:$0xff]  ;;  %v1265_v51 = vmul.f32 %v6718_v23, %v1152_v54  ;;  %v2505_v23 = vld [vmem:[%s6598_s6 + $0x368] sm:$0xff] }
 0x1be   :  { %4049 = vmatpush3.msra.mxu1 %v1888_v17  ;;  %4104 = vmatprep.subr.mxu0 %v2194_v43  ;;  %v6719_v24 = vld [vmem:[#allocation47_spill] sm:$0xff] }
 0x1bf   :  { %4050 = vmatprep.subr.mxu1 %v1887_v1  ;;  %4105 = vmatpush3.msra.mxu0 %v2194_v43  ;;  %v1571_v17 = vmul.f32 %v6719_v24, %v1458_v44  ;;  %v2189_v43 = vld [vmem:[%s6598_s6 + $0x298] sm:$0xff]  ;;  %v2172_v44 = vmul.f32 %v5847_v37, %v5442_v41  ;;  %v6729_v24 = vld [vmem:[#allocation33_spill] sm:$0xff] }
 0x1c0   :  { %3967 = vmatmul.mubr.f32.gmra.mxu1 %v1261_v62  ;;  %4023 = vmatmul.mubr.f32.gmra.mxu0 %v1567_v36  ;;  %v2188_v62 = vld [vmem:[%s6598_s6 + $0x290] sm:$0xff]  ;;  %v1460_v36 = vld [vmem:[#allocation2 + $0x87] sm:$0xff]  ;;  %v5983_v13 = vpop.permute.xlu1 %2709 }
 0x1c1   :  { %4051 = vmatpush3.msra.mxu1 %v1887_v1  ;;  %4106 = vmatprep.subr.mxu0 %v2193_v9  ;;  %v1266_v1 = vmul.f32 %v6720_v2, %v1153_v32  ;;  %v1754_v32 = vld [vmem:[#allocation2 + $0x28] sm:$0xff]  ;;  %v6019_v41 = vld [vmem:[#allocation2 + $0x31] sm:$0xff] }
 0x1c2   :  { %3969 = vmatprep.mubr.f32.mxu1 %v1262_v33  ;;  %4025 = vmatprep.mubr.f32.mxu0 %v1568_v59  ;;  %v6722_v33 = vld [vmem:[#allocation21_spill] sm:$0xff]  ;;  %v6723_v59 = vld [vmem:[#allocation51_spill] sm:$0xff]  ;;  %v2811_v2 = vld [vmem:[%s6598_s6 + $0x3e8] sm:$0xff] }
 0x1c3   :  { %4052 = vmatprep.subr.mxu1 %v1886_v27  ;;  %4107 = vmatpush3.msra.mxu0 %v2193_v9  ;;  %v5970_v9 = vpop.permute.xlu0 %2704  ;;  %v1267_v5 = vmul.f32 %v6722_v33, %v1154_v63  ;;  %v2504_v63 = vld [vmem:[%s6598_s6 + $0x360] sm:$0xff] }
 0x1c4   :  { %4053 = vmatpush3.msra.mxu1 %v1886_v27  ;;  %4108 = vmatprep.subr.mxu0 %v2192_v6  ;;  %v1573_v27 = vmul.f32 %v6723_v59, %v1460_v36  ;;  %v2810_v36 = vld [vmem:[%s6598_s6 + $0x3e0] sm:$0xff] }
 0x1c5   :  { %4054 = vmatprep.subr.mxu1 %v1885_v28  ;;  %4109 = vmatpush3.msra.mxu0 %v2192_v6  ;;  %v2187_v6 = vld [vmem:[%s6598_s6 + $0x288] sm:$0xff] }
 0x1c6   :  { %3970 = vmatmul.mubr.f32.gmra.mxu1 %v1263_v39  ;;  %4026 = vmatmul.mubr.f32.gmra.mxu0 %v1569_v49  ;;  %v2186_v39 = vld [vmem:[%s6598_s6 + $0x280] sm:$0xff] }
 0x1c7   :  { %4055 = vmatpush3.msra.mxu1 %v1885_v28  ;;  %4110 = vmatprep.subr.mxu0 %v2191_v58  ;;  %v6724_v28 = vld [vmem:[#allocation32_spill] sm:$0xff]  ;;  %v5992_v49 = vpop.permute.xlu0 %3010 }
 0x1c8   :  { %3972 = vmatprep.mubr.f32.mxu1 %v1264_v18  ;;  %4028 = vmatprep.mubr.f32.mxu0 %v1570_v12  ;;  %v1864_v52 = vmul.f32 %v6724_v28, %v5644_v19  ;;  %v1753_v19 = vld [vmem:[#allocation2 + $0x20] sm:$0xff]  ;;  %v2813_v12 = vld [vmem:[%s6598_s6 + $0x3f8] sm:$0xff] }
 0x1c9   :  { %4056 = vmatprep.subr.mxu1 %v1884_v8  ;;  %4111 = vmatpush3.msra.mxu0 %v2191_v58  ;;  %v2507_v58 = vld [vmem:[%s6598_s6 + $0x378] sm:$0xff]  ;;  %v6727_v18 = vld [vmem:[#allocation55_spill] sm:$0xff] }
 0x1ca   :  { %4057 = vmatpush3.msra.mxu1 %v1884_v8  ;;  %4112 = vmatprep.subr.mxu0 %v2190_v14  ;;  %v2171_v35 = vmul.f32 %v5831_v30, %v6727_v18  ;;  %v6003_v8 = vpop.permute.xlu1 %3015  ;;  %v2812_v30 = vld [vmem:[%s6598_s6 + $0x3f0] sm:$0xff]  ;;  %v6045_v59 = vld [vmem:[#allocation2 + $0x41] sm:$0xff] }
 0x1cb   :  { %4058 = vmatprep.subr.mxu1 %v1883_v10  ;;  %4113 = vmatpush3.msra.mxu0 %v2190_v14  ;;  %v6728_v14 = vld [vmem:[#allocation34_spill] sm:$0xff]  ;;  %v6014_v34 = vpop.permute.xlu0 %2714  ;;  %v6733_v28 = vld [vmem:[#allocation35_spill] sm:$0xff]  ;;  %v2808_v18 = vld [vmem:[%s6598_s6 + $0x3d0] sm:$0xff] }
 0x1cc   :  { %3973 = vmatmul.mubr.f32.gmra.mxu1 %v1265_v51  ;;  %4029 = vmatmul.mubr.f32.gmra.mxu0 %v1571_v17  ;;  %v1866_v54 = vmul.f32 %v6728_v14, %v1753_v19  ;;  %v1755_v51 = vld [vmem:[#allocation2 + $0x30] sm:$0xff]  ;;  %v1867_v17 = vmul.f32 %v6729_v24, %v1754_v32  ;;  %v2501_v14 = vld [vmem:[%s6598_s6 + $0x348] sm:$0xff] }
 0x1cd   :  { %4059 = vmatpush3.msra.mxu1 %v1883_v10  ;;  %4114 = vmatprep.subr.mxu0 %v2189_v43  ;;  %v2506_v10 = vld [vmem:[%s6598_s6 + $0x370] sm:$0xff]  ;;  %v6738_v24 = vld [vmem:[#allocation68_spill] sm:$0xff] }
 0x1ce   :  { %3975 = vmatprep.mubr.f32.mxu1 %v1266_v1  ;;  %4031 = vmatprep.mubr.f32.mxu0 %v1572_v46  ;;  %v6730_v1 = vld [vmem:[#allocation62_spill] sm:$0xff]  ;;  %v6029_v46 = vpop.permute.xlu1 %2719  ;;  %v6737_v32 = vld [vmem:[#allocation37_spill] sm:$0xff] }
 0x1cf   :  { %4060 = vmatprep.subr.mxu1 %v1882_v15  ;;  %4115 = vmatpush3.msra.mxu0 %v2189_v43  ;;  %v2173_v43 = vmul.f32 %v5855_v61, %v5440_v7  ;;  %v2174_v4 = vmul.f32 %v6730_v1, %v6019_v41  ;;  %v6035_v7 = vld [vmem:[#allocation2 + $0x39] sm:$0xff]  ;;  %v6040_v33 = vpop.permute.xlu0 %3020 }
 0x1d0   :  { %4061 = vmatpush3.msra.mxu1 %v1882_v15  ;;  %4116 = vmatprep.subr.mxu0 %v2188_v62  ;;  %v6731_v15 = vld [vmem:[#allocation36_spill] sm:$0xff] }
 0x1d1   :  { %4062 = vmatprep.subr.mxu1 %v1881_v40  ;;  %4117 = vmatpush3.msra.mxu0 %v2188_v62  ;;  %v1868_v62 = vmul.f32 %v6731_v15, %v1755_v51  ;;  %v2807_v51 = vld [vmem:[%s6598_s6 + $0x3c8] sm:$0xff]  ;;  %v6087_v15 = vld [vmem:[#allocation2 + $0x59] sm:$0xff] }
 0x1d2   :  { %3976 = vmatmul.mubr.f32.gmra.mxu1 %v1267_v5  ;;  %4032 = vmatmul.mubr.f32.gmra.mxu0 %v1573_v27  ;;  %v2503_v5 = vld [vmem:[%s6598_s6 + $0x358] sm:$0xff]  ;;  %v1757_v27 = vld [vmem:[#allocation2 + $0x40] sm:$0xff]  ;;  %v6055_v16 = vpop.permute.xlu1 %3025 }
 0x1d3   :  { %4063 = vmatpush3.msra.mxu1 %v1881_v40  ;;  %4118 = vmatprep.subr.mxu0 %v2187_v6  ;;  %v1756_v40 = vld [vmem:[#allocation2 + $0x38] sm:$0xff] }
 0x1d4   :  { %4064 = vmatprep.subr.mxu1 %v1880_v20  ;;  %4066 = vmatprep.mubr.f32.mxu1 %v1864_v52  ;;  %v1869_v52 = vmul.f32 %v6733_v28, %v1756_v40  ;;  %v2499_v40 = vld [vmem:[%s6598_s6 + $0x338] sm:$0xff]  ;;  %v6741_v28 = vld [vmem:[#allocation41_spill] sm:$0xff] }
 0x1d5   :  { %4119 = vmatpush3.msra.mxu0 %v2187_v6  ;;  %4122 = vmatprep.mubr.f32.mxu0 %v2170_v0  ;;  %v6732_v6 = vld [vmem:[#allocation61_spill] sm:$0xff]  ;;  %v6734_v0 = vld [vmem:[#allocation66_spill] sm:$0xff] }
 0x1d6   :  { %4065 = vmatpush3.msra.mxu1 %v1880_v20  ;;  %4120 = vmatprep.subr.mxu0 %v2186_v39  ;;  %v2175_v20 = vmul.f32 %v6732_v6, %v6035_v7  ;;  %v6740_v6 = vld [vmem:[#allocation67_spill] sm:$0xff] }
 0x1d7   :  { %4121 = vmatpush3.msra.mxu0 %v2186_v39  ;;  %4146 = vmatprep.subr.mxu1 %v2507_v58  ;;  %v2176_v39 = vmul.f32 %v6734_v0, %v6045_v59 }
 0x1d8   :  { %4067 = vmatmul.mubr.f32.vlgmr.msra.gmra.mxu1 %v1865_v25  ;;  %4123 = vmatmul.mubr.f32.vlgmr.msra.gmra.mxu0 %v2171_v35  ;;  %v6061_v25 = vld [vmem:[#allocation2 + $0x49] sm:$0xff] }
 0x1d9   :  { %4147 = vmatpush3.msra.mxu1 %v2507_v58  ;;  %4202 = vmatprep.subr.mxu0 %v2813_v12  ;;  %v6735_v58 = vld [vmem:[#allocation38_spill] sm:$0xff]  ;;  %v1758_v35 = vld [vmem:[#allocation2 + $0x48] sm:$0xff] }
 0x1da   :  { %4069 = vmatprep.mubr.f32.mxu1 %v1866_v54  ;;  %4125 = vmatprep.mubr.f32.mxu0 %v2172_v44  ;;  %v1870_v19 = vmul.f32 %v6735_v58, %v1757_v27  ;;  %v6071_v54 = vld [vmem:[#allocation2 + $0x51] sm:$0xff]  ;;  %v1761_v27 = vld [vmem:[#allocation2 + $0x60] sm:$0xff] }
 0x1db   :  { %4148 = vmatprep.subr.mxu1 %v2506_v10  ;;  %4203 = vmatpush3.msra.mxu0 %v2813_v12  ;;  %v6066_v12 = vpop.permute.xlu0 %2724  ;;  %v1759_v44 = vld [vmem:[#allocation2 + $0x50] sm:$0xff]  ;;  %v6742_v58 = vld [vmem:[#allocation46_spill] sm:$0xff] }
 0x1dc   :  { %4149 = vmatpush3.msra.mxu1 %v2506_v10  ;;  %4204 = vmatprep.subr.mxu0 %v2812_v30  ;;  %v6736_v10 = vld [vmem:[#allocation65_spill] sm:$0xff] }
 0x1dd   :  { %4150 = vmatprep.subr.mxu1 %v2505_v23  ;;  %4205 = vmatpush3.msra.mxu0 %v2812_v30  ;;  %v2177_v30 = vmul.f32 %v6736_v10, %v6061_v25  ;;  %v6123_v10 = vld [vmem:[#allocation2 + $0x71] sm:$0xff] }
 0x1de   :  { %4070 = vmatmul.mubr.f32.gmra.mxu1 %v1867_v17  ;;  %4126 = vmatmul.mubr.f32.gmra.mxu0 %v2173_v43  ;;  %v2178_v17 = vmul.f32 %v6738_v24, %v6071_v54  ;;  %v6081_v43 = vpop.permute.xlu1 %2729  ;;  %v2803_v24 = vld [vmem:[%s6598_s6 + $0x3a8] sm:$0xff] }
 0x1df   :  { %4151 = vmatpush3.msra.mxu1 %v2505_v23  ;;  %4206 = vmatprep.subr.mxu0 %v2811_v2  ;;  %v1871_v23 = vmul.f32 %v6737_v32, %v1758_v35  ;;  %v2804_v35 = vld [vmem:[%s6598_s6 + $0x3b0] sm:$0xff] }
 0x1e0   :  { %4072 = vmatprep.mubr.f32.mxu1 %v1868_v62  ;;  %4128 = vmatprep.mubr.f32.mxu0 %v2174_v4  ;;  %v2500_v4 = vld [vmem:[%s6598_s6 + $0x340] sm:$0xff] }
 0x1e1   :  { %4152 = vmatprep.subr.mxu1 %v2504_v63  ;;  %4207 = vmatpush3.msra.mxu0 %v2811_v2  ;;  %v6739_v2 = vld [vmem:[#allocation42_spill] sm:$0xff]  ;;  %v2806_v62 = vld [vmem:[%s6598_s6 + $0x3c0] sm:$0xff] }
 0x1e2   :  { %4153 = vmatpush3.msra.mxu1 %v2504_v63  ;;  %4208 = vmatprep.subr.mxu0 %v2810_v36  ;;  %v1872_v1 = vmul.f32 %v6739_v2, %v1759_v44  ;;  %v1760_v63 = vld [vmem:[#allocation2 + $0x58] sm:$0xff]  ;;  %v2497_v44 = vld [vmem:[%s6598_s6 + $0x328] sm:$0xff] }
 0x1e3   :  { %4154 = vmatprep.subr.mxu1 %v2503_v5  ;;  %4209 = vmatpush3.msra.mxu0 %v2810_v36  ;;  %v6092_v36 = vpop.permute.xlu0 %3030 }
 0x1e4   :  { %4073 = vmatmul.mubr.f32.gmra.mxu1 %v1869_v52  ;;  %4129 = vmatmul.mubr.f32.gmra.mxu0 %v2175_v20  ;;  %v2179_v20 = vmul.f32 %v6740_v6, %v6087_v15  ;;  %v1873_v52 = vmul.f32 %v6741_v28, %v1760_v63  ;;  %v2802_v63 = vld [vmem:[%s6598_s6 + $0x3a0] sm:$0xff] }
 0x1e5   :  { %4155 = vmatpush3.msra.mxu1 %v2503_v5  ;;  %4210 = vmatprep.subr.mxu0 %v2809_v21  ;;  %v6097_v5 = vld [vmem:[#allocation2 + $0x61] sm:$0xff] }
 0x1e6   :  { %4075 = vmatprep.mubr.f32.mxu1 %v1870_v19  ;;  %4131 = vmatprep.mubr.f32.mxu0 %v2176_v39  ;;  %v2180_v0 = vmul.f32 %v5636_v42, %v6097_v5  ;;  %v6107_v39 = vpop.permute.xlu1 %3035  ;;  %v1874_v19 = vmul.f32 %v6742_v58, %v1761_v27  ;;  %v2495_v27 = vld [vmem:[%s6598_s6 + $0x318] sm:$0xff]  ;;  %v6149_v6 = vld [vmem:[#allocation2 + $0x81] sm:$0xff] }
 0x1e7   :  { %4156 = vmatprep.subr.mxu1 %v2502_v47  ;;  %4211 = vmatpush3.msra.mxu0 %v2809_v21  ;;  %v2805_v21 = vld [vmem:[%s6598_s6 + $0x3b8] sm:$0xff]  ;;  %v6118_v42 = vpop.permute.xlu0 %2734  ;;  %v2184_v58 = vmul.f32 %v5930_v22, %v6149_v6  ;;  %v1766_v22 = vld [vmem:[#allocation2 + $0x88] sm:$0xff] }
 0x1e8   :  { %4157 = vmatpush3.msra.mxu1 %v2502_v47  ;;  %4212 = vmatprep.subr.mxu0 %v2808_v18  ;;  %v2498_v47 = vld [vmem:[%s6598_s6 + $0x330] sm:$0xff] }
 0x1e9   :  { %4158 = vmatprep.subr.mxu1 %v2501_v14  ;;  %4213 = vmatpush3.msra.mxu0 %v2808_v18  ;;  %v6113_v18 = vld [vmem:[#allocation2 + $0x69] sm:$0xff] }
 0x1ea   :  { %4076 = vmatmul.mubr.f32.gmra.mxu1 %v1871_v23  ;;  %4132 = vmatmul.mubr.f32.gmra.mxu0 %v2177_v30  ;;  %v1763_v30 = vld [vmem:[#allocation2 + $0x70] sm:$0xff]  ;;  %v2181_v32 = vmul.f32 %v5622_v50, %v6113_v18  ;;  %v6133_v2 = vpop.permute.xlu1 %2739  ;;  %v2496_v50 = vld [vmem:[%s6598_s6 + $0x320] sm:$0xff] }
 0x1eb   :  { %4159 = vmatpush3.msra.mxu1 %v2501_v14  ;;  %4214 = vmatprep.subr.mxu0 %v2807_v51  ;;  %v1762_v14 = vld [vmem:[#allocation2 + $0x68] sm:$0xff]  ;;  %v6743_v23 = vld [vmem:[#allocation45_spill] sm:$0xff] }
 0x1ec   :  { %4078 = vmatprep.mubr.f32.mxu1 %v1872_v1  ;;  %4134 = vmatprep.mubr.f32.mxu0 %v2178_v17  ;;  %v2182_v17 = vmul.f32 %v5890_v26, %v6123_v10  ;;  %v6744_v1 = vld [vmem:[#allocation50_spill] sm:$0xff]  ;;  %v6144_v26 = vpop.permute.xlu0 %3040 }
 0x1ed   :  { %4160 = vmatprep.subr.mxu1 %v2500_v4  ;;  %4215 = vmatpush3.msra.mxu0 %v2807_v51  ;;  %v1875_v51 = vmul.f32 %v6743_v23, %v1762_v14  ;;  %v6168_v14 = vld [vmem:[#allocation2 + $0x89] sm:$0xff]  ;;  %v2363_v23 = vld [vmem:[#allocation2 + $0x17] sm:$0xff] }
 0x1ee   :  { %4161 = vmatpush3.msra.mxu1 %v2500_v4  ;;  %4216 = vmatprep.subr.mxu0 %v2806_v62  ;;  %v1876_v4 = vmul.f32 %v6744_v1, %v1763_v30  ;;  %v2799_v1 = vld [vmem:[%s6598_s6 + $0x388] sm:$0xff] }
 0x1ef   :  { %4162 = vmatprep.subr.mxu1 %v2499_v40  ;;  %4217 = vmatpush3.msra.mxu0 %v2806_v62  ;;  %v6139_v62 = vld [vmem:[#allocation2 + $0x79] sm:$0xff] }
 0x1f0   :  { %4079 = vmatmul.mubr.f32.gmra.mxu1 %v1873_v52  ;;  %4135 = vmatmul.mubr.f32.gmra.mxu0 %v2179_v20  ;;  %v6151_v20 = vld [vmem:[#allocation2 + $0x80] sm:$0xff]  ;;  %v2183_v28 = vmul.f32 %v5900_v60, %v6139_v62  ;;  %v6745_v52 = vld [vmem:[#allocation49_spill] sm:$0xff]  ;;  %v6173_v30 = vpop.permute.xlu0 %2744 }
 0x1f1   :  { %4163 = vmatpush3.msra.mxu1 %v2499_v40  ;;  %4218 = vmatprep.subr.mxu0 %v2805_v21  ;;  %v1764_v40 = vld [vmem:[#allocation2 + $0x78] sm:$0xff] }
 0x1f2   :  { %4081 = vmatprep.mubr.f32.mxu1 %v1874_v19  ;;  %4137 = vmatprep.mubr.f32.mxu0 %v2180_v0  ;;  %v2801_v0 = vld [vmem:[%s6598_s6 + $0x398] sm:$0xff]  ;;  %v6161_v19 = vpop.permute.xlu1 %3045 }
 0x1f3   :  { %4164 = vmatprep.subr.mxu1 %v2498_v47  ;;  %4219 = vmatpush3.msra.mxu0 %v2805_v21  ;;  %v1877_v21 = vmul.f32 %v6745_v52, %v1764_v40  ;;  %v4322_v40 = vld [vmem:[#allocation2 + $0x18] sm:$0xff] }
 0x1f4   :  { %4165 = vmatpush3.msra.mxu1 %v2498_v47  ;;  %4220 = vmatprep.subr.mxu0 %v2804_v35  ;;  %v6746_v47 = vld [vmem:[#allocation54_spill] sm:$0xff] }
 0x1f5   :  { %4166 = vmatprep.subr.mxu1 %v2497_v44  ;;  %4221 = vmatpush3.msra.mxu0 %v2804_v35  ;;  %v1878_v60 = vmul.f32 %v6151_v20, %v6746_v47  ;;  %v2494_v35 = vld [vmem:[%s6598_s6 + $0x310] sm:$0xff]  ;;  %v2364_v52 = vld [vmem:[#allocation2 + $0x1f] sm:$0xff] }
 0x1f6   :  { %4082 = vmatmul.mubr.f32.gmra.mxu1 %v1875_v51  ;;  %4138 = vmatmul.mubr.f32.gmra.mxu0 %v2181_v32  ;;  %v2493_v32 = vld [vmem:[%s6598_s6 + $0x308] sm:$0xff]  ;;  %v2185_v51 = vmul.f32 %v5940_v57, %v6168_v14  ;;  %v4323_v47 = vld [vmem:[#allocation2 + $0x20] sm:$0xff] }
 0x1f7   :  { %4167 = vmatpush3.msra.mxu1 %v2497_v44  ;;  %4222 = vmatprep.subr.mxu0 %v2803_v24  ;;  %v2800_v44 = vld [vmem:[%s6598_s6 + $0x390] sm:$0xff] }
 0x1f8   :  { %4084 = vmatprep.mubr.f32.mxu1 %v1876_v4  ;;  %4140 = vmatprep.mubr.f32.mxu0 %v2182_v17  ;;  %v2492_v4 = vld [vmem:[%s6598_s6 + $0x300] sm:$0xff] }
 0x1f9   :  { %4168 = vmatprep.subr.mxu1 %v2496_v50  ;;  %4223 = vmatpush3.msra.mxu0 %v2803_v24  ;;  %v6747_v24 = vld [vmem:[#allocation53_spill] sm:$0xff] }
 0x1fa   :  { %4169 = vmatpush3.msra.mxu1 %v2496_v50  ;;  %4224 = vmatprep.subr.mxu0 %v2802_v63  ;;  %v1879_v17 = vmul.f32 %v6747_v24, %v1766_v22  ;;  %v6187_v50 = vpop.permute.xlu1 %2749 }
 0x1fb   :  { %4170 = vmatprep.subr.mxu1 %v2495_v27  ;;  %4225 = vmatpush3.msra.mxu0 %v2802_v63  ;;  %v6748_v63 = vld [vmem:[#allocation58_spill] sm:$0xff] }
 0x1fc   :  { %4085 = vmatmul.mubr.f32.gmra.mxu1 %v1877_v21  ;;  %4141 = vmatmul.mubr.f32.gmra.mxu0 %v2183_v28  ;;  %v2476_v57 = vmul.f32 %v6748_v63, %v2363_v23  ;;  %v2798_v28 = vld [vmem:[%s6598_s6 + $0x380] sm:$0xff]  ;;  %v6194_v21 = vpop.permute.xlu0 %3050  ;;  %v2366_v23 = vld [vmem:[#allocation2 + $0x2f] sm:$0xff] }
 0x1fd   :  { %4171 = vmatpush3.msra.mxu1 %v2495_v27  ;;  %4226 = vmatprep.subr.mxu0 %v2801_v0  ;;  %v2782_v27 = vmul.f32 %v4322_v40, %v5970_v9  ;;  %v2783_v9 = vmul.f32 %v4323_v47, %v5983_v13  ;;  %v3117_v13 = vld [vmem:[%s6598_s6 + $0x468] sm:$0xff] }
 0x1fe   :  { %4087 = vmatprep.mubr.f32.mxu1 %v1878_v60  ;;  %4143 = vmatprep.mubr.f32.mxu0 %v2184_v58  ;;  %v2365_v58 = vld [vmem:[#allocation2 + $0x27] sm:$0xff]  ;;  %v6749_v60 = vld [vmem:[#allocation57_spill] sm:$0xff] }
 0x1ff   :  { %4172 = vmatprep.subr.mxu1 %v2494_v35  ;;  %4227 = vmatpush3.msra.mxu0 %v2801_v0  ;;  %v3119_v0 = vld [vmem:[%s6598_s6 + $0x478] sm:$0xff] }
 0x200   :  { %4173 = vmatpush3.msra.mxu1 %v2494_v35  ;;  %4228 = vmatprep.subr.mxu0 %v2800_v44  ;;  %v2477_v35 = vmul.f32 %v6749_v60, %v2364_v52  ;;  %v4327_v52 = vld [vmem:[#allocation2 + $0x38] sm:$0xff]  ;;  %v6753_v60 = vld [vmem:[#allocation63_spill] sm:$0xff] }
 0x201   :  { %4174 = vmatprep.subr.mxu1 %v2493_v32  ;;  %4229 = vmatpush3.msra.mxu0 %v2800_v44  ;;  %v6750_v44 = vld [vmem:[#allocation60_spill] sm:$0xff] }
 0x202   :  { %4088 = vmatmul.mubr.f32.gmra.mxu1 %v1879_v17  ;;  %4144 = vmatmul.mubr.f32.gmra.mxu0 %v2185_v51  ;;  %v2478_v22 = vmul.f32 %v6750_v44, %v2365_v58  ;;  %v4324_v51 = vld [vmem:[#allocation2 + $0x28] sm:$0xff]  ;;  %v6206_v17 = vpop.permute.xlu1 %3055  ;;  %v3116_v58 = vld [vmem:[%s6598_s6 + $0x460] sm:$0xff] }
 0x203   :  { %4175 = vmatpush3.msra.mxu1 %v2493_v32  ;;  %4230 = vmatprep.subr.mxu0 %v2799_v1  ;;  %v3118_v32 = vld [vmem:[%s6598_s6 + $0x470] sm:$0xff]  ;;  %v2784_v24 = vmul.f32 %v4324_v51, %v6014_v34 }
 0x204   :  { %4176 = vmatprep.subr.mxu1 %v2492_v4  ;;  %4178 = vmatprep.mubr.f32.mxu1 %v2476_v57  ;;  %v4325_v57 = vld [vmem:[#allocation2 + $0x30] sm:$0xff] }
 0x205   :  { %4231 = vmatpush3.msra.mxu0 %v2799_v1  ;;  %4234 = vmatprep.mubr.f32.mxu0 %v2782_v27  ;;  %v2755_v1 = vpop.permute.xlu0 %2754  ;;  %v2785_v40 = vmul.f32 %v4325_v57, %v6029_v46  ;;  %v4326_v34 = vld [vmem:[#allocation2 + $0x37] sm:$0xff]  ;;  %v6752_v27 = vld [vmem:[#allocation64_spill] sm:$0xff] }
 0x206   :  { %4177 = vmatpush3.msra.mxu1 %v2492_v4  ;;  %4232 = vmatprep.subr.mxu0 %v2798_v28  ;;  %v6751_v4 = vld [vmem:[#allocation59_spill] sm:$0xff]  ;;  %v2760_v47 = vpop.permute.xlu1 %2759  ;;  %v3115_v46 = vld [vmem:[%s6598_s6 + $0x458] sm:$0xff]  ;;  %v3114_v51 = vld [vmem:[%s6598_s6 + $0x450] sm:$0xff] }
 0x207   :  { %4233 = vmatpush3.msra.mxu0 %v2798_v28  ;;  %4258 = vmatprep.subr.mxu1 %v3119_v0  ;;  %v2479_v63 = vmul.f32 %v6751_v4, %v2366_v23  ;;  %v2480_v28 = vmul.f32 %v4326_v34, %v6752_v27  ;;  %v4332_v4 = vld [vmem:[#allocation2 + $0x58] sm:$0xff] }
 0x208   :  { %4179 = vmatmul.mubr.f32.vlgmr.msra.gmra.mxu1 %v2477_v35  ;;  %4235 = vmatmul.mubr.f32.vlgmr.msra.gmra.mxu0 %v2783_v9  ;;  %v4328_v9 = vld [vmem:[#allocation2 + $0x3f] sm:$0xff] }
 0x209   :  { %4259 = vmatpush3.msra.mxu1 %v3119_v0  ;;  %4181 = vmatprep.mubr.f32.mxu1 %v2478_v22  ;;  %v2786_v0 = vmul.f32 %v4327_v52, %v6066_v12  ;;  %v2481_v35 = vmul.f32 %v4328_v9, %v6753_v60  ;;  %v4329_v12 = vld [vmem:[#allocation2 + $0x40] sm:$0xff]  ;;  %v6223_v22 = vpop.permute.xlu0 %3060 }
 0x20a   :  { %4237 = vmatprep.mubr.f32.mxu0 %v2784_v24  ;;  %4260 = vmatprep.subr.mxu1 %v3118_v32  ;;  %v2787_v44 = vmul.f32 %v4329_v12, %v6081_v43  ;;  %v3113_v43 = vld [vmem:[%s6598_s6 + $0x448] sm:$0xff]  ;;  %v6233_v24 = vpop.permute.xlu1 %3065 }
 0x20b   :  { %4261 = vmatpush3.msra.mxu1 %v3118_v32  ;;  %v4330_v32 = vld [vmem:[#allocation2 + $0x48] sm:$0xff] }
 0x20c   :  { %4262 = vmatprep.subr.mxu1 %v3117_v13  ;;  %4182 = vmatmul.mubr.f32.gmra.mxu1 %v2479_v63  ;;  %v2788_v23 = vmul.f32 %v4330_v32, %v6118_v42  ;;  %v2790_v63 = vmul.f32 %v4332_v4, %v6173_v30  ;;  %v2377_v60 = vld [vmem:[#allocation2 + $0x87] sm:$0xff] }
 0x20d   :  { %4238 = vmatmul.mubr.f32.gmra.mxu0 %v2785_v40  ;;  %4263 = vmatpush3.msra.mxu1 %v3117_v13  ;;  %v4331_v13 = vld [vmem:[#allocation2 + $0x50] sm:$0xff]  ;;  %v2765_v57 = vpop.permute.xlu0 %2764  ;;  %v4333_v40 = vld [vmem:[#allocation2 + $0x60] sm:$0xff]  ;;  %v2490_v32 = vmul.f32 %v5950_v56, %v2377_v60 }
 0x20e   :  { %4184 = vmatprep.mubr.f32.mxu1 %v2480_v28  ;;  %4240 = vmatprep.mubr.f32.mxu0 %v2786_v0  ;;  %v2789_v42 = vmul.f32 %v4331_v13, %v6133_v2  ;;  %v3111_v2 = vld [vmem:[%s6598_s6 + $0x438] sm:$0xff]  ;;  %v2791_v30 = vmul.f32 %v4333_v40, %v6187_v50  ;;  %v2770_v34 = vpop.permute.xlu1 %2769  ;;  %v3109_v50 = vld [vmem:[%s6598_s6 + $0x428] sm:$0xff]  ;;  %v4340_v56 = vld [vmem:[#allocation2] sm:$0xff]  ;;  %v3093_v40 = vmul.f32 %v6107_v39, %v6045_v59 }
 0x20f   :  { %4264 = vmatprep.subr.mxu1 %v3116_v58  ;;  %v3104_v4 = vld [vmem:[%s6598_s6 + $0x400] sm:$0xff]  ;;  %v3098_v59 = vmul.f32 %v6223_v22, %v6113_v18 }
 0x210   :  { %4265 = vmatpush3.msra.mxu1 %v3116_v58  ;;  %v4337_v58 = vld [vmem:[#allocation2 + $0x78] sm:$0xff] }
 0x211   :  { %4266 = vmatprep.subr.mxu1 %v3115_v46  ;;  %4185 = vmatmul.mubr.f32.gmra.mxu1 %v2481_v35  ;;  %v6250_v28 = vpop.permute.xlu0 %3070 }
 0x212   :  { %4241 = vmatmul.mubr.f32.gmra.mxu0 %v2787_v44  ;;  %4267 = vmatpush3.msra.mxu1 %v3115_v46  ;;  %v2794_v46 = vmul.f32 %v4337_v58, %v2765_v57  ;;  %v6257_v9 = vpop.permute.xlu1 %3075  ;;  %v2378_v44 = vld [vmem:[#allocation2 + $0x8f] sm:$0xff] }
 0x213   :  { %4187 = vmatprep.mubr.f32.mxu1 %v5630_v31  ;;  %4243 = vmatprep.mubr.f32.mxu0 %v2788_v23  ;;  %v3112_v31 = vld [vmem:[%s6598_s6 + $0x440] sm:$0xff]  ;;  %v4339_v23 = vld [vmem:[#allocation2 + $0x88] sm:$0xff]  ;;  %v3101_v18 = vmul.f32 %v6257_v9, %v6149_v6 }
 0x214   :  { %4268 = vmatprep.subr.mxu1 %v3114_v51 }
 0x215   :  { %4269 = vmatpush3.msra.mxu1 %v3114_v51  ;;  %v2775_v35 = vpop.permute.xlu0 %2774 }
 0x216   :  { %4270 = vmatprep.subr.mxu1 %v3113_v43  ;;  %4188 = vmatmul.mubr.f32.gmra.mxu1 %v5626_v53  ;;  %v4334_v53 = vld [vmem:[#allocation2 + $0x68] sm:$0xff]  ;;  %v2796_v51 = vmul.f32 %v4339_v23, %v2775_v35  ;;  %v2780_v13 = vpop.permute.xlu1 %2779 }
 0x217   :  { %4244 = vmatmul.mubr.f32.gmra.mxu0 %v2789_v42  ;;  %4271 = vmatpush3.msra.mxu1 %v3113_v43  ;;  %v2792_v27 = vmul.f32 %v4334_v53, %v2755_v1  ;;  %v4335_v1 = vld [vmem:[#allocation2 + $0x70] sm:$0xff]  ;;  %v2797_v42 = vmul.f32 %v4340_v56, %v2780_v13 }
 0x218   :  { %4190 = vmatprep.mubr.f32.mxu1 %v5642_v55  ;;  %4246 = vmatprep.mubr.f32.mxu0 %v2790_v63  ;;  %v3110_v55 = vld [vmem:[%s6598_s6 + $0x430] sm:$0xff]  ;;  %v2793_v52 = vmul.f32 %v4335_v1, %v2760_v47  ;;  %v4338_v47 = vld [vmem:[#allocation2 + $0x7f] sm:$0xff] }
 0x219   :  { %4272 = vmatprep.subr.mxu1 %v3112_v31  ;;  %v2489_v12 = vmul.f32 %v4338_v47, %v5920_v3  ;;  %v3106_v43 = vld [vmem:[%s6598_s6 + $0x410] sm:$0xff]  ;;  %v3105_v3 = vld [vmem:[%s6598_s6 + $0x408] sm:$0xff]  ;;  %v4341_v63 = vld [vmem:[#allocation2 + $0x19] sm:$0xff] }
 0x21a   :  { %4273 = vmatpush3.msra.mxu1 %v3112_v31  ;;  %v3088_v57 = vmul.f32 %v4341_v63, %v5992_v49  ;;  %v3089_v31 = vmul.f32 %v6003_v8, %v5847_v37  ;;  %v3092_v49 = vmul.f32 %v6092_v36, %v6035_v7  ;;  %v3094_v37 = vmul.f32 %v6144_v26, %v6061_v25  ;;  %v3086_v53 = vpop.permute.xlu1 %3085 }
 0x21b   :  { %4274 = vmatprep.subr.mxu1 %v3111_v2  ;;  %4191 = vmatmul.mubr.f32.gmra.mxu1 %v5639_v11  ;;  %v4336_v11 = vld [vmem:[#allocation2 + $0x77] sm:$0xff] }
 0x21c   :  { %4247 = vmatmul.mubr.f32.gmra.mxu0 %v2791_v30  ;;  %4275 = vmatpush3.msra.mxu1 %v3111_v2  ;;  %v2488_v0 = vmul.f32 %v4336_v11, %v5910_v38  ;;  %v3107_v38 = vld [vmem:[%s6598_s6 + $0x418] sm:$0xff]  ;;  %v3091_v2 = vmul.f32 %v6055_v16, %v6019_v41  ;;  %v3096_v41 = vmul.f32 %v6194_v21, %v6087_v15 }
 0x21d   :  { %4193 = vmatprep.mubr.f32.mxu1 %v5661_v48  ;;  %4249 = vmatprep.mubr.f32.mxu0 %v2792_v27  ;;  %v3108_v48 = vld [vmem:[%s6598_s6 + $0x420] sm:$0xff]  ;;  %v3097_v16 = vmul.f32 %v6206_v17, %v6097_v5  ;;  %v3100_v15 = vmul.f32 %v6250_v28, %v6139_v62 }
 0x21e   :  { %4276 = vmatprep.subr.mxu1 %v3110_v55 }
 0x21f   :  { %4277 = vmatpush3.msra.mxu1 %v3110_v55 }
 0x220   :  { %4278 = vmatprep.subr.mxu1 %v3109_v50  ;;  %4194 = vmatmul.mubr.f32.gmra.mxu1 %v5656_v45  ;;  %v2795_v45 = vmul.f32 %v2770_v34, %v6151_v20  ;;  %v2491_v20 = vmul.f32 %v5960_v29, %v2378_v44  ;;  %v3090_v29 = vmul.f32 %v6040_v33, %v5855_v61  ;;  %v2990_v34 = vld [vmem:[#allocation2 + $0x91] sm:$0xff] }
 0x221   :  { %4250 = vmatmul.mubr.f32.gmra.mxu0 %v2793_v52  ;;  %4279 = vmatpush3.msra.mxu1 %v3109_v50  ;;  %v3095_v61 = vmul.f32 %v6161_v19, %v6071_v54  ;;  %v3099_v54 = vmul.f32 %v6233_v24, %v6123_v10  ;;  %v3081_v19 = vpop.permute.xlu0 %3080  ;;  %v3103_v28 = vmul.f32 %v3086_v53, %v2990_v34 }
 0x222   :  { %4196 = vmatprep.mubr.f32.mxu1 %v2488_v0  ;;  %4252 = vmatprep.mubr.f32.mxu0 %v2794_v46  ;;  %v3102_v27 = vmul.f32 %v3081_v19, %v6168_v14 }
 0x223   :  { %4280 = vmatprep.subr.mxu1 %v3108_v48 }
 0x224   :  { %4281 = vmatpush3.msra.mxu1 %v3108_v48 }
 0x225   :  { %4282 = vmatprep.subr.mxu1 %v3107_v38  ;;  %4197 = vmatmul.mubr.f32.gmra.mxu1 %v2489_v12 }
 0x226   :  { %4253 = vmatmul.mubr.f32.gmra.mxu0 %v2795_v45  ;;  %4283 = vmatpush3.msra.mxu1 %v3107_v38 }
 0x227   :  { %4199 = vmatprep.mubr.f32.mxu1 %v2490_v32  ;;  %4255 = vmatprep.mubr.f32.mxu0 %v2796_v51 }
 0x228   :  { %4284 = vmatprep.subr.mxu1 %v3106_v43 }
 0x229   :  { %4285 = vmatpush3.msra.mxu1 %v3106_v43 }
 0x22a   :  { %4286 = vmatprep.subr.mxu1 %v3105_v3  ;;  %4200 = vmatmul.mubr.f32.gmra.mxu1 %v2491_v20 }
 0x22b   :  { %4256 = vmatmul.mubr.f32.gmra.mxu0 %v2797_v42  ;;  %4287 = vmatpush3.msra.mxu1 %v3105_v3 }
 0x22c   :  { %4288 = vmatprep.subr.mxu1 %v3104_v4  ;;  %4290 = vmatprep.mubr.f32.mxu1 %v3088_v57 }
 0x22d   :  { %4289 = vmatpush3.msra.mxu1 %v3104_v4 }
 0x22e   :  { %4291 = vmatmul.mubr.f32.vlgmr.msra.gmra.mxu1 %v3089_v31 }
 0x22f   :  { %4293 = vmatprep.mubr.f32.mxu1 %v3090_v29 }
 0x232   :  { %4294 = vmatmul.mubr.f32.gmra.mxu1 %v3091_v2 }
 0x233   :  { %4296 = vmatprep.mubr.f32.mxu1 %v3092_v49 }
 0x236   :  { %4297 = vmatmul.mubr.f32.gmra.mxu1 %v3093_v40  ;;  %v3844_v8 = vpop.f32.mrf.mxu1 }
 0x237   :  { %4299 = vmatprep.mubr.f32.mxu1 %v3094_v37 }
 0x238   :  { %v915_v33 = vpop.f32.mrf.mxu1 }
 0x23a   :  { %4300 = vmatmul.mubr.f32.gmra.mxu1 %v3095_v61  ;;  %v3847_v7 = vpop.f32.mrf.mxu1 }
 0x23b   :  { %4302 = vmatprep.mubr.f32.mxu1 %v3096_v41 }
 0x23c   :  { %v925_v36 = vpop.f32.mrf.mxu1 }
 0x23e   :  { %4303 = vmatmul.mubr.f32.gmra.mxu1 %v3097_v16  ;;  %v3900_v25 = vpop.f32.mrf.mxu0 }
 0x23f   :  { %4305 = vmatprep.mubr.f32.mxu1 %v3098_v59  ;;  %v1066_v39 = vadd.f32 %v3900_v25, %v3844_v8 }
 0x240   :  { %v1060_v26 = vpop.f32.mrf.mxu0  ;;  %v3850_v5 = vpop.f32.mrf.mxu1 }
 0x241   :  { %v1061_v21 = vadd.f32 %v1060_v26, %v915_v33 }
 0x242   :  { %4306 = vmatmul.mubr.f32.gmra.mxu1 %v3099_v54  ;;  %v3903_v30 = vpop.f32.mrf.mxu0  ;;  %v935_v55 = vpop.f32.mrf.mxu1 }
 0x243   :  { %4308 = vmatprep.mubr.f32.mxu1 %v3100_v15  ;;  %v1076_v17 = vadd.f32 %v3903_v30, %v3847_v7 }
 0x244   :  { %v1070_v22 = vpop.f32.mrf.mxu0 }
 0x245   :  { %v1071_v10 = vadd.f32 %v1070_v22, %v925_v36 }
 0x246   :  { %4309 = vmatmul.mubr.f32.gmra.mxu1 %v3101_v18  ;;  %v3906_v24 = vpop.f32.mrf.mxu0 }
 0x247   :  { %4311 = vmatprep.mubr.f32.mxu1 %v3102_v27  ;;  %v1086_v62 = vadd.f32 %v3906_v24, %v3850_v5 }
 0x248   :  { %v1080_v50 = vpop.f32.mrf.mxu0 }
 0x249   :  { %v1081_v1 = vadd.f32 %v1080_v50, %v935_v55 }
 0x24a   :  { %4312 = vmatmul.mubr.f32.gmra.mxu1 %v3103_v28  ;;  %v3853_v52 = vpop.f32.mrf.mxu1  ;;  %v3909_v11 = vpop.f32.mrf.mxu0 }
 0x24b   :  { %v1096_v0 = vadd.f32 %v3909_v11, %v3853_v52 }
 0x24c   :  { %v945_v58 = vpop.f32.mrf.mxu1  ;;  %v1090_v6 = vpop.f32.mrf.mxu0 }
 0x24d   :  { %v1091_v46 = vadd.f32 %v1090_v6, %v945_v58 }
 0x250   :  { %v3856_v9 = vpop.f32.mrf.mxu1  ;;  %v3912_v48 = vpop.f32.mrf.mxu0 }
 0x251   :  { %v1106_v60 = vadd.f32 %v3912_v48, %v3856_v9 }
 0x252   :  { %v955_v14 = vpop.f32.mrf.mxu1  ;;  %v1100_v35 = vpop.f32.mrf.mxu0 }
 0x253   :  { %v1101_v38 = vadd.f32 %v1100_v35, %v955_v14 }
 0x256   :  { %v3859_v47 = vpop.f32.mrf.mxu1  ;;  %v3915_v12 = vpop.f32.mrf.mxu0 }
 0x257   :  { %v1116_v45 = vadd.f32 %v3915_v12, %v3859_v47 }
 0x258   :  { %v965_v44 = vpop.f32.mrf.mxu1  ;;  %v1110_v32 = vpop.f32.mrf.mxu0 }
 0x259   :  { %v1111_v23 = vadd.f32 %v1110_v32, %v965_v44 }
 0x25c   :  { %v3862_v51 = vpop.f32.mrf.mxu1  ;;  %v3918_v43 = vpop.f32.mrf.mxu0 }
 0x25d   :  { %v1126_v13 = vadd.f32 %v3918_v43, %v3862_v51 }
 0x25e   :  { %v975_v3 = vpop.f32.mrf.mxu1  ;;  %v1120_v20 = vpop.f32.mrf.mxu0 }
 0x25f   :  { %v1121_v56 = vadd.f32 %v1120_v20, %v975_v3 }
 0x262   :  { %v3865_v42 = vpop.f32.mrf.mxu1  ;;  %v3921_v4 = vpop.f32.mrf.mxu0 }
 0x263   :  { %v1136_v63 = vadd.f32 %v3921_v4, %v3865_v42 }
 0x264   :  { %v985_v57 = vpop.f32.mrf.mxu1  ;;  %v1130_v31 = vpop.f32.mrf.mxu0 }
 0x265   :  { %v1131_v29 = vadd.f32 %v1130_v31, %v985_v57 }
 0x268   :  { %v3956_v2 = vpop.f32.mrf.mxu1  ;;  %v6307_v49 = vpop.f32.mrf.mxu0 }
 0x269   :  { %v6309_v40 = vadd.f32 %v3956_v2, %v1066_v39 }
 0x26a   :  { %v1350_v37 = vpop.f32.mrf.mxu1  ;;  %v6311_v8 = vpop.f32.mrf.mxu0 }
 0x26b   :  { %v6313_v61 = vadd.f32 %v1350_v37, %v1061_v21 }
 0x26e   :  { %v3959_v33 = vpop.f32.mrf.mxu1  ;;  %v6315_v41 = vpop.f32.mrf.mxu0 }
 0x26f   :  { %v6317_v7 = vadd.f32 %v3959_v33, %v1076_v17 }
 0x270   :  { %v1360_v16 = vpop.f32.mrf.mxu1  ;;  %v6319_v59 = vpop.f32.mrf.mxu0 }
 0x271   :  { %v6321_v25 = vadd.f32 %v1360_v16, %v1071_v10 }
 0x274   :  { %v3962_v36 = vpop.f32.mrf.mxu1  ;;  %v6323_v54 = vpop.f32.mrf.mxu0 }
 0x275   :  { %v6325_v39 = vadd.f32 %v3962_v36, %v1086_v62 }
 0x276   :  { %v1370_v26 = vpop.f32.mrf.mxu1  ;;  %v6327_v15 = vpop.f32.mrf.mxu0 }
 0x277   :  { %v6329_v19 = vadd.f32 %v1370_v26, %v1081_v1 }
 0x27a   :  { %v3965_v21 = vpop.f32.mrf.mxu1  ;;  %v6331_v30 = vpop.f32.mrf.mxu0 }
 0x27b   :  { %v6333_v5 = vadd.f32 %v3965_v21, %v1096_v0 }
 0x27c   :  { %v1380_v17 = vpop.f32.mrf.mxu1  ;;  %v6335_v18 = vpop.f32.mrf.mxu0 }
 0x27d   :  { %v6337_v22 = vadd.f32 %v1380_v17, %v1091_v46 }
 0x280   :  { %v3968_v34 = vpop.f32.mrf.mxu1  ;;  %v6339_v53 = vpop.f32.mrf.mxu0 }
 0x281   :  { %v6341_v27 = vadd.f32 %v3968_v34, %v1106_v60 }
 0x282   :  { %v1390_v10 = vpop.f32.mrf.mxu1  ;;  %v6343_v24 = vpop.f32.mrf.mxu0 }
 0x283   :  { %v6345_v55 = vadd.f32 %v1390_v10, %v1101_v38 }
 0x286   :  { %v3971_v62 = vpop.f32.mrf.mxu1  ;;  %v6347_v28 = vpop.f32.mrf.mxu0 }
 0x287   :  { %v6349_v50 = vadd.f32 %v3971_v62, %v1116_v45 }
 0x288   :  { %v1400_v1 = vpop.f32.mrf.mxu1  ;;  %v6351_v52 = vpop.f32.mrf.mxu0 }
 0x289   :  { %6754 = vst [vmem:[#allocation6_spill] sm:$0xff] %v6351_v52  ;;  %v6353_v11 = vadd.f32 %v1400_v1, %v1111_v23  ;;  %v1735_v52 = vadd.f32 %v6311_v8, %v6313_v61  ;;  %v1740_v8 = vadd.f32 %v6323_v54, %v6325_v39 }
 0x28b   :  { %6755 = vst [vmem:[#allocation4_spill] sm:$0xff] %v6353_v11 }
 0x28c   :  { %v3974_v0 = vpop.f32.mrf.mxu1  ;;  %v6355_v58 = vpop.f32.mrf.mxu0 }
 0x28d   :  { %6756 = vst [vmem:[#allocation5_spill] sm:$0xff] %v6355_v58  ;;  %v6357_v6 = vadd.f32 %v3974_v0, %v1126_v13 }
 0x28e   :  { %v1410_v46 = vpop.f32.mrf.mxu1  ;;  %v6359_v9 = vpop.f32.mrf.mxu0 }
 0x28f   :  { %6757 = vst [vmem:[#allocation3_spill] sm:$0xff] %v6357_v6  ;;  %6758 = vst [vmem:[#allocation8_spill] sm:$0xff] %v6359_v9  ;;  %v6361_v48 = vadd.f32 %v1410_v46, %v1121_v56 }
 0x291   :  { %6759 = vst [vmem:[#allocation24_spill] sm:$0xff] %v6361_v48 }
 0x292   :  { %v3977_v60 = vpop.f32.mrf.mxu1  ;;  %v6363_v14 = vpop.f32.mrf.mxu0 }
 0x293   :  { %6760 = vst [vmem:[#allocation7_spill] sm:$0xff] %v6363_v14  ;;  %v6365_v35 = vadd.f32 %v3977_v60, %v1136_v63 }
 0x294   :  { %v1420_v38 = vpop.f32.mrf.mxu1  ;;  %v6367_v47 = vpop.f32.mrf.mxu0 }
 0x295   :  { %6761 = vst [vmem:[#allocation23_spill] sm:$0xff] %v6365_v35  ;;  %6762 = vst [vmem:[#allocation10_spill] sm:$0xff] %v6367_v47  ;;  %v6369_v12 = vadd.f32 %v1420_v38, %v1131_v29 }
 0x297   :  { %6763 = vst [vmem:[#allocation26_spill] sm:$0xff] %v6369_v12 }
 0x298   :  { %v4068_v45 = vpop.f32.mrf.mxu1  ;;  %v4124_v44 = vpop.f32.mrf.mxu0 }
 0x29a   :  { %v1962_v32 = vpop.f32.mrf.mxu1  ;;  %v2268_v23 = vpop.f32.mrf.mxu0 }
 0x29e   :  { %v4071_v51 = vpop.f32.mrf.mxu1  ;;  %v6371_v43 = vpop.f32.mrf.mxu0 }
 0x2a0   :  { %v6373_v13 = vpop.f32.mrf.mxu1  ;;  %v6375_v3 = vpop.f32.mrf.mxu0 }
 0x2a4   :  { %v6377_v20 = vpop.f32.mrf.mxu1  ;;  %v6379_v56 = vpop.f32.mrf.mxu0 }
 0x2a6   :  { %v6381_v42 = vpop.f32.mrf.mxu1  ;;  %v6383_v4 = vpop.f32.mrf.mxu0 }
 0x2aa   :  { %v6385_v63 = vpop.f32.mrf.mxu1  ;;  %v6387_v57 = vpop.f32.mrf.mxu0 }
 0x2ac   :  { %v6389_v31 = vpop.f32.mrf.mxu1  ;;  %v6391_v29 = vpop.f32.mrf.mxu0 }
 0x2b0   :  { %v6393_v2 = vpop.f32.mrf.mxu1  ;;  %v6395_v37 = vpop.f32.mrf.mxu0 }
 0x2b2   :  { %v6397_v33 = vpop.f32.mrf.mxu1  ;;  %v6399_v16 = vpop.f32.mrf.mxu0 }
 0x2b3   :  { %6764 = vst [vmem:[#allocation9_spill] sm:$0xff] %v6397_v33  ;;  %6765 = vst [vmem:[#allocation25_spill] sm:$0xff] %v6399_v16  ;;  %v1736_v16 = vadd.f32 %v6307_v49, %v6309_v40  ;;  %v1737_v49 = vadd.f32 %v6319_v59, %v6321_v25  ;;  %v2046_v59 = vadd.f32 %v6377_v20, %v1740_v8 }
 0x2b6   :  { %v6401_v36 = vpop.f32.mrf.mxu1  ;;  %v6403_v26 = vpop.f32.mrf.mxu0 }
 0x2b7   :  { %6766 = vst [vmem:[#allocation12_spill] sm:$0xff] %v6401_v36  ;;  %6767 = vst [vmem:[#allocation28_spill] sm:$0xff] %v6403_v26 }
 0x2b8   :  { %v6405_v21 = vpop.f32.mrf.mxu1  ;;  %v6407_v17 = vpop.f32.mrf.mxu0 }
 0x2b9   :  { %6768 = vst [vmem:[#allocation11_spill] sm:$0xff] %v6405_v21  ;;  %6769 = vst [vmem:[#allocation27_spill] sm:$0xff] %v6407_v17 }
 0x2ba   :  { %v6791_v8 = vld [vmem:[#allocation25_spill] sm:$0xff] }
 0x2bc   :  { %v6409_v34 = vpop.f32.mrf.mxu1  ;;  %v6411_v10 = vpop.f32.mrf.mxu0 }
 0x2bd   :  { %6770 = vst [vmem:[#allocation14_spill] sm:$0xff] %v6409_v34  ;;  %6771 = vst [vmem:[#allocation30_spill] sm:$0xff] %v6411_v10 }
 0x2be   :  { %v6413_v62 = vpop.f32.mrf.mxu1  ;;  %v6415_v1 = vpop.f32.mrf.mxu0 }
 0x2bf   :  { %6772 = vst [vmem:[#allocation13_spill] sm:$0xff] %v6413_v62  ;;  %6773 = vst [vmem:[#allocation29_spill] sm:$0xff] %v6415_v1 }
 0x2c2   :  { %v6417_v0 = vpop.f32.mrf.mxu1  ;;  %v6419_v46 = vpop.f32.mrf.mxu0 }
 0x2c3   :  { %6774 = vst [vmem:[#allocation16_spill] sm:$0xff] %v6417_v0  ;;  %6775 = vst [vmem:[#allocation40_spill] sm:$0xff] %v6419_v46 }
 0x2c4   :  { %v6421_v60 = vpop.f32.mrf.mxu1  ;;  %v6423_v38 = vpop.f32.mrf.mxu0 }
 0x2c5   :  { %6776 = vst [vmem:[#allocation15_spill] sm:$0xff] %v6421_v60  ;;  %6777 = vst [vmem:[#allocation39_spill] sm:$0xff] %v6423_v38 }
 0x2c8   :  { %v4180_v47 = vpop.f32.mrf.mxu1  ;;  %v4236_v14 = vpop.f32.mrf.mxu0 }
 0x2ca   :  { %v2574_v12 = vpop.f32.mrf.mxu1  ;;  %v2880_v34 = vpop.f32.mrf.mxu0 }
 0x2cc   :  { %v4183_v35 = vpop.f32.mrf.mxu1 }
 0x2cd   :  { %v4239_v62 = vpop.f32.mrf.mxu0 }
 0x2ce   :  { %v2584_v17 = vpop.f32.mrf.mxu1 }
 0x2cf   :  { %v2890_v1 = vpop.f32.mrf.mxu0 }
 0x2d1   :  { %v4186_v9 = vpop.f32.mrf.mxu1 }
 0x2d2   :  { %v4242_v60 = vpop.f32.mrf.mxu0 }
 0x2d3   :  { %v6425_v10 = vpop.f32.mrf.mxu1 }
 0x2d4   :  { %v6435_v38 = vpop.f32.mrf.mxu0 }
 0x2d6   :  { %v6427_v48 = vpop.f32.mrf.mxu1 }
 0x2d7   :  { %v6441_v6 = vpop.f32.mrf.mxu0 }
 0x2d8   :  { %v6429_v0 = vpop.f32.mrf.mxu1  ;;  %6783 = vst [vmem:[#allocation48_spill] sm:$0xff] %v6441_v6 }
 0x2d9   :  { %6778 = vst [vmem:[#allocation18_spill] sm:$0xff] %v6429_v0 }
 0x2db   :  { %v6431_v46 = vpop.f32.mrf.mxu1 }
 0x2dc   :  { %6779 = vst [vmem:[#allocation44_spill] sm:$0xff] %v6431_v46  ;;  %v2042_v46 = vadd.f32 %v4068_v45, %v1736_v16 }
 0x2dd   :  { %v6433_v21 = vpop.f32.mrf.mxu1 }
 0x2de   :  { %6780 = vst [vmem:[#allocation17_spill] sm:$0xff] %v6433_v21  ;;  %v6451_v21 = vpop.f32.mrf.mxu0  ;;  %v2348_v0 = vadd.f32 %v4124_v44, %v2042_v46  ;;  %v1739_v44 = vadd.f32 %v6327_v15, %v6329_v19 }
 0x2e0   :  { %v6437_v26 = vpop.f32.mrf.mxu1  ;;  %v2654_v6 = vadd.f32 %v4180_v47, %v2348_v0  ;;  %v6461_v61 = vpop.f32.mrf.mxu0  ;;  %v6787_v46 = vld [vmem:[#allocation18_spill] sm:$0xff] }
 0x2e1   :  { %6781 = vst [vmem:[#allocation43_spill] sm:$0xff] %v6437_v26  ;;  %v1738_v26 = vadd.f32 %v6315_v41, %v6317_v7  ;;  %v2043_v41 = vadd.f32 %v6373_v13, %v1737_v49  ;;  %v6789_v49 = vld [vmem:[#allocation6_spill] sm:$0xff] }
 0x2e2   :  { %v6439_v58 = vpop.f32.mrf.mxu1  ;;  %v2960_v7 = vadd.f32 %v4236_v14, %v2654_v6  ;;  %v2045_v14 = vadd.f32 %v6381_v42, %v1739_v44 }
 0x2e3   :  { %6782 = vst [vmem:[#allocation20_spill] sm:$0xff] %v6439_v58  ;;  %v2041_v58 = vadd.f32 %v1962_v32, %v1735_v52  ;;  %v1742_v32 = vadd.f32 %v6331_v30, %v6333_v5 }
 0x2e4   :  { %v2351_v5 = vadd.f32 %v6383_v4, %v2045_v14 }
 0x2e5   :  { %v6445_v36 = vpop.f32.mrf.mxu1  ;;  %v2347_v40 = vadd.f32 %v2268_v23, %v2041_v58  ;;  %v2349_v58 = vadd.f32 %v6375_v3, %v2043_v41  ;;  %v2352_v23 = vadd.f32 %v6379_v56, %v2046_v59  ;;  %v1744_v56 = vadd.f32 %v6339_v53, %v6341_v27  ;;  %v6793_v59 = vld [vmem:[#allocation3_spill] sm:$0xff] }
 0x2e6   :  { %6784 = vst [vmem:[#allocation19_spill] sm:$0xff] %v6445_v36  ;;  %v2044_v36 = vadd.f32 %v4071_v51, %v1738_v26  ;;  %v2920_v51 = vpop.f32.mrf.mxu0  ;;  %v2657_v4 = vadd.f32 %v6425_v10, %v2351_v5  ;;  %v1743_v26 = vadd.f32 %v6343_v24, %v6345_v55  ;;  %v1746_v10 = vadd.f32 %v6347_v28, %v6349_v50  ;;  %v6790_v28 = vld [vmem:[#allocation12_spill] sm:$0xff] }
 0x2e7   :  { %v6449_v11 = vpop.f32.mrf.mxu1  ;;  %v2653_v52 = vadd.f32 %v2574_v12, %v2347_v40  ;;  %v2655_v15 = vadd.f32 %v2584_v17, %v2349_v58  ;;  %v2658_v3 = vadd.f32 %v4186_v9, %v2352_v23  ;;  %v2050_v53 = vadd.f32 %v6393_v2, %v1744_v56  ;;  %v6796_v23 = vld [vmem:[#allocation11_spill] sm:$0xff] }
 0x2e8   :  { %v2350_v16 = vadd.f32 %v6371_v43, %v2044_v36  ;;  %v2048_v43 = vadd.f32 %v6385_v63, %v1742_v32  ;;  %v4251_v36 = vpop.f32.mrf.mxu0  ;;  %v2963_v17 = vadd.f32 %v6435_v38, %v2657_v4  ;;  %v6788_v38 = vld [vmem:[#allocation4_spill] sm:$0xff]  ;;  %v2052_v50 = vadd.f32 %v6790_v28, %v1746_v10 }
 0x2e9   :  { %v2959_v54 = vadd.f32 %v2880_v34, %v2653_v52  ;;  %v2961_v13 = vadd.f32 %v2890_v1, %v2655_v15  ;;  %v2964_v63 = vadd.f32 %v4242_v60, %v2658_v3  ;;  %v2356_v24 = vadd.f32 %v6395_v37, %v2050_v53  ;;  %v6801_v3 = vld [vmem:[#allocation27_spill] sm:$0xff] }
 0x2ea   :  { %v6455_v33 = vpop.f32.mrf.mxu1  ;;  %v2656_v39 = vadd.f32 %v4183_v35, %v2350_v16  ;;  %v1741_v35 = vadd.f32 %v6335_v18, %v6337_v22  ;;  %v2354_v42 = vadd.f32 %v6387_v57, %v2048_v43  ;;  %v2930_v55 = vpop.f32.mrf.mxu0  ;;  %v1745_v40 = vadd.f32 %v6789_v49, %v6788_v38 }
 0x2ec   :  { %v6463_v45 = vpop.f32.mrf.mxu1  ;;  %v2962_v12 = vadd.f32 %v4239_v62, %v2656_v39  ;;  %v2047_v22 = vadd.f32 %v6389_v31, %v1741_v35  ;;  %v2660_v31 = vadd.f32 %v6427_v48, %v2354_v42  ;;  %v6785_v62 = vld [vmem:[#allocation9_spill] sm:$0xff]  ;;  %v6799_v35 = vld [vmem:[#allocation8_spill] sm:$0xff]  ;;  %v6802_v42 = vld [vmem:[#allocation43_spill] sm:$0xff] }
 0x2ed   :  { %v2049_v1 = vadd.f32 %v6785_v62, %v1743_v26  ;;  %v6812_v38 = vld [vmem:[#allocation19_spill] sm:$0xff] }
 0x2ee   :  { %v4292_v25 = vpop.f32.mrf.mxu1  ;;  %v2353_v57 = vadd.f32 %v6391_v29, %v2047_v22  ;;  %v6786_v29 = vld [vmem:[#allocation48_spill] sm:$0xff]  ;;  %v6803_v22 = vld [vmem:[#allocation23_spill] sm:$0xff] }
 0x2ef   :  { %v3266_v47 = vadd.f32 %v4292_v25, %v2960_v7  ;;  %v2966_v0 = vadd.f32 %v6786_v29, %v2660_v31  ;;  %v2355_v16 = vadd.f32 %v6791_v8, %v2049_v1  ;;  %v6792_v7 = vld [vmem:[#allocation44_spill] sm:$0xff]  ;;  %v6794_v25 = vld [vmem:[#allocation5_spill] sm:$0xff]  ;;  %v6814_v8 = vld [vmem:[#allocation15_spill] sm:$0xff] }
 0x2f0   :  { %v3186_v6 = vpop.f32.mrf.mxu1  ;;  %v2659_v60 = vadd.f32 %v6787_v46, %v2353_v57  ;;  %v2662_v52 = vadd.f32 %v6792_v7, %v2356_v24  ;;  %v1748_v58 = vadd.f32 %v6794_v25, %v6793_v59  ;;  %v6806_v57 = vld [vmem:[#allocation13_spill] sm:$0xff]  ;;  %v6808_v24 = vld [vmem:[#allocation26_spill] sm:$0xff]  ;;  %v6810_v1 = vld [vmem:[#allocation16_spill] sm:$0xff] }
 0x2f1   :  { %3283 = vst.msk [vmem:[%s6601_s8 + $0x8] sm:$0xff] %vm3281_vm0, %v3266_v47  ;;  %v3265_v19 = vadd.f32 %v3186_v6, %v2959_v54  ;;  %v6795_v54 = vld [vmem:[#allocation28_spill] sm:$0xff]  ;;  %v4254_v47 = vpop.f32.mrf.mxu0  ;;  %v2051_v6 = vadd.f32 %v6796_v23, %v1745_v40  ;;  %v6811_v46 = vld [vmem:[#allocation29_spill] sm:$0xff] }
 0x2f2   :  { %v4295_v30 = vpop.f32.mrf.mxu1  ;;  %v2965_v41 = vadd.f32 %v6451_v21, %v2659_v60  ;;  %v2358_v39 = vadd.f32 %v6795_v54, %v2052_v50  ;;  %v2968_v14 = vadd.f32 %v6461_v61, %v2662_v52  ;;  %v6797_v21 = vld [vmem:[#allocation17_spill] sm:$0xff]  ;;  %v6813_v40 = vld [vmem:[#allocation40_spill] sm:$0xff] }
 0x2f3   :  { %3282 = vst.msk [vmem:[%s6601_s8] sm:$0xff] %vm3281_vm0, %v3265_v19  ;;  %v3268_v20 = vadd.f32 %v4295_v30, %v2962_v12  ;;  %v2661_v12 = vadd.f32 %v6797_v21, %v2355_v16  ;;  %v6798_v19 = vld [vmem:[#allocation24_spill] sm:$0xff]  ;;  %v6800_v30 = vld [vmem:[#allocation14_spill] sm:$0xff]  ;;  %v2940_v53 = vpop.f32.mrf.mxu0 }
 0x2f4   :  { %v3196_v18 = vpop.f32.mrf.mxu1  ;;  %v1747_v43 = vadd.f32 %v6799_v35, %v6798_v19  ;;  %v2054_v5 = vadd.f32 %v6800_v30, %v1748_v58 }
 0x2f5   :  { %3285 = vst.msk [vmem:[%s6601_s8 + $0x18] sm:$0xff] %vm3281_vm0, %v3268_v20  ;;  %v3267_v9 = vadd.f32 %v3196_v18, %v2961_v13  ;;  %v2357_v20 = vadd.f32 %v6801_v3, %v2051_v6  ;;  %v2967_v56 = vadd.f32 %v2920_v51, %v2661_v12  ;;  %v2664_v18 = vadd.f32 %v6802_v42, %v2358_v39  ;;  %v4257_v50 = vpop.f32.mrf.mxu0 }
 0x2f6   :  { %v4298_v27 = vpop.f32.mrf.mxu1 }
 0x2f7   :  { %3284 = vst.msk [vmem:[%s6601_s8 + $0x10] sm:$0xff] %vm3281_vm0, %v3267_v9  ;;  %v3270_v34 = vadd.f32 %v4298_v27, %v2964_v63  ;;  %v6804_v63 = vld [vmem:[#allocation7_spill] sm:$0xff]  ;;  %v6805_v9 = vld [vmem:[#allocation30_spill] sm:$0xff]  ;;  %v2970_v31 = vadd.f32 %v4251_v36, %v2664_v18  ;;  %v2950_v39 = vpop.f32.mrf.mxu0 }
 0x2f8   :  { %v3206_v2 = vpop.f32.mrf.mxu1  ;;  %v1750_v4 = vadd.f32 %v6804_v63, %v6803_v22  ;;  %v2360_v26 = vadd.f32 %v6805_v9, %v2054_v5 }
 0x2f9   :  { %3287 = vst.msk [vmem:[%s6601_s8 + $0x28] sm:$0xff] %vm3281_vm0, %v3270_v34  ;;  %v3269_v48 = vadd.f32 %v3206_v2, %v2963_v17  ;;  %v2053_v17 = vadd.f32 %v6806_v57, %v1747_v43  ;;  %v6807_v34 = vld [vmem:[#allocation20_spill] sm:$0xff]  ;;  %v6809_v2 = vld [vmem:[#allocation10_spill] sm:$0xff] }
 0x2fa   :  { %v4301_v37 = vpop.f32.mrf.mxu1  ;;  %v2663_v51 = vadd.f32 %v6807_v34, %v2357_v20  ;;  %v1749_v62 = vadd.f32 %v6809_v2, %v6808_v24  ;;  %v2056_v29 = vadd.f32 %v6810_v1, %v1750_v4  ;;  %v2666_v49 = vadd.f32 %v6812_v38, %v2360_v26 }
 0x2fb   :  { %3286 = vst.msk [vmem:[%s6601_s8 + $0x20] sm:$0xff] %vm3281_vm0, %v3269_v48  ;;  %v3272_v44 = vadd.f32 %v4301_v37, %v2966_v0  ;;  %v2359_v60 = vadd.f32 %v6811_v46, %v2053_v17 }
 0x2fc   :  { %v3216_v32 = vpop.f32.mrf.mxu1  ;;  %v2969_v48 = vadd.f32 %v2930_v55, %v2663_v51  ;;  %v2362_v28 = vadd.f32 %v6813_v40, %v2056_v29  ;;  %v2055_v16 = vadd.f32 %v6814_v8, %v1749_v62 }
 0x2fd   :  { %3289 = vst.msk [vmem:[%s6601_s8 + $0x38] sm:$0xff] %vm3281_vm0, %v3272_v44  ;;  %v3271_v15 = vadd.f32 %v3216_v32, %v2965_v41  ;;  %v2972_v41 = vadd.f32 %v4254_v47, %v2666_v49  ;;  %v2665_v7 = vadd.f32 %v6449_v11, %v2359_v60  ;;  %v6815_v44 = vld [vmem:[#allocation39_spill] sm:$0xff] }
 0x2fe   :  { %v4304_v13 = vpop.f32.mrf.mxu1  ;;  %v2361_v59 = vadd.f32 %v6815_v44, %v2055_v16  ;;  %v2668_v58 = vadd.f32 %v6455_v33, %v2362_v28 }
 0x2ff   :  { %3288 = vst.msk [vmem:[%s6601_s8 + $0x30] sm:$0xff] %vm3281_vm0, %v3271_v15  ;;  %v3274_v61 = vadd.f32 %v4304_v13, %v2968_v14  ;;  %v2971_v25 = vadd.f32 %v2940_v53, %v2665_v7 }
 0x300   :  { %v3226_v27 = vpop.f32.mrf.mxu1  ;;  %v2974_v47 = vadd.f32 %v4257_v50, %v2668_v58  ;;  %v2667_v32 = vadd.f32 %v6463_v45, %v2361_v59 }
 0x301   :  { %3291 = vst.msk [vmem:[%s6601_s8 + $0x48] sm:$0xff] %vm3281_vm0, %v3274_v61  ;;  %v3273_v10 = vadd.f32 %v3226_v27, %v2967_v56 }
 0x302   :  { %v4307_v0 = vpop.f32.mrf.mxu1  ;;  %v2973_v14 = vadd.f32 %v2950_v39, %v2667_v32 }
 0x303   :  { %3290 = vst.msk [vmem:[%s6601_s8 + $0x40] sm:$0xff] %vm3281_vm0, %v3273_v10  ;;  %v3276_v36 = vadd.f32 %v4307_v0, %v2970_v31 }
 0x304   :  { %v3236_v37 = vpop.f32.mrf.mxu1 }
 0x305   :  { %3293 = vst.msk [vmem:[%s6601_s8 + $0x58] sm:$0xff] %vm3281_vm0, %v3276_v36  ;;  %v3275_v55 = vadd.f32 %v3236_v37, %v2969_v48 }
 0x306   :  { %v4310_v52 = vpop.f32.mrf.mxu1 }
 0x307   :  { %3292 = vst.msk [vmem:[%s6601_s8 + $0x50] sm:$0xff] %vm3281_vm0, %v3275_v55  ;;  %v3278_v54 = vadd.f32 %v4310_v52, %v2972_v41 }
 0x308   :  { %v3246_v11 = vpop.f32.mrf.mxu1 }
 0x309   :  { %3295 = vst.msk [vmem:[%s6601_s8 + $0x68] sm:$0xff] %vm3281_vm0, %v3278_v54  ;;  %v3277_v23 = vadd.f32 %v3246_v11, %v2971_v25 }
 0x30a   :  { %v4313_v6 = vpop.f32.mrf.mxu1 }
 0x30b   :  { %3294 = vst.msk [vmem:[%s6601_s8 + $0x60] sm:$0xff] %vm3281_vm0, %v3277_v23  ;;  %v3280_v33 = vadd.f32 %v4313_v6, %v2974_v47 }
 0x30c   :  { %v3256_v21 = vpop.f32.mrf.mxu1 }
 0x30d   :  { %3297 = vst.msk [vmem:[%s6601_s8 + $0x78] sm:$0xff] %vm3281_vm0, %v3280_v33  ;;  %v3279_v45 = vadd.f32 %v3256_v21, %v2973_v14 }
 0x30f   :  { %3296 = vst.msk [vmem:[%s6601_s8 + $0x70] sm:$0xff] %vm3281_vm0, %v3279_v45 }

</bundles_post_ra>
